<compile_context>
chip_gen: v5e
topology: v5e:2x2
jax: 0.10.0
libtpu: 0.0.40
codegen_flags: <defaults>
</compile_context>

<pallas_src>
import functools

import jax
import jax.numpy as jnp
from jax.experimental import pallas as pl
from jax.experimental.pallas import tpu as pltpu


# ----------------------------- configuration -------------------------------
DIM = 32                      # C
NUM_HEADS = 4
HEAD_DIM = DIM // NUM_HEADS   # 8
WS = 4                        # window size (ws != 1)
SCALE = HEAD_DIM ** (-0.5)
QKV_BIAS = False              # module default


# ------------------------------ Pallas kernel ------------------------------
def group_attn_kernel(x_ref, wq_ref, wk_ref, wv_ref, wproj_ref, bproj_ref,
                      o_ref):
    """One grid step = TB complete windows (window-column j, TB window-rows).

    x_ref     : (TB, WS, 1, WS, C)  tokens of TB windows (window-major blocks)
    wq/wk/wv  : (NH, C, D)          per-head projections (scale folded into wq)
    wproj_ref : (NH, D, C)          output projection, row-split per head
    bproj_ref : (1, C)              output projection bias
    o_ref     : (TB, WS, 1, WS, C)
    """
    tb, ws_a, _, ws_b, c = x_ref.shape
    s = ws_a * ws_b              # tokens per window
    m = tb * s                   # tokens per grid step
    nh, _, d = wq_ref.shape

    # All tokens of this step, window-major rows: (M, C).  Minor dim (C) is
    # preserved by every reshape below.
    x = x_ref[...].reshape(m, c)

    acc = jnp.zeros((m, c), dtype=jnp.float32)
    for h in range(nh):                                    # static unroll (NH=4)
        # Per-head projections — no in-kernel lane extracts (weights were
        # head-sliced wrapper-side, which is free).
        qh = jnp.dot(x, wq_ref[h], preferred_element_type=jnp.float32)   # (M, D)
        kh = jnp.dot(x, wk_ref[h], preferred_element_type=jnp.float32)
        vh = jnp.dot(x, wv_ref[h], preferred_element_type=jnp.float32)
        qh = qh.reshape(tb, s, d)
        kh = kh.reshape(tb, s, d)
        vh = vh.reshape(tb, s, d)

        # Window-batched attention (scale already folded into wq).
        a = jnp.einsum('wid,wjd->wij', qh, kh,
                       preferred_element_type=jnp.float32)               # (TB,S,S)
        a = a - jnp.max(a, axis=-1, keepdims=True)
        p = jnp.exp(a)
        # reciprocal + multiply instead of divide (approx=True is a further
        # EUP micro-opt; kept exact here to preserve 1e-4 agreement with ref).
        p = p * pl.reciprocal(jnp.sum(p, axis=-1, keepdims=True))
        # attn_drop is identity (p=0.0 / eval mode)
        oh = jnp.einsum('wij,wjd->wid', p, vh,
                        preferred_element_type=jnp.float32)              # (TB,S,D)

        # Accumulated output projection — replaces concat + single big matmul.
        acc = acc + jnp.dot(oh.reshape(m, d), wproj_ref[h],
                            preferred_element_type=jnp.float32)

    out = acc + bproj_ref[...]            # broadcast (1, C)
    # proj_drop is identity (p=0.0 / eval mode)
    o_ref[...] = out.reshape(tb, ws_a, 1, ws_b, c).astype(o_ref.dtype)


# ------------------------------ pallas wrapper ------------------------------
def _pick_tb(num_rows, wg, tokens_per_window, target_tokens=256):
    """Windows batched per grid step along the (B*hg) axis.

    Largest divisor of num_rows with <= ~target tokens per step, while keeping
    at least 2 grid steps total (v7x has 2 TensorCores)."""
    want = max(1, target_tokens // tokens_per_window)
    best = 1
    for cand in range(1, num_rows + 1):
        if num_rows % cand or cand > want:
            continue
        if (num_rows // cand) * wg >= 2 or num_rows * wg == 1:
            best = cand
    return best


def _group_attention_windows(xw, wq, wk, wv, wp, bp, tb):
    """xw: (B*hg, WS, wg, WS, C) -> same shape, attention applied per window."""
    r, ws_a, wg, ws_b, c = xw.shape
    nh, _, d = wq.shape

    blk = (tb, ws_a, 1, ws_b, c)
    tok_map = lambda i, j: (i, 0, j, 0, 0)
    w_map3 = lambda i, j: (0, 0, 0)          # weights stay VMEM-resident

    return pl.pallas_call(
        group_attn_kernel,
        out_shape=jax.ShapeDtypeStruct(xw.shape, xw.dtype),
        grid_spec=pltpu.PrefetchScalarGridSpec(
            num_scalar_prefetch=0,
            grid=(r // tb, wg),
            in_specs=[
                pl.BlockSpec(blk, tok_map),
                pl.BlockSpec((nh, c, d), w_map3),
                pl.BlockSpec((nh, c, d), w_map3),
                pl.BlockSpec((nh, c, d), w_map3),
                pl.BlockSpec((nh, d, c), w_map3),
                pl.BlockSpec((1, c), lambda i, j: (0, 0)),
            ],
            out_specs=pl.BlockSpec(blk, tok_map),
        ),
        compiler_params=pltpu.CompilerParams(
            dimension_semantics=("parallel", "parallel")),
    )(xw, wq, wk, wv, wp, bp)


@functools.partial(jax.jit, static_argnums=(1, 2))
def group_attention(x, H, W, params):
    """Forward pass equivalent to GroupAttention.forward(x, H, W).

    x: (B, N, C) with N = H * W, channels-last.
    """
    B, N, C = x.shape
    assert N == H * W
    assert H % WS == 0 and W % WS == 0, "H and W must be divisible by ws"
    hg, wg = H // WS, W // WS
    S = WS * WS

    # ---- weight prep: free slicing / reshapes, done once per call ----
    w_qkv = params["w_qkv"]                                # (C, 3C), y = x @ W
    wq = w_qkv[:, 0 * C:1 * C] * SCALE                     # fold qk scale into q
    wk = w_qkv[:, 1 * C:2 * C]
    wv = w_qkv[:, 2 * C:3 * C]
    split = lambda w: jnp.transpose(w.reshape(C, NUM_HEADS, HEAD_DIM), (1, 0, 2))
    wq, wk, wv = split(wq), split(wk), split(wv)           # (NH, C, D)
    wp = params["w_proj"].reshape(NUM_HEADS, HEAD_DIM, C)  # (NH, D, C)
    bp = params["b_proj"]                                  # (1, C)

    # ---- window layout: only free reshapes; the strided window gather is
    #      expressed in the kernel's BlockSpec index_map (no XLA transpose) ---
    xw = x.reshape(B * hg, WS, wg, WS, C)

    tb = _pick_tb(B * hg, wg, S)
    ow = _group_attention_windows(xw, wq, wk, wv, wp, bp, tb)

    return ow.reshape(B, N, C)


# ---------------------------- pure-JAX reference ----------------------------
def group_attention_ref(x, H, W, params):
    B, N, C = x.shape
    hg, wg = H // WS, W // WS
    G = hg * wg
    S = WS * WS
    xw = x.reshape(B, hg, WS, wg, WS, C).transpose(0, 1, 3, 2, 4, 5)
    xw = xw.reshape(B, G, S, C)
    qkv = xw @ params["w_qkv"]                                # (B, G, S, 3C)
    qkv = qkv.reshape(B, G, S, 3, NUM_HEADS, HEAD_DIM)
    qkv = jnp.transpose(qkv, (3, 0, 1, 4, 2, 5))              # (3, B, G, H, S, D)
    q, k, v = qkv[0], qkv[1], qkv[2]
    attn = jnp.einsum("bghsd,bghtd->bghst", q, k) * SCALE
    attn = jax.nn.softmax(attn, axis=-1)
    o = jnp.einsum("bghst,bghtd->bghsd", attn, v)
    o = jnp.transpose(o, (0, 1, 3, 2, 4)).reshape(B, hg, wg, WS, WS, C)
    o = jnp.transpose(o, (0, 1, 3, 2, 4, 5)).reshape(B, N, C)
    return o @ params["w_proj"] + params["b_proj"][0]


# ---------------------------------- main ------------------------------------
if __name__ == "__main__":
    key = jax.random.PRNGKey(0)
    k_x, k_qkv, k_proj, k_bias = jax.random.split(key, 4)

    B, H, W = 2, 8, 8
    N = H * W
    C = DIM

    x = jax.random.normal(k_x, (B, N, C), dtype=jnp.float32)

    # PyTorch nn.Linear stores weight as (out, in); we store the transpose so
    # the kernel computes y = x @ W (+ b).  qkv_bias=False (module default).
    params = {
        "w_qkv": (jax.random.normal(k_qkv, (C, 3 * C), dtype=jnp.float32)
                  * (1.0 / C ** 0.5)),
        "w_proj": (jax.random.normal(k_proj, (C, C), dtype=jnp.float32)
                   * (1.0 / C ** 0.5)),
        "b_proj": (jax.random.normal(k_bias, (1, C), dtype=jnp.float32) * 0.02),
    }

    out = group_attention(x, H, W, params)
    out = jax.block_until_ready(out)

    ref = group_attention_ref(x, H, W, params)
    assert out.shape == (B, N, C)
    assert jnp.allclose(out, ref, atol=1e-4, rtol=1e-4), "mismatch vs reference"

    print("KERNEL_OK")
</pallas_src>

<mosaic_0001>
module attributes {stable_mosaic.version = 11 : i64} {
  func.func @group_attn_kernel(%arg0: i32, %arg1: i32, %arg2: memref<4x4x1x4x32xf32, #tpu.memory_space<vmem>>, %arg3: memref<4x32x8xf32, #tpu.memory_space<vmem>>, %arg4: memref<4x32x8xf32, #tpu.memory_space<vmem>>, %arg5: memref<4x32x8xf32, #tpu.memory_space<vmem>>, %arg6: memref<4x8x32xf32, #tpu.memory_space<vmem>>, %arg7: memref<1x32xf32, #tpu.memory_space<vmem>>, %arg8: memref<4x4x1x4x32xf32, #tpu.memory_space<vmem>>) attributes {dimension_semantics = [#tpu.dimension_semantics<parallel>, #tpu.dimension_semantics<parallel>], iteration_bounds = array<i64: 1, 2>, scalar_prefetch = 0 : i64, scratch_operands = 0 : i64, tpu.core_type = #tpu.core_type<tc>, window_params = [{transform_indices = @transform_0, window_bounds = array<i64: 4, 4, 1, 4, 32>}, {pipeline_mode = #tpu.pipeline_mode<synchronous>, transform_indices = @transform_1, window_bounds = array<i64: 4, 32, 8>}, {pipeline_mode = #tpu.pipeline_mode<synchronous>, transform_indices = @transform_2, window_bounds = array<i64: 4, 32, 8>}, {pipeline_mode = #tpu.pipeline_mode<synchronous>, transform_indices = @transform_3, window_bounds = array<i64: 4, 32, 8>}, {pipeline_mode = #tpu.pipeline_mode<synchronous>, transform_indices = @transform_4, window_bounds = array<i64: 4, 8, 32>}, {pipeline_mode = #tpu.pipeline_mode<synchronous>, transform_indices = @transform_5, window_bounds = array<i64: 1, 32>}, {transform_indices = @transform_6, window_bounds = array<i64: 4, 4, 1, 4, 32>}]} {
    %c0 = arith.constant 0 : index
    %c0_0 = arith.constant 0 : index
    %c0_1 = arith.constant 0 : index
    %c0_2 = arith.constant 0 : index
    %c0_3 = arith.constant 0 : index
    %0 = vector.load %arg2[%c0, %c0_0, %c0_1, %c0_2, %c0_3] : memref<4x4x1x4x32xf32, #tpu.memory_space<vmem>>, vector<4x4x1x4x32xf32>
    %1 = vector.shape_cast %0 : vector<4x4x1x4x32xf32> to vector<64x32xf32>
    %cst = arith.constant 0.000000e+00 : f32
    %2 = vector.broadcast %cst : f32 to vector<64x32xf32>
    %c0_4 = arith.constant 0 : index
    %c0_5 = arith.constant 0 : index
    %c0_6 = arith.constant 0 : index
    %3 = vector.load %arg3[%c0_4, %c0_5, %c0_6] : memref<4x32x8xf32, #tpu.memory_space<vmem>>, vector<1x32x8xf32>
    %4 = vector.shape_cast %3 : vector<1x32x8xf32> to vector<32x8xf32>
    %cst_7 = arith.constant dense<0.000000e+00> : vector<64x8xf32>
    %5 = tpu.matmul %1, %4, %cst_7 {dimension_numbers = #tpu.dot_dimension_numbers<[1], [0], [0], [1], [0, 0, 1, 1], [], []>} : vector<64x32xf32>, vector<32x8xf32>, vector<64x8xf32> -> vector<64x8xf32>
    %c0_8 = arith.constant 0 : index
    %c0_9 = arith.constant 0 : index
    %c0_10 = arith.constant 0 : index
    %6 = vector.load %arg4[%c0_8, %c0_9, %c0_10] : memref<4x32x8xf32, #tpu.memory_space<vmem>>, vector<1x32x8xf32>
    %7 = vector.shape_cast %6 : vector<1x32x8xf32> to vector<32x8xf32>
    %cst_11 = arith.constant dense<0.000000e+00> : vector<64x8xf32>
    %8 = tpu.matmul %1, %7, %cst_11 {dimension_numbers = #tpu.dot_dimension_numbers<[1], [0], [0], [1], [0, 0, 1, 1], [], []>} : vector<64x32xf32>, vector<32x8xf32>, vector<64x8xf32> -> vector<64x8xf32>
    %c0_12 = arith.constant 0 : index
    %c0_13 = arith.constant 0 : index
    %c0_14 = arith.constant 0 : index
    %9 = vector.load %arg5[%c0_12, %c0_13, %c0_14] : memref<4x32x8xf32, #tpu.memory_space<vmem>>, vector<1x32x8xf32>
    %10 = vector.shape_cast %9 : vector<1x32x8xf32> to vector<32x8xf32>
    %cst_15 = arith.constant dense<0.000000e+00> : vector<64x8xf32>
    %11 = tpu.matmul %1, %10, %cst_15 {dimension_numbers = #tpu.dot_dimension_numbers<[1], [0], [0], [1], [0, 0, 1, 1], [], []>} : vector<64x32xf32>, vector<32x8xf32>, vector<64x8xf32> -> vector<64x8xf32>
    %12 = vector.shape_cast %5 : vector<64x8xf32> to vector<4x16x8xf32>
    %13 = vector.shape_cast %8 : vector<64x8xf32> to vector<4x16x8xf32>
    %14 = vector.shape_cast %11 : vector<64x8xf32> to vector<4x16x8xf32>
    "tpu.trace_start"() <{level = 10 : i32, message = "wid,wjd->wij"}> : () -> ()
    %cst_16 = arith.constant dense<0.000000e+00> : vector<4x16x16xf32>
    %15 = tpu.matmul %12, %13, %cst_16 {dimension_numbers = #tpu.dot_dimension_numbers<[2], [2], [1], [1], [0, 0, 0, 1, 1, 1], [0], [0]>} : vector<4x16x8xf32>, vector<4x16x8xf32>, vector<4x16x16xf32> -> vector<4x16x16xf32>
    "tpu.trace_stop"() : () -> ()
    %cst_17 = arith.constant dense<0xFF800000> : vector<4x16xf32>
    %16 = vector.multi_reduction <maximumf>, %15, %cst_17 [2] : vector<4x16x16xf32> to vector<4x16xf32>
    %17 = vector.shape_cast %16 : vector<4x16xf32> to vector<4x16x1xf32>
    %18 = vector.broadcast %17 : vector<4x16x1xf32> to vector<4x16x16xf32>
    %19 = arith.subf %15, %18 : vector<4x16x16xf32>
    %20 = math.exp %19 : vector<4x16x16xf32>
    %cst_18 = arith.constant dense<0.000000e+00> : vector<4x16xf32>
    %21 = vector.multi_reduction <add>, %20, %cst_18 [2] : vector<4x16x16xf32> to vector<4x16xf32>
    %22 = vector.shape_cast %21 : vector<4x16xf32> to vector<4x16x1xf32>
    %23 = tpu.reciprocal %22 : vector<4x16x1xf32> -> vector<4x16x1xf32>
    %24 = vector.broadcast %23 : vector<4x16x1xf32> to vector<4x16x16xf32>
    %25 = arith.mulf %20, %24 : vector<4x16x16xf32>
    "tpu.trace_start"() <{level = 10 : i32, message = "wij,wjd->wid"}> : () -> ()
    %cst_19 = arith.constant dense<0.000000e+00> : vector<4x16x8xf32>
    %26 = tpu.matmul %25, %14, %cst_19 {dimension_numbers = #tpu.dot_dimension_numbers<[2], [1], [1], [2], [0, 0, 0, 1, 1, 2], [0], [0]>} : vector<4x16x16xf32>, vector<4x16x8xf32>, vector<4x16x8xf32> -> vector<4x16x8xf32>
    "tpu.trace_stop"() : () -> ()
    %27 = vector.shape_cast %26 : vector<4x16x8xf32> to vector<64x8xf32>
    %c0_20 = arith.constant 0 : index
    %c0_21 = arith.constant 0 : index
    %c0_22 = arith.constant 0 : index
    %28 = vector.load %arg6[%c0_20, %c0_21, %c0_22] : memref<4x8x32xf32, #tpu.memory_space<vmem>>, vector<1x8x32xf32>
    %29 = vector.shape_cast %28 : vector<1x8x32xf32> to vector<8x32xf32>
    %cst_23 = arith.constant dense<0.000000e+00> : vector<64x32xf32>
    %30 = tpu.matmul %27, %29, %cst_23 {dimension_numbers = #tpu.dot_dimension_numbers<[1], [0], [0], [1], [0, 0, 1, 1], [], []>} : vector<64x8xf32>, vector<8x32xf32>, vector<64x32xf32> -> vector<64x32xf32>
    %31 = arith.addf %2, %30 : vector<64x32xf32>
    %c1 = arith.constant 1 : index
    %c0_24 = arith.constant 0 : index
    %c0_25 = arith.constant 0 : index
    %32 = vector.load %arg3[%c1, %c0_24, %c0_25] : memref<4x32x8xf32, #tpu.memory_space<vmem>>, vector<1x32x8xf32>
    %33 = vector.shape_cast %32 : vector<1x32x8xf32> to vector<32x8xf32>
    %cst_26 = arith.constant dense<0.000000e+00> : vector<64x8xf32>
    %34 = tpu.matmul %1, %33, %cst_26 {dimension_numbers = #tpu.dot_dimension_numbers<[1], [0], [0], [1], [0, 0, 1, 1], [], []>} : vector<64x32xf32>, vector<32x8xf32>, vector<64x8xf32> -> vector<64x8xf32>
    %c1_27 = arith.constant 1 : index
    %c0_28 = arith.constant 0 : index
    %c0_29 = arith.constant 0 : index
    %35 = vector.load %arg4[%c1_27, %c0_28, %c0_29] : memref<4x32x8xf32, #tpu.memory_space<vmem>>, vector<1x32x8xf32>
    %36 = vector.shape_cast %35 : vector<1x32x8xf32> to vector<32x8xf32>
    %cst_30 = arith.constant dense<0.000000e+00> : vector<64x8xf32>
    %37 = tpu.matmul %1, %36, %cst_30 {dimension_numbers = #tpu.dot_dimension_numbers<[1], [0], [0], [1], [0, 0, 1, 1], [], []>} : vector<64x32xf32>, vector<32x8xf32>, vector<64x8xf32> -> vector<64x8xf32>
    %c1_31 = arith.constant 1 : index
    %c0_32 = arith.constant 0 : index
    %c0_33 = arith.constant 0 : index
    %38 = vector.load %arg5[%c1_31, %c0_32, %c0_33] : memref<4x32x8xf32, #tpu.memory_space<vmem>>, vector<1x32x8xf32>
    %39 = vector.shape_cast %38 : vector<1x32x8xf32> to vector<32x8xf32>
    %cst_34 = arith.constant dense<0.000000e+00> : vector<64x8xf32>
    %40 = tpu.matmul %1, %39, %cst_34 {dimension_numbers = #tpu.dot_dimension_numbers<[1], [0], [0], [1], [0, 0, 1, 1], [], []>} : vector<64x32xf32>, vector<32x8xf32>, vector<64x8xf32> -> vector<64x8xf32>
    %41 = vector.shape_cast %34 : vector<64x8xf32> to vector<4x16x8xf32>
    %42 = vector.shape_cast %37 : vector<64x8xf32> to vector<4x16x8xf32>
    %43 = vector.shape_cast %40 : vector<64x8xf32> to vector<4x16x8xf32>
    "tpu.trace_start"() <{level = 10 : i32, message = "wid,wjd->wij"}> : () -> ()
    %cst_35 = arith.constant dense<0.000000e+00> : vector<4x16x16xf32>
    %44 = tpu.matmul %41, %42, %cst_35 {dimension_numbers = #tpu.dot_dimension_numbers<[2], [2], [1], [1], [0, 0, 0, 1, 1, 1], [0], [0]>} : vector<4x16x8xf32>, vector<4x16x8xf32>, vector<4x16x16xf32> -> vector<4x16x16xf32>
    "tpu.trace_stop"() : () -> ()
    %cst_36 = arith.constant dense<0xFF800000> : vector<4x16xf32>
    %45 = vector.multi_reduction <maximumf>, %44, %cst_36 [2] : vector<4x16x16xf32> to vector<4x16xf32>
    %46 = vector.shape_cast %45 : vector<4x16xf32> to vector<4x16x1xf32>
    %47 = vector.broadcast %46 : vector<4x16x1xf32> to vector<4x16x16xf32>
    %48 = arith.subf %44, %47 : vector<4x16x16xf32>
    %49 = math.exp %48 : vector<4x16x16xf32>
    %cst_37 = arith.constant dense<0.000000e+00> : vector<4x16xf32>
    %50 = vector.multi_reduction <add>, %49, %cst_37 [2] : vector<4x16x16xf32> to vector<4x16xf32>
    %51 = vector.shape_cast %50 : vector<4x16xf32> to vector<4x16x1xf32>
    %52 = tpu.reciprocal %51 : vector<4x16x1xf32> -> vector<4x16x1xf32>
    %53 = vector.broadcast %52 : vector<4x16x1xf32> to vector<4x16x16xf32>
    %54 = arith.mulf %49, %53 : vector<4x16x16xf32>
    "tpu.trace_start"() <{level = 10 : i32, message = "wij,wjd->wid"}> : () -> ()
    %cst_38 = arith.constant dense<0.000000e+00> : vector<4x16x8xf32>
    %55 = tpu.matmul %54, %43, %cst_38 {dimension_numbers = #tpu.dot_dimension_numbers<[2], [1], [1], [2], [0, 0, 0, 1, 1, 2], [0], [0]>} : vector<4x16x16xf32>, vector<4x16x8xf32>, vector<4x16x8xf32> -> vector<4x16x8xf32>
    "tpu.trace_stop"() : () -> ()
    %56 = vector.shape_cast %55 : vector<4x16x8xf32> to vector<64x8xf32>
    %c1_39 = arith.constant 1 : index
    %c0_40 = arith.constant 0 : index
    %c0_41 = arith.constant 0 : index
    %57 = vector.load %arg6[%c1_39, %c0_40, %c0_41] : memref<4x8x32xf32, #tpu.memory_space<vmem>>, vector<1x8x32xf32>
    %58 = vector.shape_cast %57 : vector<1x8x32xf32> to vector<8x32xf32>
    %cst_42 = arith.constant dense<0.000000e+00> : vector<64x32xf32>
    %59 = tpu.matmul %56, %58, %cst_42 {dimension_numbers = #tpu.dot_dimension_numbers<[1], [0], [0], [1], [0, 0, 1, 1], [], []>} : vector<64x8xf32>, vector<8x32xf32>, vector<64x32xf32> -> vector<64x32xf32>
    %60 = arith.addf %31, %59 : vector<64x32xf32>
    %c2 = arith.constant 2 : index
    %c0_43 = arith.constant 0 : index
    %c0_44 = arith.constant 0 : index
    %61 = vector.load %arg3[%c2, %c0_43, %c0_44] : memref<4x32x8xf32, #tpu.memory_space<vmem>>, vector<1x32x8xf32>
    %62 = vector.shape_cast %61 : vector<1x32x8xf32> to vector<32x8xf32>
    %cst_45 = arith.constant dense<0.000000e+00> : vector<64x8xf32>
    %63 = tpu.matmul %1, %62, %cst_45 {dimension_numbers = #tpu.dot_dimension_numbers<[1], [0], [0], [1], [0, 0, 1, 1], [], []>} : vector<64x32xf32>, vector<32x8xf32>, vector<64x8xf32> -> vector<64x8xf32>
    %c2_46 = arith.constant 2 : index
    %c0_47 = arith.constant 0 : index
    %c0_48 = arith.constant 0 : index
    %64 = vector.load %arg4[%c2_46, %c0_47, %c0_48] : memref<4x32x8xf32, #tpu.memory_space<vmem>>, vector<1x32x8xf32>
    %65 = vector.shape_cast %64 : vector<1x32x8xf32> to vector<32x8xf32>
    %cst_49 = arith.constant dense<0.000000e+00> : vector<64x8xf32>
    %66 = tpu.matmul %1, %65, %cst_49 {dimension_numbers = #tpu.dot_dimension_numbers<[1], [0], [0], [1], [0, 0, 1, 1], [], []>} : vector<64x32xf32>, vector<32x8xf32>, vector<64x8xf32> -> vector<64x8xf32>
    %c2_50 = arith.constant 2 : index
    %c0_51 = arith.constant 0 : index
    %c0_52 = arith.constant 0 : index
    %67 = vector.load %arg5[%c2_50, %c0_51, %c0_52] : memref<4x32x8xf32, #tpu.memory_space<vmem>>, vector<1x32x8xf32>
    %68 = vector.shape_cast %67 : vector<1x32x8xf32> to vector<32x8xf32>
    %cst_53 = arith.constant dense<0.000000e+00> : vector<64x8xf32>
    %69 = tpu.matmul %1, %68, %cst_53 {dimension_numbers = #tpu.dot_dimension_numbers<[1], [0], [0], [1], [0, 0, 1, 1], [], []>} : vector<64x32xf32>, vector<32x8xf32>, vector<64x8xf32> -> vector<64x8xf32>
    %70 = vector.shape_cast %63 : vector<64x8xf32> to vector<4x16x8xf32>
    %71 = vector.shape_cast %66 : vector<64x8xf32> to vector<4x16x8xf32>
    %72 = vector.shape_cast %69 : vector<64x8xf32> to vector<4x16x8xf32>
    "tpu.trace_start"() <{level = 10 : i32, message = "wid,wjd->wij"}> : () -> ()
    %cst_54 = arith.constant dense<0.000000e+00> : vector<4x16x16xf32>
    %73 = tpu.matmul %70, %71, %cst_54 {dimension_numbers = #tpu.dot_dimension_numbers<[2], [2], [1], [1], [0, 0, 0, 1, 1, 1], [0], [0]>} : vector<4x16x8xf32>, vector<4x16x8xf32>, vector<4x16x16xf32> -> vector<4x16x16xf32>
    "tpu.trace_stop"() : () -> ()
    %cst_55 = arith.constant dense<0xFF800000> : vector<4x16xf32>
    %74 = vector.multi_reduction <maximumf>, %73, %cst_55 [2] : vector<4x16x16xf32> to vector<4x16xf32>
    %75 = vector.shape_cast %74 : vector<4x16xf32> to vector<4x16x1xf32>
    %76 = vector.broadcast %75 : vector<4x16x1xf32> to vector<4x16x16xf32>
    %77 = arith.subf %73, %76 : vector<4x16x16xf32>
    %78 = math.exp %77 : vector<4x16x16xf32>
    %cst_56 = arith.constant dense<0.000000e+00> : vector<4x16xf32>
    %79 = vector.multi_reduction <add>, %78, %cst_56 [2] : vector<4x16x16xf32> to vector<4x16xf32>
    %80 = vector.shape_cast %79 : vector<4x16xf32> to vector<4x16x1xf32>
    %81 = tpu.reciprocal %80 : vector<4x16x1xf32> -> vector<4x16x1xf32>
    %82 = vector.broadcast %81 : vector<4x16x1xf32> to vector<4x16x16xf32>
    %83 = arith.mulf %78, %82 : vector<4x16x16xf32>
    "tpu.trace_start"() <{level = 10 : i32, message = "wij,wjd->wid"}> : () -> ()
    %cst_57 = arith.constant dense<0.000000e+00> : vector<4x16x8xf32>
    %84 = tpu.matmul %83, %72, %cst_57 {dimension_numbers = #tpu.dot_dimension_numbers<[2], [1], [1], [2], [0, 0, 0, 1, 1, 2], [0], [0]>} : vector<4x16x16xf32>, vector<4x16x8xf32>, vector<4x16x8xf32> -> vector<4x16x8xf32>
    "tpu.trace_stop"() : () -> ()
    %85 = vector.shape_cast %84 : vector<4x16x8xf32> to vector<64x8xf32>
    %c2_58 = arith.constant 2 : index
    %c0_59 = arith.constant 0 : index
    %c0_60 = arith.constant 0 : index
    %86 = vector.load %arg6[%c2_58, %c0_59, %c0_60] : memref<4x8x32xf32, #tpu.memory_space<vmem>>, vector<1x8x32xf32>
    %87 = vector.shape_cast %86 : vector<1x8x32xf32> to vector<8x32xf32>
    %cst_61 = arith.constant dense<0.000000e+00> : vector<64x32xf32>
    %88 = tpu.matmul %85, %87, %cst_61 {dimension_numbers = #tpu.dot_dimension_numbers<[1], [0], [0], [1], [0, 0, 1, 1], [], []>} : vector<64x8xf32>, vector<8x32xf32>, vector<64x32xf32> -> vector<64x32xf32>
    %89 = arith.addf %60, %88 : vector<64x32xf32>
    %c3 = arith.constant 3 : index
    %c0_62 = arith.constant 0 : index
    %c0_63 = arith.constant 0 : index
    %90 = vector.load %arg3[%c3, %c0_62, %c0_63] : memref<4x32x8xf32, #tpu.memory_space<vmem>>, vector<1x32x8xf32>
    %91 = vector.shape_cast %90 : vector<1x32x8xf32> to vector<32x8xf32>
    %cst_64 = arith.constant dense<0.000000e+00> : vector<64x8xf32>
    %92 = tpu.matmul %1, %91, %cst_64 {dimension_numbers = #tpu.dot_dimension_numbers<[1], [0], [0], [1], [0, 0, 1, 1], [], []>} : vector<64x32xf32>, vector<32x8xf32>, vector<64x8xf32> -> vector<64x8xf32>
    %c3_65 = arith.constant 3 : index
    %c0_66 = arith.constant 0 : index
    %c0_67 = arith.constant 0 : index
    %93 = vector.load %arg4[%c3_65, %c0_66, %c0_67] : memref<4x32x8xf32, #tpu.memory_space<vmem>>, vector<1x32x8xf32>
    %94 = vector.shape_cast %93 : vector<1x32x8xf32> to vector<32x8xf32>
    %cst_68 = arith.constant dense<0.000000e+00> : vector<64x8xf32>
    %95 = tpu.matmul %1, %94, %cst_68 {dimension_numbers = #tpu.dot_dimension_numbers<[1], [0], [0], [1], [0, 0, 1, 1], [], []>} : vector<64x32xf32>, vector<32x8xf32>, vector<64x8xf32> -> vector<64x8xf32>
    %c3_69 = arith.constant 3 : index
    %c0_70 = arith.constant 0 : index
    %c0_71 = arith.constant 0 : index
    %96 = vector.load %arg5[%c3_69, %c0_70, %c0_71] : memref<4x32x8xf32, #tpu.memory_space<vmem>>, vector<1x32x8xf32>
    %97 = vector.shape_cast %96 : vector<1x32x8xf32> to vector<32x8xf32>
    %cst_72 = arith.constant dense<0.000000e+00> : vector<64x8xf32>
    %98 = tpu.matmul %1, %97, %cst_72 {dimension_numbers = #tpu.dot_dimension_numbers<[1], [0], [0], [1], [0, 0, 1, 1], [], []>} : vector<64x32xf32>, vector<32x8xf32>, vector<64x8xf32> -> vector<64x8xf32>
    %99 = vector.shape_cast %92 : vector<64x8xf32> to vector<4x16x8xf32>
    %100 = vector.shape_cast %95 : vector<64x8xf32> to vector<4x16x8xf32>
    %101 = vector.shape_cast %98 : vector<64x8xf32> to vector<4x16x8xf32>
    "tpu.trace_start"() <{level = 10 : i32, message = "wid,wjd->wij"}> : () -> ()
    %cst_73 = arith.constant dense<0.000000e+00> : vector<4x16x16xf32>
    %102 = tpu.matmul %99, %100, %cst_73 {dimension_numbers = #tpu.dot_dimension_numbers<[2], [2], [1], [1], [0, 0, 0, 1, 1, 1], [0], [0]>} : vector<4x16x8xf32>, vector<4x16x8xf32>, vector<4x16x16xf32> -> vector<4x16x16xf32>
    "tpu.trace_stop"() : () -> ()
    %cst_74 = arith.constant dense<0xFF800000> : vector<4x16xf32>
    %103 = vector.multi_reduction <maximumf>, %102, %cst_74 [2] : vector<4x16x16xf32> to vector<4x16xf32>
    %104 = vector.shape_cast %103 : vector<4x16xf32> to vector<4x16x1xf32>
    %105 = vector.broadcast %104 : vector<4x16x1xf32> to vector<4x16x16xf32>
    %106 = arith.subf %102, %105 : vector<4x16x16xf32>
    %107 = math.exp %106 : vector<4x16x16xf32>
    %cst_75 = arith.constant dense<0.000000e+00> : vector<4x16xf32>
    %108 = vector.multi_reduction <add>, %107, %cst_75 [2] : vector<4x16x16xf32> to vector<4x16xf32>
    %109 = vector.shape_cast %108 : vector<4x16xf32> to vector<4x16x1xf32>
    %110 = tpu.reciprocal %109 : vector<4x16x1xf32> -> vector<4x16x1xf32>
    %111 = vector.broadcast %110 : vector<4x16x1xf32> to vector<4x16x16xf32>
    %112 = arith.mulf %107, %111 : vector<4x16x16xf32>
    "tpu.trace_start"() <{level = 10 : i32, message = "wij,wjd->wid"}> : () -> ()
    %cst_76 = arith.constant dense<0.000000e+00> : vector<4x16x8xf32>
    %113 = tpu.matmul %112, %101, %cst_76 {dimension_numbers = #tpu.dot_dimension_numbers<[2], [1], [1], [2], [0, 0, 0, 1, 1, 2], [0], [0]>} : vector<4x16x16xf32>, vector<4x16x8xf32>, vector<4x16x8xf32> -> vector<4x16x8xf32>
    "tpu.trace_stop"() : () -> ()
    %114 = vector.shape_cast %113 : vector<4x16x8xf32> to vector<64x8xf32>
    %c3_77 = arith.constant 3 : index
    %c0_78 = arith.constant 0 : index
    %c0_79 = arith.constant 0 : index
    %115 = vector.load %arg6[%c3_77, %c0_78, %c0_79] : memref<4x8x32xf32, #tpu.memory_space<vmem>>, vector<1x8x32xf32>
    %116 = vector.shape_cast %115 : vector<1x8x32xf32> to vector<8x32xf32>
    %cst_80 = arith.constant dense<0.000000e+00> : vector<64x32xf32>
    %117 = tpu.matmul %114, %116, %cst_80 {dimension_numbers = #tpu.dot_dimension_numbers<[1], [0], [0], [1], [0, 0, 1, 1], [], []>} : vector<64x8xf32>, vector<8x32xf32>, vector<64x32xf32> -> vector<64x32xf32>
    %118 = arith.addf %89, %117 : vector<64x32xf32>
    %c0_81 = arith.constant 0 : index
    %c0_82 = arith.constant 0 : index
    %119 = vector.load %arg7[%c0_81, %c0_82] : memref<1x32xf32, #tpu.memory_space<vmem>>, vector<1x32xf32>
    %120 = vector.broadcast %119 : vector<1x32xf32> to vector<64x32xf32>
    %121 = arith.addf %118, %120 : vector<64x32xf32>
    %122 = vector.shape_cast %121 : vector<64x32xf32> to vector<4x4x1x4x32xf32>
    %c0_83 = arith.constant 0 : index
    %c0_84 = arith.constant 0 : index
    %c0_85 = arith.constant 0 : index
    %c0_86 = arith.constant 0 : index
    %c0_87 = arith.constant 0 : index
    %123 = vector.load %arg8[%c0_83, %c0_84, %c0_85, %c0_86, %c0_87] : memref<4x4x1x4x32xf32, #tpu.memory_space<vmem>>, vector<4x4x1x4x32xf32>
    tpu.vector_store %arg8[%c0_83, %c0_84, %c0_85, %c0_86, %c0_87], %122 {strides = array<i32>} : memref<4x4x1x4x32xf32, #tpu.memory_space<vmem>>, vector<4x4x1x4x32xf32>,
    return
  }
  func.func @transform_0(%arg0: i32, %arg1: i32) -> (i32, i32, i32, i32, i32) {
    %c0_i32 = arith.constant 0 : i32
    %c0_i32_0 = arith.constant 0 : i32
    %c0_i32_1 = arith.constant 0 : i32
    %c0_i32_2 = arith.constant 0 : i32
    return %arg0, %c0_i32, %arg1, %c0_i32_0, %c0_i32_1 : i32, i32, i32, i32, i32
  }
  func.func @transform_1(%arg0: i32, %arg1: i32) -> (i32, i32, i32) {
    %c0_i32 = arith.constant 0 : i32
    %c0_i32_0 = arith.constant 0 : i32
    %c0_i32_1 = arith.constant 0 : i32
    %c0_i32_2 = arith.constant 0 : i32
    return %c0_i32, %c0_i32_0, %c0_i32_1 : i32, i32, i32
  }
  func.func @transform_2(%arg0: i32, %arg1: i32) -> (i32, i32, i32) {
    %c0_i32 = arith.constant 0 : i32
    %c0_i32_0 = arith.constant 0 : i32
    %c0_i32_1 = arith.constant 0 : i32
    %c0_i32_2 = arith.constant 0 : i32
    return %c0_i32, %c0_i32_0, %c0_i32_1 : i32, i32, i32
  }
  func.func @transform_3(%arg0: i32, %arg1: i32) -> (i32, i32, i32) {
    %c0_i32 = arith.constant 0 : i32
    %c0_i32_0 = arith.constant 0 : i32
    %c0_i32_1 = arith.constant 0 : i32
    %c0_i32_2 = arith.constant 0 : i32
    return %c0_i32, %c0_i32_0, %c0_i32_1 : i32, i32, i32
  }
  func.func @transform_4(%arg0: i32, %arg1: i32) -> (i32, i32, i32) {
    %c0_i32 = arith.constant 0 : i32
    %c0_i32_0 = arith.constant 0 : i32
    %c0_i32_1 = arith.constant 0 : i32
    %c0_i32_2 = arith.constant 0 : i32
    return %c0_i32, %c0_i32_0, %c0_i32_1 : i32, i32, i32
  }
  func.func @transform_5(%arg0: i32, %arg1: i32) -> (i32, i32) {
    %c0_i32 = arith.constant 0 : i32
    %c0_i32_0 = arith.constant 0 : i32
    %c0_i32_1 = arith.constant 0 : i32
    return %c0_i32, %c0_i32_0 : i32, i32
  }
  func.func @transform_6(%arg0: i32, %arg1: i32) -> (i32, i32, i32, i32, i32) {
    %c0_i32 = arith.constant 0 : i32
    %c0_i32_0 = arith.constant 0 : i32
    %c0_i32_1 = arith.constant 0 : i32
    %c0_i32_2 = arith.constant 0 : i32
    return %arg0, %c0_i32, %arg1, %c0_i32_0, %c0_i32_1 : i32, i32, i32, i32, i32
  }
}

</mosaic_0001>

<bundles_post_ra>
// kernel: group_attention.1
= control target key start
LH: loop header
LB: loop body
LE: loop exit
PB: predicated region body
PF: predicated region fallthrough
CT: control target
= control target key end

     0   :  { %s4360_s21 = smov 0   ;;  %s4362_s22 = smov 0   ;;  %s5714_s0 = inlined_call_operand.vmem [shape: f32[4,4,2,4,32], index: 0, kind: input, shape index: {}]   ;;  %s5715_s1 = inlined_call_operand.vmem [shape: f32[4,32,8], index: 1, kind: input, shape index: {}]   ;;  %s5716_s2 = inlined_call_operand.vmem [shape: f32[4,32,8], index: 2, kind: input, shape index: {}]   ;;  %s5717_s3 = inlined_call_operand.vmem [shape: f32[4,32,8], index: 3, kind: input, shape index: {}]   ;;  %s5718_s4 = inlined_call_operand.vmem [shape: f32[4,8,32], index: 4, kind: input, shape index: {}]   ;;  %s5719_s5 = inlined_call_operand.vmem [shape: f32[1,32], index: 5, kind: input, shape index: {}]   ;;  %s5720_s6 = inlined_call_operand.vmem [shape: f32[4,4,2,4,32], index: 6, kind: output, shape index: {}]  }
   0x1   :  { %s4364_s23 = smov 0   ;;  %s4366_s24 = smov 0  }
   0x2   :  { %s4368_s25 = smov 0  }
   0x3 LB: > { %s25_s26 = sadd.s32 1, %s4319_s24  ;;  %s3828_s27 = sadd.s32 4294967295, %s4323_s25   ;;  %s4323_s25 = sphi %s4368_s25, %s16_s25   ;;  %s4319_s24 = sphi %s4366_s24, %s5753_s24   ;;  %s4315_s23 = sphi %s4364_s23, %s5752_s23   ;;  %s4311_s22 = sphi %s4362_s22, %s5751_s22   ;;  %s4307_s21 = sphi %s4360_s21, %s5750_s21  }
   0x4   : > { %p26_p0 = scmp.ge.s32.totalorder %s25_s26, 2  ;;  %p44_p1 = scmp.ne.s32.totalorder %s4311_s22, %s4307_s21 }
   0x5   : > { %p45_p2 = scmp.eq.s32.totalorder %s4323_s25, 0  ;;  %p181_p4 = scmp.eq.s32.totalorder %s3828_s27, 1 }
   0x6   : > { %s5755_s26 = smov (%p26_p0, %s25_s26), 0  ;;  %s37_s29 = sadd.s32 1, %s4311_s22 }
   0x7   : > { %p46_p3 = por %p45_p2, %p44_p1  ;;  %s33_s28 = ssub.s32 %s4319_s24, %s5755_s26 }
   0x8   : > { %p35_p5 = scmp.eq.s32.totalorder %s33_s28, 0  ;;  %p4395_p6 = por %p181_p4, %p44_p1 }
   0x9   : > { %p3831_p7 = scmp.ge.s32.totalorder %s4323_s25, 2 }
   0xa   : > { %s4400_s7 = scalar_select %p35_p5, %s4311_s22, %s37_s29  }
   0xb   : > { %218 = sbr.rel (%p3831_p7) target bundleno = 36 (0x24), region = 36 }
  0x10   : > { %221 = sbr.rel (!%p46_p3) target bundleno = 36 (0x24), region = 40  ;;  %s223_s8 = sand.u32 (%p46_p3), 1, %s4311_s22  }
  0x11   : > { %s3833_s9 = sshll.u32 (%p46_p3), %s4319_s24, 2  ;;  %s3832_s10 = sshll.u32 (%p46_p3), %s223_s8, 6 }
  0x12   : > { %s4408_s13 = scalar_lea.vmem (%p46_p3), %s5714_s0, %s3833_s9  ;;  %s225_s14 = scalar_lea.vmem (%p46_p3), [#allocation2], %s3832_s10 }
  0x13   : > { %v247_v0 = vld [vmem:[%s4408_s13] sm:$0xf] (%p46_p3)  ;;  %v249_v1 = vld [vmem:[%s4408_s13 + $0x8] sm:$0xf] (%p46_p3)  ;;  %v251_v2 = vld [vmem:[%s4408_s13 + $0x10] sm:$0xf] (%p46_p3) }
  0x14   : > { %248 = vst [vmem:[%s225_s14] sm:$0xf] (%p46_p3), %v247_v0  ;;  %v253_v3 = vld [vmem:[%s4408_s13 + $0x18] sm:$0xf] (%p46_p3)  ;;  %v255_v4 = vld [vmem:[%s4408_s13 + $0x20] sm:$0xf] (%p46_p3) }
  0x15   : > { %250 = vst [vmem:[%s225_s14 + $0x4] sm:$0xf] %v249_v1  ;;  %v257_v5 = vld [vmem:[%s4408_s13 + $0x28] sm:$0xf]  ;;  %v259_v6 = vld [vmem:[%s4408_s13 + $0x30] sm:$0xf] }
  0x16   : > { %252 = vst [vmem:[%s225_s14 + $0x8] sm:$0xf] %v251_v2  ;;  %v261_v7 = vld [vmem:[%s4408_s13 + $0x38] sm:$0xf]  ;;  %v263_v8 = vld [vmem:[%s4408_s13 + $0x40] sm:$0xf] }
  0x17   : > { %254 = vst [vmem:[%s225_s14 + $0xc] sm:$0xf] %v253_v3  ;;  %v265_v9 = vld [vmem:[%s4408_s13 + $0x48] sm:$0xf]  ;;  %v267_v10 = vld [vmem:[%s4408_s13 + $0x50] sm:$0xf] }
  0x18   : > { %256 = vst [vmem:[%s225_s14 + $0x10] sm:$0xf] %v255_v4  ;;  %v269_v11 = vld [vmem:[%s4408_s13 + $0x58] sm:$0xf]  ;;  %v271_v12 = vld [vmem:[%s4408_s13 + $0x60] sm:$0xf] }
  0x19   : > { %258 = vst [vmem:[%s225_s14 + $0x14] sm:$0xf] %v257_v5  ;;  %v273_v13 = vld [vmem:[%s4408_s13 + $0x68] sm:$0xf]  ;;  %v275_v14 = vld [vmem:[%s4408_s13 + $0x70] sm:$0xf] }
  0x1a   : > { %260 = vst [vmem:[%s225_s14 + $0x18] sm:$0xf] %v259_v6  ;;  %v277_v15 = vld [vmem:[%s4408_s13 + $0x78] sm:$0xf] }
  0x1b   : > { %262 = vst [vmem:[%s225_s14 + $0x1c] sm:$0xf] %v261_v7 }
  0x1c   : > { %264 = vst [vmem:[%s225_s14 + $0x20] sm:$0xf] %v263_v8 }
  0x1d   : > { %266 = vst [vmem:[%s225_s14 + $0x24] sm:$0xf] %v265_v9 }
  0x1e   : > { %268 = vst [vmem:[%s225_s14 + $0x28] sm:$0xf] %v267_v10 }
  0x1f   : > { %270 = vst [vmem:[%s225_s14 + $0x2c] sm:$0xf] %v269_v11 }
  0x20   : > { %272 = vst [vmem:[%s225_s14 + $0x30] sm:$0xf] %v271_v12 }
  0x21   : > { %274 = vst [vmem:[%s225_s14 + $0x34] sm:$0xf] %v273_v13 }
  0x22   : > { %276 = vst [vmem:[%s225_s14 + $0x38] sm:$0xf] %v275_v14 }
  0x23   : > { %278 = vst [vmem:[%s225_s14 + $0x3c] sm:$0xf] %v277_v15 }
  0x24 PF: > { %p3834_p8 = scmp.ge.s32.totalorder %s4323_s25, 1  ;;  %p333_p9 = scmp.lt.s32.totalorder %s4323_s25, 3 }
  0x26   : > { %p334_p10 = pnand %p3834_p8, %p333_p9 }
  0x28   : > { %337 = sbr.rel (%p334_p10) target bundleno = 2768 (0xad0), region = 81 }
  0x2d   : > { %v389_v16 = vld [vmem:[%s5715_s1 + $0x18] sm:$0xff]  ;;  %v388_v17 = vld [vmem:[%s5715_s1 + $0x10] sm:$0xff]  ;;  %s340_s19 = sand.u32 1, %s4307_s21   ;;  %v387_v18 = vld [vmem:[%s5715_s1 + $0x8] sm:$0xff]  ;;  %vm437_vm0 = vcmask 261120   ;;  %vm679_vm1 = vcmask 64512  }
  0x2e   : > { %4104 = vmatpush.msra.mxu1 %v389_v16  ;;  %s4435_s20 = sshll.u32 %s340_s19, 6  ;;  %466 = vmatpush.msra.mxu0 %v389_v16  ;;  %v386_v22 = vld [vmem:[%s5715_s1] sm:$0xff]  ;;  %v498_v24 = vld [vmem:[%s5716_s2 + $0x18] sm:$0xff]  ;;  %v497_v27 = vld [vmem:[%s5716_s2 + $0x10] sm:$0xff]  ;;  %vm820_vm2 = vcmask 130048  }
  0x2f   : > { %4105 = vmatpush.msra.mxu2 %v389_v16  ;;  %4106 = vmatpush.msra.mxu3 %v389_v16  ;;  %s4441_s29 = scalar_lea.vmem [#allocation2], %s4435_s20  ;;  %v496_v30 = vld [vmem:[%s5716_s2 + $0x8] sm:$0xff]  ;;  %v495_v32 = vld [vmem:[%s5716_s2] sm:$0xff]  ;;  %v590_v8 = vld [vmem:[%s5717_s3 + $0x18] sm:$0xff]  ;;  %s5622_s11 = scalar_lea.vmem [#allocation3], %s4435_s20 }
  0x30   : > { %4107 = vmatpush.msra.mxu1 %v388_v17  ;;  %v4444_v19 = vld [vmem:[%s4441_s29 + $0x10] sm:$0xf]  ;;  %v4447_v20 = vld [vmem:[%s4441_s29 + $0x14] sm:$0xf]  ;;  %v4450_v21 = vld [vmem:[%s4441_s29 + $0x18] sm:$0xf]  ;;  %467 = vmatpush.msra.mxu0 %v388_v17 }
  0x31   : > { %414 = vst [vmem:[#allocation1 + $0x20] ss:$2 sm:$0xff] %v4444_v19  ;;  %v4457_v23 = vld [vmem:[%s4441_s29 + $0x1c] sm:$0xf]  ;;  %4108 = vmatpush.msra.mxu2 %v388_v17  ;;  %4109 = vmatpush.msra.mxu3 %v388_v17  ;;  %v4464_v25 = vld [vmem:[%s4441_s29] sm:$0xf] }
  0x32   : > { %4110 = vmatpush.msra.mxu1 %v387_v18  ;;  %416 = vst [vmem:[#allocation1 + $0x21] ss:$2 sm:$0xff] %v4447_v20  ;;  %468 = vmatpush.msra.mxu0 %v387_v18  ;;  %v4468_v26 = vld [vmem:[%s4441_s29 + $0x4] sm:$0xf]  ;;  %v4475_v28 = vld [vmem:[%s4441_s29 + $0x8] sm:$0xf] }
  0x33   : > { %418 = vst [vmem:[#allocation1 + $0x30] ss:$2 sm:$0xff] %v4450_v21  ;;  %4111 = vmatpush.msra.mxu2 %v387_v18  ;;  %4112 = vmatpush.msra.mxu3 %v387_v18  ;;  %v4479_v29 = vld [vmem:[%s4441_s29 + $0xc] sm:$0xf]  ;;  %v4487_v31 = vld [vmem:[%s4441_s29 + $0x30] sm:$0xf] }
  0x34   : > { %4113 = vmatpush.msra.mxu1 %v386_v22  ;;  %420 = vst [vmem:[#allocation1 + $0x31] ss:$2 sm:$0xff] %v4457_v23  ;;  %469 = vmatpush.msra.mxu0 %v386_v22  ;;  %v4494_v33 = vld [vmem:[%s4441_s29 + $0x34] sm:$0xf]  ;;  %v4497_v35 = vld [vmem:[%s4441_s29 + $0x38] sm:$0xf] }
  0x35   : > { %406 = vst [vmem:[#allocation1] ss:$2 sm:$0xff] %v4464_v25  ;;  %4114 = vmatpush.msra.mxu2 %v386_v22  ;;  %4115 = vmatpush.msra.mxu3 %v386_v22  ;;  %v4501_v36 = vld [vmem:[%s4441_s29 + $0x20] sm:$0xf]  ;;  %v4505_v37 = vld [vmem:[%s4441_s29 + $0x3c] sm:$0xf] }
  0x36   : > { %558 = vmatpush.msrb.mxu1 %v498_v24  ;;  %408 = vst [vmem:[#allocation1 + $0x1] ss:$2 sm:$0xff] %v4468_v26  ;;  %v4509_v39 = vld [vmem:[%s4441_s29 + $0x24] sm:$0xf]  ;;  %v4512_v40 = vld [vmem:[%s4441_s29 + $0x28] sm:$0xf] }
  0x37   : > { %410 = vst [vmem:[#allocation1 + $0x10] ss:$2 sm:$0xff] %v4475_v28  ;;  %v4518_v42 = vld [vmem:[%s4441_s29 + $0x2c] sm:$0xf]  ;;  %650 = vmatpush.msrb.mxu2 %v590_v8  ;;  %v588_v11 = vld [vmem:[%s5717_s3 + $0x8] sm:$0xff]  ;;  %v587_v12 = vld [vmem:[%s5717_s3] sm:$0xff] }
  0x38   : > { %559 = vmatpush.msrb.mxu1 %v497_v27  ;;  %412 = vst [vmem:[#allocation1 + $0x11] ss:$2 sm:$0xff] %v4479_v29  ;;  %v589_v9 = vld [vmem:[%s5717_s3 + $0x10] sm:$0xff]  ;;  %s4101_s20 = sshll.u32 (%p4395_p6), %s4315_s23, 2 }
  0x39   : > { %v423_v34 = vld.sshfl [vmem:[#allocation1 + $0x20] sm:$0xff pattern:$0x75316420]  ;;  %651 = vmatpush.msrb.mxu2 %v589_v9  ;;  %s3657_s14 = scalar_lea.vmem (%p4395_p6), %s5720_s6, %s4101_s20 }
  0x3a   : > { %560 = vmatpush.msrb.mxu1 %v496_v30  ;;  %429 = vst [vmem:[#allocation1 + $0x20] ss:$2 sm:$0xff] %v4487_v31 }
  0x3b   : > { %3839 = vmatmul.msk.f32.vlgmr.msra.gmra.mxu1 %vm437_vm0, %v423_v34  ;;  %v424_v38 = vld.sshfl [vmem:[#allocation1 + $0x30] sm:$0xff pattern:$0x75316420]  ;;  %430 = vst [vmem:[#allocation1 + $0x21] ss:$2 sm:$0xff] %v4494_v33  ;;  %652 = vmatpush.msrb.mxu2 %v588_v11 }
  0x3c   : > { %561 = vmatpush.msrb.mxu1 %v495_v32  ;;  %431 = vst [vmem:[#allocation1 + $0x30] ss:$2 sm:$0xff] %v4497_v35 }
  0x3d   : > { %v421_v41 = vld.sshfl [vmem:[#allocation1] sm:$0xff pattern:$0x75316420]  ;;  %432 = vst [vmem:[#allocation1 + $0x31] ss:$2 sm:$0xff] %v4505_v37  ;;  %653 = vmatpush.msrb.mxu2 %v587_v12 }
  0x3e   : > { %425 = vst [vmem:[#allocation1] ss:$2 sm:$0xff] %v4501_v36  ;;  %3837 = vmatmul.msk.f32.vlgmr.msra.gmra.mxu0 %vm437_vm0, %v421_v41 }
  0x3f   : > { %426 = vst [vmem:[#allocation1 + $0x1] ss:$2 sm:$0xff] %v4509_v39  ;;  %v422_v43 = vld.sshfl [vmem:[#allocation1 + $0x10] sm:$0xff pattern:$0x75316420] }
  0x40   : > { %427 = vst [vmem:[#allocation1 + $0x10] ss:$2 sm:$0xff] %v4512_v40 }
  0x41   : > { %428 = vst [vmem:[#allocation1 + $0x11] ss:$2 sm:$0xff] %v4518_v42 }
  0x42   : > { %v435_v44 = vld.sshfl [vmem:[#allocation1 + $0x20] sm:$0xff pattern:$0x75316420] }
  0x43   : > { %3840 = vmatmul.msk.f32.gmra.mxu1 %vm437_vm0, %v424_v38  ;;  %507 = vst [vmem:[#allocation1 + $0x20] ss:$2 sm:$0xff] %v4444_v19  ;;  %3843 = vmatmul.msk.f32.vlgmr.msra.gmra.mxu3 %vm437_vm0, %v435_v44 }
  0x44   : > { %509 = vst [vmem:[#allocation1 + $0x21] ss:$2 sm:$0xff] %v4447_v20  ;;  %v436_v45 = vld.sshfl [vmem:[#allocation1 + $0x30] sm:$0xff pattern:$0x75316420] }
  0x45   : > { %511 = vst [vmem:[#allocation1 + $0x30] ss:$2 sm:$0xff] %v4450_v21 }
  0x46   : > { %v433_v46 = vld.sshfl [vmem:[#allocation1] sm:$0xff pattern:$0x75316420]  ;;  %3838 = vmatmul.msk.f32.gmra.mxu0 %vm437_vm0, %v422_v43  ;;  %513 = vst [vmem:[#allocation1 + $0x31] ss:$2 sm:$0xff] %v4457_v23 }
  0x47   : > { %499 = vst [vmem:[#allocation1] ss:$2 sm:$0xff] %v4464_v25  ;;  %3841 = vmatmul.msk.f32.vlgmr.msra.gmra.mxu2 %vm437_vm0, %v433_v46 }
  0x48   : > { %501 = vst [vmem:[#allocation1 + $0x1] ss:$2 sm:$0xff] %v4468_v26  ;;  %v434_v47 = vld.sshfl [vmem:[#allocation1 + $0x10] sm:$0xff pattern:$0x75316420] }
  0x49   : > { %503 = vst [vmem:[#allocation1 + $0x10] ss:$2 sm:$0xff] %v4475_v28 }
  0x4a   : > { %505 = vst [vmem:[#allocation1 + $0x11] ss:$2 sm:$0xff] %v4479_v29 }
  0x4b   : > { %v516_v48 = vld.sshfl [vmem:[#allocation1 + $0x20] sm:$0xff pattern:$0x75316420]  ;;  %3844 = vmatmul.msk.f32.gmra.mxu3 %vm437_vm0, %v436_v45 }
  0x4c   : > { %522 = vst [vmem:[#allocation1 + $0x20] ss:$2 sm:$0xff] %v4487_v31 }
  0x4d   : > { %523 = vst [vmem:[#allocation1 + $0x21] ss:$2 sm:$0xff] %v4494_v33  ;;  %v517_v49 = vld.sshfl [vmem:[#allocation1 + $0x30] sm:$0xff pattern:$0x75316420] }
  0x4e   : > { %524 = vst [vmem:[#allocation1 + $0x30] ss:$2 sm:$0xff] %v4497_v35 }
  0x4f   : > { %v514_v50 = vld.sshfl [vmem:[#allocation1] sm:$0xff pattern:$0x75316420]  ;;  %525 = vst [vmem:[#allocation1 + $0x31] ss:$2 sm:$0xff] %v4505_v37  ;;  %3842 = vmatmul.msk.f32.gmra.mxu2 %vm437_vm0, %v434_v47 }
  0x50   : > { %3845 = vmatmul.msk.f32.vlgmr.msrb.gmra.mxu1 %vm437_vm0, %v514_v50  ;;  %518 = vst [vmem:[#allocation1] ss:$2 sm:$0xff] %v4501_v36 }
  0x51   : > { %519 = vst [vmem:[#allocation1 + $0x1] ss:$2 sm:$0xff] %v4509_v39  ;;  %v515_v51 = vld.sshfl [vmem:[#allocation1 + $0x10] sm:$0xff pattern:$0x75316420] }
  0x52   : > { %520 = vst [vmem:[#allocation1 + $0x10] ss:$2 sm:$0xff] %v4512_v40 }
  0x53   : > { %521 = vst [vmem:[#allocation1 + $0x11] ss:$2 sm:$0xff] %v4518_v42 }
  0x54   : > { %v528_v54 = vld.sshfl [vmem:[#allocation1 + $0x20] sm:$0xff pattern:$0x75316420] }
  0x55   : > { %599 = vst [vmem:[#allocation1 + $0x20] ss:$2 sm:$0xff] %v4444_v19 }
  0x56   : > { %601 = vst [vmem:[#allocation1 + $0x21] ss:$2 sm:$0xff] %v4447_v20  ;;  %v529_v55 = vld.sshfl [vmem:[#allocation1 + $0x30] sm:$0xff pattern:$0x75316420] }
  0x57   : > { %603 = vst [vmem:[#allocation1 + $0x30] ss:$2 sm:$0xff] %v4450_v21 }
  0x58   : > { %3846 = vmatmul.msk.f32.gmra.mxu1 %vm437_vm0, %v515_v51  ;;  %v526_v52 = vld.sshfl [vmem:[#allocation1] sm:$0xff pattern:$0x75316420]  ;;  %605 = vst [vmem:[#allocation1 + $0x31] ss:$2 sm:$0xff] %v4457_v23 }
  0x59   : > { %591 = vst [vmem:[#allocation1] ss:$2 sm:$0xff] %v4464_v25 }
  0x5a   : > { %593 = vst [vmem:[#allocation1 + $0x1] ss:$2 sm:$0xff] %v4468_v26  ;;  %v527_v53 = vld.sshfl [vmem:[#allocation1 + $0x10] sm:$0xff pattern:$0x75316420] }
  0x5b   : > { %595 = vst [vmem:[#allocation1 + $0x10] ss:$2 sm:$0xff] %v4475_v28 }
  0x5c   : > { %597 = vst [vmem:[#allocation1 + $0x11] ss:$2 sm:$0xff] %v4479_v29 }
  0x5d   : > { %v608_v17 = vld.sshfl [vmem:[#allocation1 + $0x20] sm:$0xff pattern:$0x75316420] }
  0x5e   : > { %614 = vst [vmem:[#allocation1 + $0x20] ss:$2 sm:$0xff] %v4487_v31 }
  0x5f   : > { %615 = vst [vmem:[#allocation1 + $0x21] ss:$2 sm:$0xff] %v4494_v33  ;;  %v609_v32 = vld.sshfl [vmem:[#allocation1 + $0x30] sm:$0xff pattern:$0x75316420] }
  0x60   : > { %3847 = vmatmul.msk.f32.gmra.mxu1 %vm437_vm0, %v516_v48  ;;  %616 = vst [vmem:[#allocation1 + $0x30] ss:$2 sm:$0xff] %v4497_v35 }
  0x61   : > { %v606_v10 = vld.sshfl [vmem:[#allocation1] sm:$0xff pattern:$0x75316420]  ;;  %617 = vst [vmem:[#allocation1 + $0x31] ss:$2 sm:$0xff] %v4505_v37 }
  0x62   : > { %610 = vst [vmem:[#allocation1] ss:$2 sm:$0xff] %v4501_v36  ;;  %3853 = vmatmul.msk.f32.vlgmr.msrb.gmra.mxu2 %vm437_vm0, %v606_v10 }
  0x63   : > { %611 = vst [vmem:[#allocation1 + $0x1] ss:$2 sm:$0xff] %v4509_v39  ;;  %v607_v14 = vld.sshfl [vmem:[#allocation1 + $0x10] sm:$0xff pattern:$0x75316420] }
  0x64   : > { %612 = vst [vmem:[#allocation1 + $0x10] ss:$2 sm:$0xff] %v4512_v40 }
  0x65   : > { %613 = vst [vmem:[#allocation1 + $0x11] ss:$2 sm:$0xff] %v4518_v42 }
  0x66   : > { %v620_v9 = vld.sshfl [vmem:[#allocation1 + $0x20] sm:$0xff pattern:$0x75316420] }
  0x67   : > { %1143 = vst [vmem:[#allocation1 + $0x20] ss:$2 sm:$0xff] %v4444_v19 }
  0x68   : > { %3848 = vmatmul.msk.f32.gmra.mxu1 %vm437_vm0, %v517_v49  ;;  %1145 = vst [vmem:[#allocation1 + $0x21] ss:$2 sm:$0xff] %v4447_v20  ;;  %v621_v11 = vld.sshfl [vmem:[#allocation1 + $0x30] sm:$0xff pattern:$0x75316420] }
  0x69   : > { %1147 = vst [vmem:[#allocation1 + $0x30] ss:$2 sm:$0xff] %v4450_v21 }
  0x6a   : > { %3854 = vmatmul.msk.f32.gmra.mxu2 %vm437_vm0, %v607_v14  ;;  %1149 = vst [vmem:[#allocation1 + $0x31] ss:$2 sm:$0xff] %v4457_v23 }
  0x70   : > { %3849 = vmatmul.msk.f32.gmra.mxu1 %vm437_vm0, %v526_v52 }
  0x72   : > { %3855 = vmatmul.msk.f32.gmra.mxu2 %vm437_vm0, %v608_v17 }
  0x78   : > { %3850 = vmatmul.msk.f32.gmra.mxu1 %vm437_vm0, %v527_v53 }
  0x7a   : > { %3856 = vmatmul.msk.f32.gmra.mxu2 %vm437_vm0, %v609_v32 }
  0x80   : > { %3851 = vmatmul.msk.f32.gmra.mxu1 %vm437_vm0, %v528_v54 }
  0x88   : > { %3852 = vmatmul.msk.f32.gmra.mxu1 %vm437_vm0, %v529_v55 }
  0xb8   : > { %v477_v56 = vpop.f32.mrf.mxu1 }
  0xbb   : > { %v471_v60 = vpop.f32.mrf.mxu0 }
  0xc0   : > { %v480_v57 = vpop.f32.mrf.mxu1 }
  0xc3   : > { %v474_v62 = vpop.f32.mrf.mxu0 }
  0xc6   : > { %v489_v6 = vpop.f32.mrf.mxu3 }
  0xca   : > { %v483_v2 = vpop.f32.mrf.mxu2 }
  0xcd   : > { %v563_v58 = vpop.f32.mrf.mxu1 }
  0xce   : > { %v492_v7 = vpop.f32.mrf.mxu3 }
  0xd2   : > { %v486_v3 = vpop.f32.mrf.mxu2 }
  0xd5   : > { %v566_v59 = vpop.f32.mrf.mxu1 }
  0xd6   : > { %3861 = vmatpush.xpose.msk.msrb.mxu3 %vm679_vm1, %v566_v59 }
  0xda   : > { %3862 = vmatpush.xpose.msk.msrb.mxu3 %vm679_vm1, %v563_v58 }
  0xdd   : > { %v569_v61 = vpop.f32.mrf.mxu1  ;;  %3863 = vmatmul.msk.f32.vlgmr.msrb.gmra.mxu3 %vm679_vm1, %v471_v60 }
  0xe5   : > { %v572_v63 = vpop.f32.mrf.mxu1  ;;  %3864 = vmatmul.msk.f32.gmra.mxu3 %vm679_vm1, %v474_v62  ;;  %v655_v52 = vpop.f32.mrf.mxu2 }
  0xe6   : > { %3865 = vmatpush.xpose.msk.msra.mxu3 %vm679_vm1, %v572_v63 }
  0xea   : > { %3866 = vmatpush.xpose.msk.msra.mxu3 %vm679_vm1, %v569_v61 }
  0xed   : > { %3867 = vmatmul.msk.f32.vlgmr.msra.gmra.mxu3 %vm679_vm1, %v477_v56  ;;  %v575_v0 = vpop.f32.mrf.mxu1  ;;  %v658_v60 = vpop.f32.mrf.mxu2 }
  0xee   : > { %1033 = vmatpush.msrb.mxu0 %v658_v60 }
  0xf0   : > { %1034 = vmatpush.msrb.mxu0 %v655_v52 }
  0xf5   : > { %3868 = vmatmul.msk.f32.gmra.mxu3 %vm679_vm1, %v480_v57  ;;  %v578_v1 = vpop.f32.mrf.mxu1 }
  0xf6   : > { %3869 = vmatpush.xpose.msk.msrb.mxu3 %vm679_vm1, %v578_v1 }
  0xfa   : > { %3870 = vmatpush.xpose.msk.msrb.mxu3 %vm679_vm1, %v575_v0 }
  0xfd   : > { %3871 = vmatmul.msk.f32.vlgmr.msrb.gmra.mxu3 %vm679_vm1, %v483_v2  ;;  %v581_v4 = vpop.f32.mrf.mxu1 }
 0x105   : > { %3872 = vmatmul.msk.f32.gmra.mxu3 %vm679_vm1, %v486_v3  ;;  %v584_v5 = vpop.f32.mrf.mxu1 }
 0x106   : > { %3873 = vmatpush.xpose.msk.msra.mxu3 %vm679_vm1, %v584_v5  ;;  %v618_v5 = vld.sshfl [vmem:[#allocation1] sm:$0xff pattern:$0x75316420] }
 0x107   : > { %3857 = vmatmul.msk.f32.gmra.mxu2 %vm437_vm0, %v618_v5  ;;  %1135 = vst [vmem:[#allocation1] ss:$2 sm:$0xff] %v4464_v25 }
 0x108   : > { %1137 = vst [vmem:[#allocation1 + $0x1] ss:$2 sm:$0xff] %v4468_v26 }
 0x10a   : > { %3874 = vmatpush.xpose.msk.msra.mxu3 %vm679_vm1, %v581_v4 }
 0x10d   : > { %3875 = vmatmul.msk.f32.vlgmr.msra.gmra.mxu3 %vm679_vm1, %v489_v6  ;;  %v661_v6 = vpop.f32.mrf.mxu2 }
 0x10f   : > { %v4644_v12 = vld.sshfl [vmem:[#allocation1] sm:$0xff pattern:$0x75316420] }
 0x110   : > { %1154 = vst [vmem:[#allocation1] ss:$2 sm:$0xff] %v4501_v36 }
 0x111   : > { %1155 = vst [vmem:[#allocation1 + $0x1] ss:$2 sm:$0xff] %v4509_v39 }
 0x115   : > { %3876 = vmatmul.msk.f32.gmra.mxu3 %vm679_vm1, %v492_v7  ;;  %v619_v7 = vld.sshfl [vmem:[#allocation1 + $0x10] sm:$0xff pattern:$0x75316420]  ;;  %v664_v8 = vpop.f32.mrf.mxu2 }
 0x116   : > { %3858 = vmatmul.msk.f32.gmra.mxu2 %vm437_vm0, %v619_v7  ;;  %1139 = vst [vmem:[#allocation1 + $0x10] ss:$2 sm:$0xff] %v4475_v28  ;;  %1062 = vmatpush.msra.mxu1 %v664_v8 }
 0x117   : > { %1141 = vst [vmem:[#allocation1 + $0x11] ss:$2 sm:$0xff] %v4479_v29 }
 0x118   : > { %1063 = vmatpush.msra.mxu1 %v661_v6  ;;  %v4690_v6 = vld.sshfl [vmem:[#allocation1 + $0x20] sm:$0xff pattern:$0x75316420] }
 0x119   : > { %1158 = vst [vmem:[#allocation1 + $0x20] ss:$2 sm:$0xff] %v4487_v31 }
 0x11a   : > { %1159 = vst [vmem:[#allocation1 + $0x21] ss:$2 sm:$0xff] %v4494_v33 }
 0x11e   : > { %3859 = vmatmul.msk.f32.gmra.mxu2 %vm437_vm0, %v620_v9 }
 0x126   : > { %3860 = vmatmul.msk.f32.gmra.mxu2 %vm437_vm0, %v621_v11 }
 0x160   : > { %v709_v13 = vpop.f32.mrf.mxu3 }
 0x161   : > { %v821_v15 = vsel %vm820_vm2, %v709_v13, -inf }
 0x162   : > { %822 = vmax.xlane.f32.xlu1 %v821_v15 }
 0x168   : > { %v712_v16 = vpop.f32.mrf.mxu3 }
 0x169   : > { %v824_v18 = vsel %vm820_vm2, %v712_v16, -inf }
 0x16a   : > { %825 = vmax.xlane.f32.xlu1 %v824_v18 }
 0x170   : > { %v744_v22 = vpop.f32.mrf.mxu3 }
 0x171   : > { %v827_v24 = vsel %vm820_vm2, %v744_v22, -inf }
 0x172   : > { %828 = vmax.xlane.f32.xlu0 %v827_v24 }
 0x178   : > { %v747_v27 = vpop.f32.mrf.mxu3 }
 0x179   : > { %v830_v30 = vsel %vm820_vm2, %v747_v27, -inf }
 0x17a   : > { %831 = vmax.xlane.f32.xlu0 %v830_v30  ;;  %v4652_v30 = vld.sshfl [vmem:[#allocation1 + $0x10] sm:$0xff pattern:$0x75316420] }
 0x17b   : > { %1156 = vst [vmem:[#allocation1 + $0x10] ss:$2 sm:$0xff] %v4512_v40 }
 0x17c   : > { %1157 = vst [vmem:[#allocation1 + $0x11] ss:$2 sm:$0xff] %v4518_v42 }
 0x180   : > { %v4606_v34 = vpop.f32.mrf.mxu3 }
 0x181   : > { %v833_v62 = vsel %vm820_vm2, %v4606_v34, -inf }
 0x188   : > { %v4608_v38 = vpop.f32.mrf.mxu3 }
 0x190   : > { %v4610_v45 = vpop.f32.mrf.mxu3 }
 0x191   : > { %v839_v4 = vsel %vm820_vm2, %v4610_v45, -inf }
 0x198   : > { %v817_v53 = vpop.f32.mrf.mxu3 }
 0x199   : > { %v842_v58 = vsel %vm820_vm2, %v817_v53, -inf }
 0x1d5   : > { %v823_v41 = vpop.xlane.xlu1 %822 }
 0x1d6   : > { %v845_v43 = vsub.f32 %v709_v13, %v823_v41  ;;  %v3900_v41 = vld [vmem:[%s5716_s2 + $0x38] sm:$0xff] }
 0x1d7   : > { %1287 = vmatpush.msrb.mxu1 %v3900_v41  ;;  %v4719_v41 = vld.sshfl [vmem:[#allocation1 + $0x30] sm:$0xff pattern:$0x75316420] }
 0x1d8   : > { %v853_v44 = vmul.f32 1.442695, %v845_v43  ;;  %v3899_v43 = vld [vmem:[%s5716_s2 + $0x30] sm:$0xff]  ;;  %1160 = vst [vmem:[#allocation1 + $0x30] ss:$2 sm:$0xff] %v4497_v35 }
 0x1d9   : > { %1288 = vmatpush.msrb.mxu1 %v3899_v43  ;;  %1161 = vst [vmem:[#allocation1 + $0x31] ss:$2 sm:$0xff] %v4505_v37 }
 0x1da   : > { %4157 = vpow2.f32 %v853_v44 }
 0x1dd   : > { %v826_v46 = vpop.xlane.xlu1 %825 }
 0x1de   : > { %v846_v47 = vsub.f32 %v712_v16, %v826_v46  ;;  %v4661_v46 = vld.sshfl [vmem:[#allocation1] sm:$0xff pattern:$0x75316420] }
 0x1df   : > { %1228 = vst [vmem:[#allocation1] ss:$2 sm:$0xff] %v4464_v25 }
 0x1e0   : > { %v4612_v48 = vpop.eup %4157  ;;  %v855_v49 = vmul.f32 1.442695, %v846_v47  ;;  %1230 = vst [vmem:[#allocation1 + $0x1] ss:$2 sm:$0xff] %v4468_v26 }
 0x1e1   : > { %v869_v50 = vsel %vm820_vm2, %v4612_v48, 0.0 }
 0x1e2   : > { %4159 = vpow2.f32 %v855_v49  ;;  %870 = vadd.xlane.f32.xlu0 %v869_v50  ;;  %v3898_v50 = vld [vmem:[%s5716_s2 + $0x28] sm:$0xff] }
 0x1e3   : > { %1289 = vmatpush.msrb.mxu1 %v3898_v50  ;;  %v3886_v50 = vld [vmem:[%s5715_s1 + $0x28] sm:$0xff] }
 0x1e5   : > { %v829_v51 = vpop.xlane.xlu0 %828 }
 0x1e6   : > { %v847_v54 = vsub.f32 %v744_v22, %v829_v51 }
 0x1e7   : > { %v4698_v9 = vld.sshfl [vmem:[#allocation1] sm:$0xff pattern:$0x75316420] }
 0x1e8   : > { %v4616_v55 = vpop.eup %4159  ;;  %v857_v56 = vmul.f32 1.442695, %v847_v54  ;;  %1247 = vst [vmem:[#allocation1] ss:$2 sm:$0xff] %v4501_v36 }
 0x1e9   : > { %v872_v57 = vsel %vm820_vm2, %v4616_v55, 0.0  ;;  %1248 = vst [vmem:[#allocation1 + $0x1] ss:$2 sm:$0xff] %v4509_v39 }
 0x1ea   : > { %4161 = vpow2.f32 %v857_v56  ;;  %873 = vadd.xlane.f32.xlu1 %v872_v57  ;;  %843 = vmax.xlane.f32.xlu0 %v842_v58  ;;  %v3897_v57 = vld [vmem:[%s5716_s2 + $0x20] sm:$0xff] }
 0x1eb   : > { %1290 = vmatpush.msrb.mxu1 %v3897_v57  ;;  %v1164_v57 = vld.sshfl [vmem:[#allocation1 + $0x20] sm:$0xff pattern:$0x75316420] }
 0x1ec   : > { %1236 = vst [vmem:[#allocation1 + $0x20] ss:$2 sm:$0xff] %v4444_v19 }
 0x1ed   : > { %v832_v59 = vpop.xlane.xlu0 %831  ;;  %1238 = vst [vmem:[#allocation1 + $0x21] ss:$2 sm:$0xff] %v4447_v20 }
 0x1ee   : > { %v848_v61 = vsub.f32 %v747_v27, %v832_v59 }
 0x1f0   : > { %v4623_v63 = vpop.eup %4161  ;;  %v859_v0 = vmul.f32 1.442695, %v848_v61 }
 0x1f1   : > { %v875_v1 = vsel %vm820_vm2, %v4623_v63, 0.0 }
 0x1f2   : > { %4163 = vpow2.f32 %v859_v0  ;;  %876 = vadd.xlane.f32.xlu2 %v875_v1  ;;  %834 = vmax.xlane.f32.xlu0 %v833_v62 }
 0x1f8   : > { %v4627_v2 = vpop.eup %4163 }
 0x1f9   : > { %v878_v3 = vsel %vm820_vm2, %v4627_v2, 0.0 }
 0x1fa   : > { %879 = vadd.xlane.f32.xlu2 %v878_v3 }
 0x202   : > { %840 = vmax.xlane.f32.xlu2 %v839_v4 }
 0x255   : > { %v871_v10 = vpop.xlane.xlu0 %870 }
 0x256   : > { %4165 = vrcp.f32 %v871_v10  ;;  %v904_v27 = vand.u32 2147483648, %v871_v10  ;;  %v902_v32 = vand.u32 2147483647, %v871_v10  ;;  %vm898_vm4 = vweird.f32 %v871_v10 }
 0x258   : > { %v905_v51 = vor.u32 1.1754944e-38, %v904_v27  ;;  %vm903_vm6 = vcmp.eq.f32.partialorder %v902_v32, 8.507059e+37  ;;  %v3888_v27 = vld [vmem:[%s5715_s1 + $0x38] sm:$0xff] }
 0x259   : > { %1194 = vmatpush.msra.mxu0 %v3888_v27 }
 0x25c   : > { %v4166_v13 = vpop.eup %4165 }
 0x25d   : > { %v894_v14 = vmul.f32 %v4166_v13, %v871_v10  ;;  %v4649_v15 = vpop.xlane.xlu1 %873  ;;  %v844_v16 = vpop.xlane.xlu0 %843  ;;  %vm899_vm3 = vweird.f32 %v4166_v13 }
 0x25e   : > { %4167 = vrcp.f32 %v4649_v15  ;;  %v852_v17 = vsub.f32 %v817_v53, %v844_v16  ;;  %vm4664_vm5 = vmor %vm898_vm4, %vm899_vm3  ;;  %v918_v62 = vand.u32 2147483648, %v4649_v15  ;;  %v916_v1 = vand.u32 2147483647, %v4649_v15 }
 0x25f   : > { %v895_v18 = vsub.f32 1.0, %v894_v14  ;;  %vm912_vm8 = vweird.f32 %v4649_v15 }
 0x260   : > { %v867_v22 = vmul.f32 1.442695, %v852_v17  ;;  %v919_v8 = vor.u32 1.1754944e-38, %v918_v62  ;;  %vm917_vm10 = vcmp.eq.f32.partialorder %v916_v1, 8.507059e+37 }
 0x261   : > { %v896_v24 = vmul.f32 %v4166_v13, %v895_v18 }
 0x262   : > { %4169 = vpow2.f32 %v867_v22 }
 0x263   : > { %v897_v44 = vadd.f32 %v4166_v13, %v896_v24 }
 0x264   : > { %v4168_v47 = vpop.eup %4167 }
 0x265   : > { %v908_v52 = vmul.f32 %v4168_v47, %v4649_v15  ;;  %v4673_v53 = vpop.xlane.xlu2 %876  ;;  %v835_v54 = vpop.xlane.xlu0 %834  ;;  %v901_v56 = vsel %vm4664_vm5, %v4166_v13, %v897_v44  ;;  %vm913_vm7 = vweird.f32 %v4168_v47 }
 0x266   : > { %4171 = vrcp.f32 %v4673_v53  ;;  %v849_v59 = vsub.f32 %v4606_v34, %v835_v54  ;;  %v906_v60 = vsel %vm903_vm6, %v905_v51, %v901_v56  ;;  %v4693_v34 = vld.sshfl [vmem:[#allocation1 + $0x10] sm:$0xff pattern:$0x75316420]  ;;  %vm914_vm9 = vmor %vm912_vm8, %vm913_vm7  ;;  %v932_v17 = vand.u32 2147483648, %v4673_v53 }
 0x267   : > { %v909_v58 = vsub.f32 1.0, %v908_v52  ;;  %v1005_v0 = vmul.f32 %v4612_v48, %v906_v60  ;;  %1232 = vst [vmem:[#allocation1 + $0x10] ss:$2 sm:$0xff] %v4475_v28  ;;  %v930_v24 = vand.u32 2147483647, %v4673_v53  ;;  %vm926_vm12 = vweird.f32 %v4673_v53 }
 0x268   : > { %v4683_v61 = vpop.eup %4169  ;;  %v861_v4 = vmul.f32 1.442695, %v849_v59  ;;  %1234 = vst [vmem:[#allocation1 + $0x11] ss:$2 sm:$0xff] %v4479_v29  ;;  %v933_v49 = vor.u32 1.1754944e-38, %v932_v17 }
 0x269   : > { %v910_v3 = vmul.f32 %v4168_v47, %v909_v58  ;;  %v890_v5 = vsel %vm820_vm2, %v4683_v61, 0.0  ;;  %3877 = vmatmul.msk.f32.vlgmr.msrb.gmra.mxu0 %vm820_vm2, %v1005_v0  ;;  %vm931_vm14 = vcmp.eq.f32.partialorder %v930_v24, 8.507059e+37 }
 0x26a   : > { %891 = vadd.xlane.f32.xlu2 %v890_v5  ;;  %4173 = vpow2.f32 %v861_v4  ;;  %v1165_v5 = vld.sshfl [vmem:[#allocation1 + $0x30] sm:$0xff pattern:$0x75316420] }
 0x26b   : > { %v911_v48 = vadd.f32 %v4168_v47, %v910_v3  ;;  %1240 = vst [vmem:[#allocation1 + $0x30] ss:$2 sm:$0xff] %v4450_v21 }
 0x26c   : > { %v4172_v7 = vpop.eup %4171  ;;  %1242 = vst [vmem:[#allocation1 + $0x31] ss:$2 sm:$0xff] %v4457_v23 }
 0x26d   : > { %v922_v10 = vmul.f32 %v4172_v7, %v4673_v53  ;;  %v880_v11 = vpop.xlane.xlu2 %879  ;;  %v915_v13 = vsel %vm914_vm9, %v4168_v47, %v911_v48  ;;  %vm927_vm11 = vweird.f32 %v4172_v7 }
 0x26e   : > { %4175 = vrcp.f32 %v880_v11  ;;  %v920_v14 = vsel %vm917_vm10, %v919_v8, %v915_v13  ;;  %vm928_vm13 = vmor %vm926_vm12, %vm927_vm11  ;;  %v946_v60 = vand.u32 2147483648, %v880_v11  ;;  %v944_v1 = vand.u32 2147483647, %v880_v11  ;;  %v1245_v8 = vld.sshfl [vmem:[#allocation1 + $0x20] sm:$0xff pattern:$0x75316420] }
 0x26f   : > { %v923_v15 = vsub.f32 1.0, %v922_v10  ;;  %v1006_v16 = vmul.f32 %v4616_v55, %v920_v14  ;;  %v3887_v55 = vld [vmem:[%s5715_s1 + $0x30] sm:$0xff]  ;;  %vm940_vm3 = vweird.f32 %v880_v11  ;;  %1251 = vst [vmem:[#allocation1 + $0x20] ss:$2 sm:$0xff] %v4487_v31  ;;  %v836_v13 = vsel %vm820_vm2, %v4608_v38, -inf }
 0x270   : > { %v4707_v18 = vpop.eup %4173  ;;  %v4722_v44 = vld.sshfl [vmem:[#allocation1 + $0x10] sm:$0xff pattern:$0x75316420]  ;;  %1195 = vmatpush.msra.mxu0 %v3887_v55  ;;  %v947_v3 = vor.u32 1.1754944e-38, %v946_v60  ;;  %vm945_vm5 = vcmp.eq.f32.partialorder %v944_v1, 8.507059e+37 }
 0x271   : > { %v924_v22 = vmul.f32 %v4172_v7, %v923_v15  ;;  %3878 = vmatmul.msk.f32.gmra.mxu0 %vm820_vm2, %v1006_v16  ;;  %v881_v32 = vsel %vm820_vm2, %v4707_v18, 0.0  ;;  %1249 = vst [vmem:[#allocation1 + $0x10] ss:$2 sm:$0xff] %v4512_v40 }
 0x272   : > { %882 = vadd.xlane.f32.xlu2 %v881_v32  ;;  %1250 = vst [vmem:[#allocation1 + $0x11] ss:$2 sm:$0xff] %v4518_v42  ;;  %1196 = vmatpush.msra.mxu0 %v3886_v50 }
 0x273   : > { %v925_v43 = vadd.f32 %v4172_v7, %v924_v22  ;;  %1252 = vst [vmem:[#allocation1 + $0x21] ss:$2 sm:$0xff] %v4494_v33 }
 0x274   : > { %v4176_v47 = vpop.eup %4175 }
 0x275   : > { %v929_v51 = vsel %vm928_vm13, %v4172_v7, %v925_v43  ;;  %v936_v52 = vmul.f32 %v4176_v47, %v880_v11  ;;  %v841_v54 = vpop.xlane.xlu2 %840  ;;  %vm941_vm15 = vweird.f32 %v4176_v47  ;;  %v1255_v11 = vld.sshfl [vmem:[#allocation1] sm:$0xff pattern:$0x75316420] }
 0x276   : > { %v934_v53 = vsel %vm931_vm14, %v933_v49, %v929_v51  ;;  %v851_v56 = vsub.f32 %v4610_v45, %v841_v54  ;;  %v3885_v45 = vld [vmem:[%s5715_s1 + $0x20] sm:$0xff]  ;;  %vm942_vm4 = vmor %vm940_vm3, %vm941_vm15  ;;  %1321 = vst [vmem:[#allocation1] ss:$2 sm:$0xff] %v4464_v25 }
 0x277   : > { %v937_v58 = vsub.f32 1.0, %v936_v52  ;;  %v1007_v59 = vmul.f32 %v4623_v63, %v934_v53  ;;  %1197 = vmatpush.msra.mxu0 %v3885_v45  ;;  %1323 = vst [vmem:[#allocation1 + $0x1] ss:$2 sm:$0xff] %v4468_v26 }
 0x278   : > { %v865_v62 = vmul.f32 1.442695, %v851_v56 }
 0x279   : > { %v938_v0 = vmul.f32 %v4176_v47, %v937_v58  ;;  %3879 = vmatmul.msk.f32.vlgmr.msra.gmra.mxu1 %vm820_vm2, %v1007_v59  ;;  %3889 = vmatmul.msk.f32.vlgmr.msra.gmra.mxu0 %vm437_vm0, %v4644_v12  ;;  %v1256_v14 = vld.sshfl [vmem:[#allocation1 + $0x10] sm:$0xff pattern:$0x75316420] }
 0x27a   : > { %4177 = vpow2.f32 %v865_v62  ;;  %1325 = vst [vmem:[#allocation1 + $0x10] ss:$2 sm:$0xff] %v4475_v28 }
 0x27b   : > { %v939_v63 = vadd.f32 %v4176_v47, %v938_v0  ;;  %1327 = vst [vmem:[#allocation1 + $0x11] ss:$2 sm:$0xff] %v4479_v29 }
 0x27d   : > { %v943_v4 = vsel %vm942_vm4, %v4176_v47, %v939_v63 }
 0x27e   : > { %v948_v48 = vsel %vm945_vm5, %v947_v3, %v943_v4 }
 0x27f   : > { %v1008_v7 = vmul.f32 %v4627_v2, %v948_v48  ;;  %v1246_v2 = vld.sshfl [vmem:[#allocation1 + $0x30] sm:$0xff pattern:$0x75316420] }
 0x280   : > { %v4744_v10 = vpop.eup %4177  ;;  %1253 = vst [vmem:[#allocation1 + $0x30] ss:$2 sm:$0xff] %v4497_v35 }
 0x281   : > { %3880 = vmatmul.msk.f32.gmra.mxu1 %vm820_vm2, %v1008_v7  ;;  %v887_v12 = vsel %vm820_vm2, %v4744_v10, 0.0  ;;  %3890 = vmatmul.msk.f32.gmra.mxu0 %vm437_vm0, %v4652_v30  ;;  %1254 = vst [vmem:[#allocation1 + $0x31] ss:$2 sm:$0xff] %v4505_v37  ;;  %v1257_v30 = vld.sshfl [vmem:[#allocation1 + $0x20] sm:$0xff pattern:$0x75316420] }
 0x282   : > { %888 = vadd.xlane.f32.xlu1 %v887_v12  ;;  %1329 = vst [vmem:[#allocation1 + $0x20] ss:$2 sm:$0xff] %v4444_v19 }
 0x283   : > { %1331 = vst [vmem:[#allocation1 + $0x21] ss:$2 sm:$0xff] %v4447_v20 }
 0x289   : > { %3901 = vmatmul.msk.f32.vlgmr.msrb.gmra.mxu1 %vm437_vm0, %v4698_v9  ;;  %3891 = vmatmul.msk.f32.gmra.mxu0 %vm437_vm0, %v4690_v6  ;;  %v1258_v9 = vld.sshfl [vmem:[#allocation1 + $0x30] sm:$0xff pattern:$0x75316420] }
 0x28a   : > { %837 = vmax.xlane.f32.xlu1 %v836_v13  ;;  %1333 = vst [vmem:[#allocation1 + $0x30] ss:$2 sm:$0xff] %v4450_v21 }
 0x28b   : > { %1335 = vst [vmem:[#allocation1 + $0x31] ss:$2 sm:$0xff] %v4457_v23 }
 0x291   : > { %3902 = vmatmul.msk.f32.gmra.mxu1 %vm437_vm0, %v4722_v44  ;;  %3892 = vmatmul.msk.f32.gmra.mxu0 %vm437_vm0, %v4719_v41 }
 0x299   : > { %3903 = vmatmul.msk.f32.gmra.mxu1 %vm437_vm0, %v1245_v8  ;;  %3893 = vmatmul.msk.f32.gmra.mxu0 %vm437_vm0, %v4661_v46  ;;  %v667_v46 = vpop.f32.mrf.mxu2 }
 0x2a1   : > { %3904 = vmatmul.msk.f32.gmra.mxu1 %vm437_vm0, %v1246_v2  ;;  %3894 = vmatmul.msk.f32.gmra.mxu0 %vm437_vm0, %v4693_v34  ;;  %v670_v6 = vpop.f32.mrf.mxu2 }
 0x2a2   : > { %1091 = vmatpush.msra.mxu2 %v670_v6 }
 0x2a4   : > { %1092 = vmatpush.msra.mxu2 %v667_v46 }
 0x2a9   : > { %3905 = vmatmul.msk.f32.gmra.mxu1 %vm437_vm0, %v1255_v11  ;;  %3895 = vmatmul.msk.f32.gmra.mxu0 %vm437_vm0, %v1164_v57  ;;  %v673_v15 = vpop.f32.mrf.mxu2 }
 0x2b1   : > { %3906 = vmatmul.msk.f32.gmra.mxu1 %vm437_vm0, %v1256_v14  ;;  %3896 = vmatmul.msk.f32.gmra.mxu0 %vm437_vm0, %v1165_v5  ;;  %v676_v34 = vpop.f32.mrf.mxu2 }
 0x2b2   : > { %1120 = vmatpush.msrb.mxu3 %v676_v34 }
 0x2b4   : > { %1121 = vmatpush.msrb.mxu3 %v673_v15 }
 0x2b9   : > { %3907 = vmatmul.msk.f32.gmra.mxu1 %vm437_vm0, %v1257_v30 }
 0x2c1   : > { %3908 = vmatmul.msk.f32.gmra.mxu1 %vm437_vm0, %v1258_v9 }
 0x2dd   : > { %v4785_v16 = vpop.xlane.xlu2 %891 }
 0x2de   : > { %vm996_vm15 = vweird.f32 %v4785_v16  ;;  %v1000_v14 = vand.u32 2147483647, %v4785_v16 }
 0x2e0   : > { %vm1001_vm4 = vcmp.eq.f32.partialorder %v1000_v14, 8.507059e+37 }
 0x2e5   : > { %v883_v17 = vpop.xlane.xlu2 %882 }
 0x2e6   : > { %4179 = vrcp.f32 %v883_v17  ;;  %v960_v32 = vand.u32 2147483648, %v883_v17  ;;  %v958_v41 = vand.u32 2147483647, %v883_v17  ;;  %vm954_vm7 = vweird.f32 %v883_v17  ;;  %v4788_v51 = vpop.f32.mrf.mxu0 }
 0x2e7   : > { %4181 = vrcp.f32 %v4785_v16 }
 0x2e8   : > { %v961_v44 = vor.u32 1.1754944e-38, %v960_v32  ;;  %vm959_vm9 = vcmp.eq.f32.partialorder %v958_v41, 8.507059e+37 }
 0x2ec   : > { %v4180_v22 = vpop.eup %4179 }
 0x2ed   : > { %v950_v24 = vmul.f32 %v4180_v22, %v883_v17  ;;  %vm955_vm6 = vweird.f32 %v4180_v22  ;;  %v4182_v49 = vpop.eup %4181 }
 0x2ee   : > { %vm956_vm8 = vmor %vm954_vm7, %vm955_vm6  ;;  %v992_v56 = vmul.f32 %v4182_v49, %v4785_v16  ;;  %v4798_v45 = vpop.f32.mrf.mxu0  ;;  %vm997_vm14 = vweird.f32 %v4182_v49 }
 0x2ef   : > { %v951_v27 = vsub.f32 1.0, %v950_v24  ;;  %vm998_vm3 = vmor %vm996_vm15, %vm997_vm14 }
 0x2f0   : > { %v993_v58 = vsub.f32 1.0, %v992_v56 }
 0x2f1   : > { %v952_v55 = vmul.f32 %v4180_v22, %v951_v27 }
 0x2f2   : > { %v994_v4 = vmul.f32 %v4182_v49, %v993_v58 }
 0x2f3   : > { %v953_v43 = vadd.f32 %v4180_v22, %v952_v55 }
 0x2f4   : > { %v995_v12 = vadd.f32 %v4182_v49, %v994_v4 }
 0x2f5   : > { %v889_v47 = vpop.xlane.xlu1 %888  ;;  %v957_v50 = vsel %vm956_vm8, %v4180_v22, %v953_v43 }
 0x2f6   : > { %4183 = vrcp.f32 %v889_v47  ;;  %v4790_v52 = vpop.f32.mrf.mxu1  ;;  %v962_v54 = vsel %vm959_vm9, %v961_v44, %v957_v50  ;;  %v988_v63 = vand.u32 2147483648, %v889_v47  ;;  %vm982_vm11 = vweird.f32 %v889_v47  ;;  %v1199_v9 = vpop.f32.mrf.mxu0 }
 0x2f7   : > { %v1009_v53 = vmul.f32 %v4707_v18, %v962_v54  ;;  %v986_v18 = vand.u32 2147483647, %v889_v47  ;;  %v999_v6 = vsel %vm998_vm3, %v4182_v49, %v995_v12 }
 0x2f8   : > { %v989_v7 = vor.u32 1.1754944e-38, %v988_v63 }
 0x2f9   : > { %3881 = vmatmul.msk.f32.vlgmr.msra.gmra.mxu2 %vm820_vm2, %v1009_v53  ;;  %vm987_vm13 = vcmp.eq.f32.partialorder %v986_v18, 8.507059e+37 }
 0x2fc   : > { %v4184_v57 = vpop.eup %4183 }
 0x2fd   : > { %v978_v59 = vmul.f32 %v4184_v57, %v889_v47  ;;  %v838_v60 = vpop.xlane.xlu1 %837  ;;  %vm983_vm10 = vweird.f32 %v4184_v57 }
 0x2fe   : > { %v850_v62 = vsub.f32 %v4608_v38, %v838_v60  ;;  %v4796_v0 = vpop.f32.mrf.mxu1  ;;  %vm984_vm12 = vmor %vm982_vm11, %vm983_vm10  ;;  %v1002_v38 = vand.u32 2147483648, %v4785_v16 }
 0x2ff   : > { %v979_v1 = vsub.f32 1.0, %v978_v59 }
 0x300   : > { %v863_v3 = vmul.f32 1.442695, %v850_v62  ;;  %v1003_v15 = vor.u32 1.1754944e-38, %v1002_v38  ;;  %v3912_v38 = vld [vmem:[%s5717_s3 + $0x38] sm:$0xff] }
 0x301   : > { %v980_v5 = vmul.f32 %v4184_v57, %v979_v1  ;;  %1380 = vmatpush.msrb.mxu2 %v3912_v38 }
 0x302   : > { %4185 = vpow2.f32 %v863_v3  ;;  %v1004_v34 = vsel %vm1001_vm4, %v1003_v15, %v999_v6 }
 0x303   : > { %v981_v48 = vadd.f32 %v4184_v57, %v980_v5  ;;  %v1012_v22 = vmul.f32 %v4683_v61, %v1004_v34 }
 0x305   : > { %v985_v8 = vsel %vm984_vm12, %v4184_v57, %v981_v48 }
 0x306   : > { %v990_v11 = vsel %vm987_vm13, %v989_v7, %v985_v8  ;;  %v1292_v2 = vpop.f32.mrf.mxu1 }
 0x307   : > { %v1011_v13 = vmul.f32 %v4744_v10, %v990_v11  ;;  %v1202_v10 = vpop.f32.mrf.mxu0  ;;  %v3911_v11 = vld [vmem:[%s5717_s3 + $0x30] sm:$0xff] }
 0x308   : > { %v4186_v30 = vpop.eup %4185  ;;  %1381 = vmatpush.msrb.mxu2 %v3911_v11 }
 0x309   : > { %3883 = vmatmul.msk.f32.vlgmr.msrb.gmra.mxu3 %vm820_vm2, %v1011_v13  ;;  %v884_v46 = vsel %vm820_vm2, %v4186_v30, 0.0 }
 0x30a   : > { %885 = vadd.xlane.f32.xlu0 %v884_v46 }
 0x30e   : > { %v1295_v17 = vpop.f32.mrf.mxu1 }
 0x30f   : > { %3921 = vmatpush.xpose.msk.msra.mxu3 %vm679_vm1, %v1295_v17  ;;  %v1205_v24 = vpop.f32.mrf.mxu0  ;;  %v3909_v17 = vld [vmem:[%s5717_s3 + $0x20] sm:$0xff] }
 0x311   : > { %3884 = vmatmul.msk.f32.gmra.mxu3 %vm820_vm2, %v1012_v22  ;;  %v1336_v22 = vld.sshfl [vmem:[#allocation1] sm:$0xff pattern:$0x75316420] }
 0x312   : > { %1340 = vst [vmem:[#allocation1] ss:$2 sm:$0xff] %v4501_v36 }
 0x313   : > { %3922 = vmatpush.xpose.msk.msra.mxu3 %vm679_vm1, %v1292_v2  ;;  %v3910_v2 = vld [vmem:[%s5717_s3 + $0x28] sm:$0xff]  ;;  %1341 = vst [vmem:[#allocation1 + $0x1] ss:$2 sm:$0xff] %v4509_v39 }
 0x314   : > { %1382 = vmatpush.msrb.mxu2 %v3910_v2 }
 0x316   : > { %v1298_v16 = vpop.f32.mrf.mxu1  ;;  %1383 = vmatpush.msrb.mxu2 %v3909_v17 }
 0x317   : > { %v1208_v55 = vpop.f32.mrf.mxu0 }
 0x319   : > { %3923 = vmatmul.msk.f32.vlgmr.msra.gmra.mxu3 %vm679_vm1, %v1199_v9 }
 0x31e   : > { %v1301_v27 = vpop.f32.mrf.mxu1 }
 0x31f   : > { %3925 = vmatpush.xpose.msk.msrb.mxu3 %vm679_vm1, %v1301_v27  ;;  %v1211_v41 = vpop.f32.mrf.mxu0  ;;  %v1348_v27 = vld.sshfl [vmem:[#allocation1] sm:$0xff pattern:$0x75316420] }
 0x320   : > { %1994 = vst [vmem:[#allocation1] ss:$2 sm:$0xff] %v4464_v25 }
 0x321   : > { %3924 = vmatmul.msk.f32.gmra.mxu3 %vm679_vm1, %v1202_v10  ;;  %v1337_v10 = vld.sshfl [vmem:[#allocation1 + $0x10] sm:$0xff pattern:$0x75316420]  ;;  %1996 = vst [vmem:[#allocation1 + $0x1] ss:$2 sm:$0xff] %v4468_v26 }
 0x322   : > { %1342 = vst [vmem:[#allocation1 + $0x10] ss:$2 sm:$0xff] %v4512_v40 }
 0x323   : > { %3926 = vmatpush.xpose.msk.msrb.mxu3 %vm679_vm1, %v1298_v16  ;;  %1343 = vst [vmem:[#allocation1 + $0x11] ss:$2 sm:$0xff] %v4518_v42  ;;  %v1338_v16 = vld.sshfl [vmem:[#allocation1 + $0x20] sm:$0xff pattern:$0x75316420] }
 0x324   : > { %1344 = vst [vmem:[#allocation1 + $0x20] ss:$2 sm:$0xff] %v4487_v31 }
 0x325   : > { %1345 = vst [vmem:[#allocation1 + $0x21] ss:$2 sm:$0xff] %v4494_v33 }
 0x326   : > { %v1304_v32 = vpop.f32.mrf.mxu1 }
 0x327   : > { %v1214_v44 = vpop.f32.mrf.mxu0 }
 0x329   : > { %3927 = vmatmul.msk.f32.vlgmr.msrb.gmra.mxu3 %vm679_vm1, %v1205_v24  ;;  %v1339_v24 = vld.sshfl [vmem:[#allocation1 + $0x30] sm:$0xff pattern:$0x75316420] }
 0x32a   : > { %1346 = vst [vmem:[#allocation1 + $0x30] ss:$2 sm:$0xff] %v4497_v35 }
 0x32b   : > { %1347 = vst [vmem:[#allocation1 + $0x31] ss:$2 sm:$0xff] %v4505_v37 }
 0x32e   : > { %v1307_v61 = vpop.f32.mrf.mxu1 }
 0x32f   : > { %3929 = vmatpush.xpose.msk.msra.mxu3 %vm679_vm1, %v1307_v61  ;;  %v1217_v49 = vpop.f32.mrf.mxu0 }
 0x331   : > { %3928 = vmatmul.msk.f32.gmra.mxu3 %vm679_vm1, %v1208_v55  ;;  %v1350_v55 = vld.sshfl [vmem:[#allocation1 + $0x20] sm:$0xff pattern:$0x75316420] }
 0x332   : > { %2002 = vst [vmem:[#allocation1 + $0x20] ss:$2 sm:$0xff] %v4444_v19  ;;  %v1351_v61 = vld.sshfl [vmem:[#allocation1 + $0x30] sm:$0xff pattern:$0x75316420] }
 0x333   : > { %3930 = vmatpush.xpose.msk.msra.mxu3 %vm679_vm1, %v1304_v32  ;;  %v1349_v32 = vld.sshfl [vmem:[#allocation1 + $0x10] sm:$0xff pattern:$0x75316420]  ;;  %2004 = vst [vmem:[#allocation1 + $0x21] ss:$2 sm:$0xff] %v4447_v20 }
 0x334   : > { %1998 = vst [vmem:[#allocation1 + $0x10] ss:$2 sm:$0xff] %v4475_v28 }
 0x335   : > { %2000 = vst [vmem:[#allocation1 + $0x11] ss:$2 sm:$0xff] %v4479_v29 }
 0x336   : > { %v1310_v43 = vpop.f32.mrf.mxu1  ;;  %2006 = vst [vmem:[#allocation1 + $0x30] ss:$2 sm:$0xff] %v4450_v21 }
 0x337   : > { %v1220_v50 = vpop.f32.mrf.mxu0  ;;  %2008 = vst [vmem:[#allocation1 + $0x31] ss:$2 sm:$0xff] %v4457_v23 }
 0x339   : > { %3931 = vmatmul.msk.f32.vlgmr.msra.gmra.mxu3 %vm679_vm1, %v1211_v41 }
 0x33e   : > { %v1313_v47 = vpop.f32.mrf.mxu1 }
 0x33f   : > { %3933 = vmatpush.xpose.msk.msrb.mxu3 %vm679_vm1, %v1313_v47 }
 0x341   : > { %3932 = vmatmul.msk.f32.gmra.mxu3 %vm679_vm1, %v1214_v44 }
 0x343   : > { %3934 = vmatpush.xpose.msk.msrb.mxu3 %vm679_vm1, %v1310_v43 }
 0x349   : > { %3935 = vmatmul.msk.f32.vlgmr.msrb.gmra.mxu3 %vm679_vm1, %v1217_v49 }
 0x351   : > { %3936 = vmatmul.msk.f32.gmra.mxu3 %vm679_vm1, %v1220_v50 }
 0x37d   : > { %v886_v54 = vpop.xlane.xlu0 %885 }
 0x37e   : > { %4187 = vrcp.f32 %v886_v54  ;;  %v974_v58 = vand.u32 2147483648, %v886_v54  ;;  %v972_v60 = vand.u32 2147483647, %v886_v54  ;;  %vm968_vm6 = vweird.f32 %v886_v54 }
 0x380   : > { %v975_v1 = vor.u32 1.1754944e-38, %v974_v58  ;;  %vm973_vm8 = vcmp.eq.f32.partialorder %v972_v60, 8.507059e+37 }
 0x384   : > { %v4188_v53 = vpop.eup %4187 }
 0x385   : > { %v964_v56 = vmul.f32 %v4188_v53, %v886_v54  ;;  %vm969_vm5 = vweird.f32 %v4188_v53 }
 0x386   : > { %vm970_vm7 = vmor %vm968_vm6, %vm969_vm5 }
 0x387   : > { %v965_v57 = vsub.f32 1.0, %v964_v56 }
 0x389   : > { %v966_v59 = vmul.f32 %v4188_v53, %v965_v57 }
 0x38b   : > { %v967_v62 = vadd.f32 %v4188_v53, %v966_v59 }
 0x38c   : > { %v4824_v63 = vpop.f32.mrf.mxu3 }
 0x38d   : > { %v971_v3 = vsel %vm970_vm7, %v4188_v53, %v967_v62 }
 0x38e   : > { %v976_v4 = vsel %vm973_vm8, %v975_v1, %v971_v3 }
 0x38f   : > { %v1010_v5 = vmul.f32 %v4186_v30, %v976_v4 }
 0x391   : > { %3882 = vmatmul.msk.f32.gmra.mxu2 %vm820_vm2, %v1010_v5 }
 0x394   : > { %v4827_v18 = vpop.f32.mrf.mxu3 }
 0x399   : > { %3913 = vmatmul.msk.f32.vlgmr.msrb.gmra.mxu2 %vm437_vm0, %v1336_v22 }
 0x39c   : > { %v4829_v48 = vpop.f32.mrf.mxu3 }
 0x39d   : > { %v1549_v38 = vsel %vm820_vm2, %v4829_v48, -inf }
 0x3a1   : > { %3914 = vmatmul.msk.f32.gmra.mxu2 %vm437_vm0, %v1337_v10 }
 0x3a4   : > { %v4831_v7 = vpop.f32.mrf.mxu3 }
 0x3a5   : > { %v1552_v56 = vsel %vm820_vm2, %v4831_v7, -inf }
 0x3a9   : > { %3915 = vmatmul.msk.f32.gmra.mxu2 %vm437_vm0, %v1338_v16 }
 0x3ac   : > { %v4833_v8 = vpop.f32.mrf.mxu3 }
 0x3b1   : > { %3916 = vmatmul.msk.f32.gmra.mxu2 %vm437_vm0, %v1339_v24 }
 0x3b4   : > { %v4835_v12 = vpop.f32.mrf.mxu3 }
 0x3b9   : > { %3917 = vmatmul.msk.f32.gmra.mxu2 %vm437_vm0, %v1348_v27 }
 0x3bc   : > { %v1508_v13 = vpop.f32.mrf.mxu3 }
 0x3bd   : > { %v1561_v14 = vsel %vm820_vm2, %v1508_v13, -inf }
 0x3be   : > { %1562 = vmax.xlane.f32.xlu0 %v1561_v14 }
 0x3c1   : > { %3918 = vmatmul.msk.f32.gmra.mxu2 %vm437_vm0, %v1349_v32  ;;  %v4909_v32 = vld.sshfl [vmem:[#allocation1] sm:$0xff pattern:$0x75316420] }
 0x3c2   : > { %2013 = vst [vmem:[#allocation1] ss:$2 sm:$0xff] %v4501_v36 }
 0x3c3   : > { %2014 = vst [vmem:[#allocation1 + $0x1] ss:$2 sm:$0xff] %v4509_v39 }
 0x3c4   : > { %v4847_v30 = vpop.f32.mrf.mxu3 }
 0x3c5   : > { %v1564_v15 = vsel %vm820_vm2, %v4847_v30, -inf }
 0x3c9   : > { %3919 = vmatmul.msk.f32.gmra.mxu2 %vm437_vm0, %v1350_v55 }
 0x3cc   : > { %v1543_v9 = vpop.f32.mrf.mxu3 }
 0x3cd   : > { %v1567_v46 = vsel %vm820_vm2, %v1543_v9, -inf }
 0x3ce   : > { %1568 = vmax.xlane.f32.xlu1 %v1567_v46 }
 0x3d1   : > { %3920 = vmatmul.msk.f32.gmra.mxu2 %vm437_vm0, %v1351_v61 }
 0x3d4   : > { %v1546_v6 = vpop.f32.mrf.mxu3 }
 0x3d5   : > { %v1570_v34 = vsel %vm820_vm2, %v1546_v6, -inf }
 0x3d6   : > { %1565 = vmax.xlane.f32.xlu1 %v1564_v15  ;;  %1571 = vmax.xlane.f32.xlu2 %v1570_v34 }
 0x431   : > { %v1563_v41 = vpop.xlane.xlu0 %1562 }
 0x432   : > { %v1577_v43 = vsub.f32 %v1508_v13, %v1563_v41  ;;  %v1555_v13 = vsel %vm820_vm2, %v4833_v8, -inf }
 0x434   : > { %v1589_v44 = vmul.f32 1.442695, %v1577_v43 }
 0x436   : > { %4189 = vpow2.f32 %v1589_v44 }
 0x43c   : > { %v4880_v47 = vpop.eup %4189 }
 0x43d   : > { %v1609_v49 = vsel %vm820_vm2, %v4880_v47, 0.0 }
 0x43e   : > { %1610 = vadd.xlane.f32.xlu1 %v1609_v49 }
 0x441   : > { %v1569_v50 = vpop.xlane.xlu1 %1568 }
 0x442   : > { %v1579_v54 = vsub.f32 %v1543_v9, %v1569_v50  ;;  %v4905_v9 = vpop.f32.mrf.mxu2 }
 0x444   : > { %v1593_v53 = vmul.f32 1.442695, %v1579_v54 }
 0x446   : > { %4191 = vpow2.f32 %v1593_v53  ;;  %1553 = vmax.xlane.f32.xlu1 %v1552_v56  ;;  %v4914_v56 = vld.sshfl [vmem:[#allocation1 + $0x10] sm:$0xff pattern:$0x75316420] }
 0x447   : > { %2015 = vst [vmem:[#allocation1 + $0x10] ss:$2 sm:$0xff] %v4512_v40 }
 0x448   : > { %2016 = vst [vmem:[#allocation1 + $0x11] ss:$2 sm:$0xff] %v4518_v42 }
 0x449   : > { %v1572_v57 = vpop.xlane.xlu2 %1571  ;;  %v1566_v58 = vpop.xlane.xlu1 %1565 }
 0x44a   : > { %v1580_v59 = vsub.f32 %v1546_v6, %v1572_v57  ;;  %v1578_v1 = vsub.f32 %v4847_v30, %v1566_v58  ;;  %v1558_v30 = vsel %vm820_vm2, %v4835_v12, -inf  ;;  %v4907_v46 = vpop.f32.mrf.mxu2  ;;  %v3977_v58 = vld [vmem:[%s5716_s2 + $0x58] sm:$0xff] }
 0x44c   : > { %v4886_v60 = vpop.eup %4191  ;;  %v1595_v62 = vmul.f32 1.442695, %v1580_v59  ;;  %v1591_v4 = vmul.f32 1.442695, %v1578_v1  ;;  %v3976_v59 = vld [vmem:[%s5716_s2 + $0x50] sm:$0xff] }
 0x44d   : > { %v1615_v3 = vsel %vm820_vm2, %v4886_v60, 0.0 }
 0x44e   : > { %1616 = vadd.xlane.f32.xlu2 %v1615_v3  ;;  %4193 = vpow2.f32 %v1595_v62  ;;  %v4923_v62 = vld.sshfl [vmem:[#allocation1] sm:$0xff pattern:$0x75316420] }
 0x44f   : > { %4195 = vpow2.f32 %v1591_v4  ;;  %v3975_v4 = vld [vmem:[%s5716_s2 + $0x48] sm:$0xff]  ;;  %2087 = vst [vmem:[#allocation1] ss:$2 sm:$0xff] %v4464_v25 }
 0x450   : > { %2089 = vst [vmem:[#allocation1 + $0x1] ss:$2 sm:$0xff] %v4468_v26 }
 0x452   : > { %v1385_v6 = vpop.f32.mrf.mxu2 }
 0x454   : > { %v4891_v5 = vpop.eup %4193 }
 0x455   : > { %v1618_v11 = vsel %vm820_vm2, %v4891_v5, 0.0  ;;  %v4897_v2 = vpop.eup %4195 }
 0x456   : > { %1550 = vmax.xlane.f32.xlu2 %v1549_v38  ;;  %1619 = vadd.xlane.f32.xlu0 %v1618_v11  ;;  %v1612_v14 = vsel %vm820_vm2, %v4897_v2, 0.0 }
 0x45a   : > { %v1388_v15 = vpop.f32.mrf.mxu2 }
 0x45b   : > { %1761 = vmatpush.msrb.mxu0 %v1388_v15  ;;  %v4945_v15 = vld.sshfl [vmem:[#allocation1 + $0x10] sm:$0xff pattern:$0x75316420] }
 0x45c   : > { %2091 = vst [vmem:[#allocation1 + $0x10] ss:$2 sm:$0xff] %v4475_v28 }
 0x45d   : > { %1762 = vmatpush.msrb.mxu0 %v1385_v6  ;;  %v4940_v6 = vld.sshfl [vmem:[#allocation1 + $0x20] sm:$0xff pattern:$0x75316420]  ;;  %2093 = vst [vmem:[#allocation1 + $0x11] ss:$2 sm:$0xff] %v4479_v29 }
 0x45e   : > { %1556 = vmax.xlane.f32.xlu2 %v1555_v13  ;;  %1613 = vadd.xlane.f32.xlu0 %v1612_v14  ;;  %v3974_v13 = vld [vmem:[%s5716_s2 + $0x40] sm:$0xff]  ;;  %2017 = vst [vmem:[#allocation1 + $0x20] ss:$2 sm:$0xff] %v4487_v31 }
 0x45f   : > { %2018 = vst [vmem:[#allocation1 + $0x21] ss:$2 sm:$0xff] %v4494_v33 }
 0x462   : > { %v1391_v34 = vpop.f32.mrf.mxu2 }
 0x466   : > { %1559 = vmax.xlane.f32.xlu0 %v1558_v30 }
 0x46a   : > { %v1394_v17 = vpop.f32.mrf.mxu2 }
 0x46b   : > { %1790 = vmatpush.msra.mxu1 %v1394_v17 }
 0x46d   : > { %1791 = vmatpush.msra.mxu1 %v1391_v34 }
 0x472   : > { %v1397_v22 = vpop.f32.mrf.mxu2 }
 0x47a   : > { %v1400_v10 = vpop.f32.mrf.mxu2 }
 0x47b   : > { %1819 = vmatpush.msra.mxu2 %v1400_v10  ;;  %v4949_v10 = vld.sshfl [vmem:[#allocation1] sm:$0xff pattern:$0x75316420] }
 0x47c   : > { %2106 = vst [vmem:[#allocation1] ss:$2 sm:$0xff] %v4501_v36 }
 0x47d   : > { %1820 = vmatpush.msra.mxu2 %v1397_v22  ;;  %2107 = vst [vmem:[#allocation1 + $0x1] ss:$2 sm:$0xff] %v4509_v39 }
 0x482   : > { %v1403_v16 = vpop.f32.mrf.mxu2 }
 0x48a   : > { %v1406_v27 = vpop.f32.mrf.mxu2 }
 0x48b   : > { %1848 = vmatpush.msra.mxu3 %v1406_v27 }
 0x48d   : > { %1849 = vmatpush.msra.mxu3 %v1403_v16 }
 0x48f   : > { %2146 = vmatpush.msrb.mxu3 %v3977_v58 }
 0x491   : > { %2147 = vmatpush.msrb.mxu3 %v3976_v59 }
 0x493   : > { %2148 = vmatpush.msrb.mxu3 %v3975_v4 }
 0x495   : > { %2149 = vmatpush.msrb.mxu3 %v3974_v13  ;;  %v4974_v13 = vld.sshfl [vmem:[#allocation1 + $0x20] sm:$0xff pattern:$0x75316420] }
 0x496   : > { %2095 = vst [vmem:[#allocation1 + $0x20] ss:$2 sm:$0xff] %v4444_v19 }
 0x497   : > { %2097 = vst [vmem:[#allocation1 + $0x21] ss:$2 sm:$0xff] %v4447_v20 }
 0x4b1   : > { %v1611_v24 = vpop.xlane.xlu1 %1610 }
 0x4b2   : > { %4197 = vrcp.f32 %v1611_v24  ;;  %v1688_v49 = vand.u32 2147483648, %v1611_v24  ;;  %v1686_v53 = vand.u32 2147483647, %v1611_v24  ;;  %vm1682_vm10 = vweird.f32 %v1611_v24 }
 0x4b4   : > { %vm1687_vm12 = vcmp.eq.f32.partialorder %v1686_v53, 8.507059e+37  ;;  %v4964_v53 = vld.sshfl [vmem:[#allocation1 + $0x10] sm:$0xff pattern:$0x75316420] }
 0x4b5   : > { %2108 = vst [vmem:[#allocation1 + $0x10] ss:$2 sm:$0xff] %v4512_v40 }
 0x4b6   : > { %2109 = vst [vmem:[#allocation1 + $0x11] ss:$2 sm:$0xff] %v4518_v42 }
 0x4b8   : > { %v4198_v55 = vpop.eup %4197 }
 0x4b9   : > { %v1678_v61 = vmul.f32 %v4198_v55, %v1611_v24  ;;  %v1554_v41 = vpop.xlane.xlu1 %1553  ;;  %vm1683_vm9 = vweird.f32 %v4198_v55 }
 0x4ba   : > { %v1574_v43 = vsub.f32 %v4831_v7, %v1554_v41  ;;  %vm1684_vm11 = vmor %vm1682_vm10, %vm1683_vm9  ;;  %v1689_v7 = vor.u32 1.1754944e-38, %v1688_v49 }
 0x4bb   : > { %v1679_v44 = vsub.f32 1.0, %v1678_v61 }
 0x4bc   : > { %v1583_v50 = vmul.f32 1.442695, %v1574_v43 }
 0x4bd   : > { %v1680_v54 = vmul.f32 %v4198_v55, %v1679_v44  ;;  %v3964_v44 = vld [vmem:[%s5715_s1 + $0x50] sm:$0xff] }
 0x4be   : > { %4199 = vpow2.f32 %v1583_v50 }
 0x4bf   : > { %v1681_v57 = vadd.f32 %v4198_v55, %v1680_v54  ;;  %v4962_v54 = vld.sshfl [vmem:[#allocation1 + $0x30] sm:$0xff pattern:$0x75316420] }
 0x4c0   : > { %2019 = vst [vmem:[#allocation1 + $0x30] ss:$2 sm:$0xff] %v4497_v35 }
 0x4c1   : > { %v1685_v1 = vsel %vm1684_vm11, %v4198_v55, %v1681_v57  ;;  %v1617_v3 = vpop.xlane.xlu2 %1616  ;;  %v3962_v57 = vld [vmem:[%s5715_s1 + $0x40] sm:$0xff]  ;;  %2020 = vst [vmem:[#allocation1 + $0x31] ss:$2 sm:$0xff] %v4505_v37 }
 0x4c2   : > { %v1690_v38 = vsel %vm1687_vm12, %v1689_v7, %v1685_v1  ;;  %4201 = vrcp.f32 %v1617_v3  ;;  %v1716_v55 = vand.u32 2147483648, %v1617_v3  ;;  %v1714_v43 = vand.u32 2147483647, %v1617_v3 }
 0x4c3   : > { %v1737_v11 = vmul.f32 %v4880_v47, %v1690_v38  ;;  %v3965_v47 = vld [vmem:[%s5715_s1 + $0x58] sm:$0xff]  ;;  %vm1710_vm14 = vweird.f32 %v1617_v3 }
 0x4c4   : > { %v4935_v14 = vpop.eup %4199  ;;  %2053 = vmatpush.msrb.mxu2 %v3965_v47  ;;  %v1717_v50 = vor.u32 1.1754944e-38, %v1716_v55  ;;  %vm1715_vm3 = vcmp.eq.f32.partialorder %v1714_v43, 8.507059e+37 }
 0x4c5   : > { %3941 = vmatmul.msk.f32.vlgmr.msra.gmra.mxu2 %vm820_vm2, %v1737_v11  ;;  %v1600_v30 = vsel %vm820_vm2, %v4935_v14, 0.0 }
 0x4c6   : > { %1601 = vadd.xlane.f32.xlu2 %v1600_v30  ;;  %2054 = vmatpush.msrb.mxu2 %v3964_v44 }
 0x4c8   : > { %v4202_v34 = vpop.eup %4201  ;;  %v2024_v44 = vld.sshfl [vmem:[#allocation1 + $0x30] sm:$0xff pattern:$0x75316420] }
 0x4c9   : > { %v1706_v17 = vmul.f32 %v4202_v34, %v1617_v3  ;;  %v1551_v22 = vpop.xlane.xlu2 %1550  ;;  %v1620_v16 = vpop.xlane.xlu0 %1619  ;;  %vm1711_vm13 = vweird.f32 %v4202_v34  ;;  %2099 = vst [vmem:[#allocation1 + $0x30] ss:$2 sm:$0xff] %v4450_v21 }
 0x4ca   : > { %v1573_v24 = vsub.f32 %v4829_v48, %v1551_v22  ;;  %4203 = vrcp.f32 %v1620_v16  ;;  %v3963_v48 = vld [vmem:[%s5715_s1 + $0x48] sm:$0xff]  ;;  %vm1712_vm15 = vmor %vm1710_vm14, %vm1711_vm13  ;;  %vm1724_vm5 = vweird.f32 %v1620_v16  ;;  %2101 = vst [vmem:[#allocation1 + $0x31] ss:$2 sm:$0xff] %v4457_v23 }
 0x4cb   : > { %v1707_v27 = vsub.f32 1.0, %v1706_v17  ;;  %2055 = vmatpush.msrb.mxu2 %v3963_v48  ;;  %v1730_v17 = vand.u32 2147483648, %v1620_v16 }
 0x4cc   : > { %v1581_v61 = vmul.f32 1.442695, %v1573_v24 }
 0x4cd   : > { %v1708_v41 = vmul.f32 %v4202_v34, %v1707_v27  ;;  %2056 = vmatpush.msrb.mxu2 %v3962_v57  ;;  %v1731_v55 = vor.u32 1.1754944e-38, %v1730_v17 }
 0x4ce   : > { %4205 = vpow2.f32 %v1581_v61 }
 0x4cf   : > { %v1709_v49 = vadd.f32 %v4202_v34, %v1708_v41 }
 0x4d0   : > { %v4204_v58 = vpop.eup %4203 }
 0x4d1   : > { %v1713_v59 = vsel %vm1712_vm15, %v4202_v34, %v1709_v49  ;;  %v1557_v7 = vpop.xlane.xlu2 %1556  ;;  %v1720_v3 = vmul.f32 %v4204_v58, %v1620_v16  ;;  %v1614_v4 = vpop.xlane.xlu0 %1613  ;;  %vm1725_vm4 = vweird.f32 %v4204_v58  ;;  %v2105_v17 = vld.sshfl [vmem:[#allocation1 + $0x30] sm:$0xff pattern:$0x75316420] }
 0x4d2   : > { %v1718_v1 = vsel %vm1715_vm3, %v1717_v50, %v1713_v59  ;;  %v1575_v38 = vsub.f32 %v4833_v8, %v1557_v7  ;;  %4207 = vrcp.f32 %v1614_v4  ;;  %vm1726_vm6 = vmor %vm1724_vm5, %vm1725_vm4  ;;  %v1702_v59 = vand.u32 2147483648, %v1614_v4  ;;  %2112 = vst [vmem:[#allocation1 + $0x30] ss:$2 sm:$0xff] %v4497_v35 }
 0x4d3   : > { %v1739_v11 = vmul.f32 %v4886_v60, %v1718_v1  ;;  %v1721_v47 = vsub.f32 1.0, %v1720_v3  ;;  %v1728_v60 = vand.u32 2147483647, %v1620_v16  ;;  %vm1696_vm9 = vweird.f32 %v1614_v4  ;;  %2113 = vst [vmem:[#allocation1 + $0x31] ss:$2 sm:$0xff] %v4505_v37 }
 0x4d4   : > { %v4977_v30 = vpop.eup %4205  ;;  %v1585_v34 = vmul.f32 1.442695, %v1575_v38  ;;  %v2114_v38 = vld.sshfl [vmem:[#allocation1] sm:$0xff pattern:$0x75316420] }
 0x4d5   : > { %3943 = vmatmul.msk.f32.vlgmr.msra.gmra.mxu3 %vm820_vm2, %v1739_v11  ;;  %v1597_v8 = vsel %vm820_vm2, %v4977_v30, 0.0  ;;  %v1722_v22 = vmul.f32 %v4204_v58, %v1721_v47  ;;  %vm1729_vm7 = vcmp.eq.f32.partialorder %v1728_v60, 8.507059e+37  ;;  %2180 = vst [vmem:[#allocation1] ss:$2 sm:$0xff] %v4464_v25  ;;  %v1703_v11 = vor.u32 1.1754944e-38, %v1702_v59 }
 0x4d6   : > { %4209 = vpow2.f32 %v1585_v34  ;;  %1598 = vadd.xlane.f32.xlu1 %v1597_v8  ;;  %2182 = vst [vmem:[#allocation1 + $0x1] ss:$2 sm:$0xff] %v4468_v26  ;;  %v2115_v60 = vld.sshfl [vmem:[#allocation1 + $0x10] sm:$0xff pattern:$0x75316420] }
 0x4d7   : > { %v1723_v24 = vadd.f32 %v4204_v58, %v1722_v22  ;;  %2184 = vst [vmem:[#allocation1 + $0x10] ss:$2 sm:$0xff] %v4475_v28 }
 0x4d8   : > { %v4208_v27 = vpop.eup %4207  ;;  %2186 = vst [vmem:[#allocation1 + $0x11] ss:$2 sm:$0xff] %v4479_v29 }
 0x4d9   : > { %v1692_v61 = vmul.f32 %v4208_v27, %v1614_v4  ;;  %v1560_v41 = vpop.xlane.xlu0 %1559  ;;  %v1727_v43 = vsel %vm1726_vm6, %v4204_v58, %v1723_v24  ;;  %v2104_v58 = vld.sshfl [vmem:[#allocation1 + $0x20] sm:$0xff pattern:$0x75316420]  ;;  %vm1697_vm8 = vweird.f32 %v4208_v27 }
 0x4da   : > { %v1576_v48 = vsub.f32 %v4835_v12, %v1560_v41  ;;  %v1732_v49 = vsel %vm1729_vm7, %v1731_v55, %v1727_v43  ;;  %v1700_v12 = vand.u32 2147483647, %v1614_v4  ;;  %2110 = vst [vmem:[#allocation1 + $0x20] ss:$2 sm:$0xff] %v4487_v31  ;;  %vm1698_vm10 = vmor %vm1696_vm9, %vm1697_vm8 }
 0x4db   : > { %v1693_v57 = vsub.f32 1.0, %v1692_v61  ;;  %v1740_v16 = vmul.f32 %v4891_v5, %v1732_v49  ;;  %2111 = vst [vmem:[#allocation1 + $0x21] ss:$2 sm:$0xff] %v4494_v33 }
 0x4dc   : > { %v4986_v50 = vpop.eup %4209  ;;  %v1587_v7 = vmul.f32 1.442695, %v1576_v48  ;;  %vm1701_vm11 = vcmp.eq.f32.partialorder %v1700_v12, 8.507059e+37 }
 0x4dd   : > { %v1603_v1 = vsel %vm820_vm2, %v4986_v50, 0.0  ;;  %v1694_v3 = vmul.f32 %v4208_v27, %v1693_v57  ;;  %3944 = vmatmul.msk.f32.gmra.mxu3 %vm820_vm2, %v1740_v16 }
 0x4de   : > { %1604 = vadd.xlane.f32.xlu0 %v1603_v1  ;;  %4211 = vpow2.f32 %v1587_v7 }
 0x4df   : > { %v1695_v5 = vadd.f32 %v4208_v27, %v1694_v3 }
 0x4e1   : > { %v1699_v47 = vsel %vm1698_vm10, %v4208_v27, %v1695_v5 }
 0x4e2   : > { %v1704_v34 = vsel %vm1701_vm11, %v1703_v11, %v1699_v47 }
 0x4e3   : > { %v1738_v8 = vmul.f32 %v4897_v2, %v1704_v34  ;;  %v2116_v2 = vld.sshfl [vmem:[#allocation1 + $0x20] sm:$0xff pattern:$0x75316420] }
 0x4e4   : > { %v4999_v22 = vpop.eup %4211  ;;  %2188 = vst [vmem:[#allocation1 + $0x20] ss:$2 sm:$0xff] %v4444_v19 }
 0x4e5   : > { %3942 = vmatmul.msk.f32.gmra.mxu2 %vm820_vm2, %v1738_v8  ;;  %3978 = vmatmul.msk.f32.vlgmr.msrb.gmra.mxu3 %vm437_vm0, %v4949_v10  ;;  %v1606_v4 = vsel %vm820_vm2, %v4999_v22, 0.0  ;;  %2190 = vst [vmem:[#allocation1 + $0x21] ss:$2 sm:$0xff] %v4447_v20  ;;  %v2117_v10 = vld.sshfl [vmem:[#allocation1 + $0x30] sm:$0xff pattern:$0x75316420] }
 0x4e6   : > { %1607 = vadd.xlane.f32.xlu1 %v1606_v4  ;;  %2192 = vst [vmem:[#allocation1 + $0x30] ss:$2 sm:$0xff] %v4450_v21 }
 0x4e7   : > { %2194 = vst [vmem:[#allocation1 + $0x31] ss:$2 sm:$0xff] %v4457_v23 }
 0x4ed   : > { %3979 = vmatmul.msk.f32.gmra.mxu3 %vm437_vm0, %v4964_v53  ;;  %3966 = vmatmul.msk.f32.vlgmr.msrb.gmra.mxu2 %vm437_vm0, %v4909_v32 }
 0x4f5   : > { %3980 = vmatmul.msk.f32.gmra.mxu3 %vm437_vm0, %v2104_v58  ;;  %3967 = vmatmul.msk.f32.gmra.mxu2 %vm437_vm0, %v4914_v56 }
 0x4fd   : > { %3981 = vmatmul.msk.f32.gmra.mxu3 %vm437_vm0, %v2105_v17  ;;  %3968 = vmatmul.msk.f32.gmra.mxu2 %vm437_vm0, %v4940_v6 }
 0x505   : > { %3982 = vmatmul.msk.f32.gmra.mxu3 %vm437_vm0, %v2114_v38  ;;  %3969 = vmatmul.msk.f32.gmra.mxu2 %vm437_vm0, %v4962_v54 }
 0x50d   : > { %3983 = vmatmul.msk.f32.gmra.mxu3 %vm437_vm0, %v2115_v60  ;;  %3970 = vmatmul.msk.f32.gmra.mxu2 %vm437_vm0, %v4923_v62 }
 0x515   : > { %3984 = vmatmul.msk.f32.gmra.mxu3 %vm437_vm0, %v2116_v2  ;;  %3971 = vmatmul.msk.f32.gmra.mxu2 %vm437_vm0, %v4945_v15  ;;  %v1129_v15 = vld [vmem:[%s5718_s4] sm:$0xff] }
 0x516   : > { %1963 = vmatpush.msrb.mxu1 %v1129_v15 }
 0x51d   : > { %3985 = vmatmul.msk.f32.gmra.mxu3 %vm437_vm0, %v2117_v10  ;;  %3972 = vmatmul.msk.f32.gmra.mxu2 %vm437_vm0, %v4974_v13 }
 0x525   : > { %3973 = vmatmul.msk.f32.gmra.mxu2 %vm437_vm0, %v2024_v44 }
 0x539   : > { %v1602_v32 = vpop.xlane.xlu2 %1601 }
 0x53a   : > { %4213 = vrcp.f32 %v1602_v32  ;;  %v1646_v3 = vand.u32 2147483648, %v1602_v32  ;;  %vm1640_vm4 = vweird.f32 %v1602_v32  ;;  %v1644_v11 = vand.u32 2147483647, %v1602_v32 }
 0x53c   : > { %v1647_v8 = vor.u32 1.1754944e-38, %v1646_v3  ;;  %vm1645_vm9 = vcmp.eq.f32.partialorder %v1644_v11, 8.507059e+37 }
 0x540   : > { %v4214_v6 = vpop.eup %4213 }
 0x541   : > { %v1636_v54 = vmul.f32 %v4214_v6, %v1602_v32  ;;  %vm1641_vm3 = vweird.f32 %v4214_v6 }
 0x542   : > { %vm1642_vm6 = vmor %vm1640_vm4, %vm1641_vm3 }
 0x543   : > { %v1637_v27 = vsub.f32 1.0, %v1636_v54 }
 0x545   : > { %v1638_v43 = vmul.f32 %v4214_v6, %v1637_v27 }
 0x547   : > { %v1639_v58 = vadd.f32 %v4214_v6, %v1638_v43 }
 0x548   : > { %v5043_v10 = vpop.f32.mrf.mxu2 }
 0x549   : > { %v1599_v56 = vpop.xlane.xlu1 %1598  ;;  %v1643_v17 = vsel %vm1642_vm6, %v4214_v6, %v1639_v58 }
 0x54a   : > { %4215 = vrcp.f32 %v1599_v56  ;;  %v1632_v13 = vand.u32 2147483648, %v1599_v56  ;;  %v1630_v41 = vand.u32 2147483647, %v1599_v56  ;;  %vm1626_vm13 = vweird.f32 %v1599_v56 }
 0x54b   : > { %v1648_v32 = vsel %vm1645_vm9, %v1647_v8, %v1643_v17 }
 0x54c   : > { %v1633_v49 = vor.u32 1.1754944e-38, %v1632_v13  ;;  %vm1631_vm15 = vcmp.eq.f32.partialorder %v1630_v41, 8.507059e+37  ;;  %v1734_v6 = vmul.f32 %v4935_v14, %v1648_v32 }
 0x550   : > { %v4216_v53 = vpop.eup %4215 }
 0x551   : > { %v1622_v62 = vmul.f32 %v4216_v53, %v1599_v56  ;;  %v1605_v24 = vpop.xlane.xlu0 %1604  ;;  %vm1627_vm12 = vweird.f32 %v4216_v53 }
 0x552   : > { %4217 = vrcp.f32 %v1605_v24  ;;  %vm1628_vm14 = vmor %vm1626_vm13, %vm1627_vm12  ;;  %v1660_v38 = vand.u32 2147483648, %v1605_v24  ;;  %v1658_v34 = vand.u32 2147483647, %v1605_v24  ;;  %vm1654_vm7 = vweird.f32 %v1605_v24 }
 0x553   : > { %v1623_v55 = vsub.f32 1.0, %v1622_v62 }
 0x554   : > { %v1661_v60 = vor.u32 1.1754944e-38, %v1660_v38  ;;  %vm1659_vm10 = vcmp.eq.f32.partialorder %v1658_v34, 8.507059e+37 }
 0x555   : > { %v1624_v61 = vmul.f32 %v4216_v53, %v1623_v55 }
 0x557   : > { %v1625_v44 = vadd.f32 %v4216_v53, %v1624_v61 }
 0x558   : > { %v4218_v48 = vpop.eup %4217  ;;  %v5039_v57 = vpop.f32.mrf.mxu3 }
 0x559   : > { %v1629_v59 = vsel %vm1628_vm14, %v4216_v53, %v1625_v44  ;;  %v1650_v16 = vmul.f32 %v4218_v48, %v1605_v24  ;;  %v1608_v1 = vpop.xlane.xlu1 %1607  ;;  %vm1655_vm5 = vweird.f32 %v4218_v48 }
 0x55a   : > { %v1634_v7 = vsel %vm1631_vm15, %v1633_v49, %v1629_v59  ;;  %4219 = vrcp.f32 %v1608_v1  ;;  %vm1656_vm8 = vmor %vm1654_vm7, %vm1655_vm5  ;;  %v1674_v27 = vand.u32 2147483648, %v1608_v1  ;;  %v1672_v55 = vand.u32 2147483647, %v1608_v1 }
 0x55b   : > { %v1651_v12 = vsub.f32 1.0, %v1650_v16  ;;  %v1733_v5 = vmul.f32 %v4977_v30, %v1634_v7  ;;  %vm1668_vm12 = vweird.f32 %v1608_v1 }
 0x55c   : > { %v1675_v61 = vor.u32 1.1754944e-38, %v1674_v27  ;;  %vm1673_vm14 = vcmp.eq.f32.partialorder %v1672_v55, 8.507059e+37 }
 0x55d   : > { %v1652_v47 = vmul.f32 %v4218_v48, %v1651_v12  ;;  %3937 = vmatmul.msk.f32.vlgmr.msrb.gmra.mxu0 %vm820_vm2, %v1733_v5 }
 0x55f   : > { %v1653_v4 = vadd.f32 %v4218_v48, %v1652_v47 }
 0x560   : > { %v4220_v2 = vpop.eup %4219  ;;  %v5045_v30 = vpop.f32.mrf.mxu3 }
 0x561   : > { %v1657_v56 = vsel %vm1656_vm8, %v4218_v48, %v1653_v4  ;;  %v1664_v53 = vmul.f32 %v4220_v2, %v1608_v1  ;;  %vm1669_vm11 = vweird.f32 %v4220_v2 }
 0x562   : > { %v1662_v54 = vsel %vm1659_vm10, %v1661_v60, %v1657_v56  ;;  %vm1670_vm13 = vmor %vm1668_vm12, %vm1669_vm11 }
 0x563   : > { %v1735_v62 = vmul.f32 %v4986_v50, %v1662_v54  ;;  %v1665_v15 = vsub.f32 1.0, %v1664_v53 }
 0x565   : > { %3939 = vmatmul.msk.f32.vlgmr.msra.gmra.mxu1 %vm820_vm2, %v1735_v62  ;;  %v1666_v24 = vmul.f32 %v4220_v2, %v1665_v15  ;;  %3938 = vmatmul.msk.f32.gmra.mxu0 %vm820_vm2, %v1734_v6 }
 0x567   : > { %v1667_v13 = vadd.f32 %v4220_v2, %v1666_v24 }
 0x568   : > { %v1825_v41 = vpop.f32.mrf.mxu2  ;;  %v2151_v43 = vpop.f32.mrf.mxu3 }
 0x569   : > { %v1671_v44 = vsel %vm1670_vm13, %v4220_v2, %v1667_v13 }
 0x56a   : > { %v1676_v50 = vsel %vm1673_vm14, %v1675_v61, %v1671_v44  ;;  %v3988_v44 = vld [vmem:[%s5717_s3 + $0x50] sm:$0xff] }
 0x56b   : > { %v1736_v48 = vmul.f32 %v4999_v22, %v1676_v50  ;;  %v3987_v50 = vld [vmem:[%s5717_s3 + $0x48] sm:$0xff] }
 0x56d   : > { %3940 = vmatmul.msk.f32.gmra.mxu1 %vm820_vm2, %v1736_v48  ;;  %v3986_v48 = vld [vmem:[%s5717_s3 + $0x40] sm:$0xff] }
 0x570   : > { %v2154_v14 = vpop.f32.mrf.mxu3  ;;  %v2058_v49 = vpop.f32.mrf.mxu2 }
 0x571   : > { %3998 = vmatpush.xpose.msk.msra.mxu1 %vm679_vm1, %v2154_v14  ;;  %v2195_v14 = vld.sshfl [vmem:[#allocation1] sm:$0xff pattern:$0x75316420] }
 0x572   : > { %2199 = vst [vmem:[#allocation1] ss:$2 sm:$0xff] %v4501_v36 }
 0x573   : > { %2200 = vst [vmem:[#allocation1 + $0x1] ss:$2 sm:$0xff] %v4509_v39 }
 0x575   : > { %3954 = vmatmul.msk.f32.vlgmr.msrb.gmra.mxu1 %vm679_vm1, %v4788_v51 }
 0x576   : > { %3999 = vmatpush.xpose.msk.msra.mxu1 %vm679_vm1, %v2151_v43  ;;  %v3989_v43 = vld [vmem:[%s5717_s3 + $0x58] sm:$0xff] }
 0x578   : > { %v2157_v59 = vpop.f32.mrf.mxu3  ;;  %v2061_v16 = vpop.f32.mrf.mxu2 }
 0x57d   : > { %3955 = vmatmul.msk.f32.gmra.mxu1 %vm679_vm1, %v4798_v45 }
 0x580   : > { %v2160_v7 = vpop.f32.mrf.mxu3  ;;  %v2064_v22 = vpop.f32.mrf.mxu2 }
 0x581   : > { %4002 = vmatpush.xpose.msk.msra.mxu2 %vm679_vm1, %v2160_v7 }
 0x585   : > { %3956 = vmatmul.msk.f32.gmra.mxu1 %vm679_vm1, %v4790_v52  ;;  %4003 = vmatpush.xpose.msk.msra.mxu2 %vm679_vm1, %v2157_v59  ;;  %v2197_v59 = vld.sshfl [vmem:[#allocation1 + $0x20] sm:$0xff pattern:$0x75316420] }
 0x586   : > { %2203 = vst [vmem:[#allocation1 + $0x20] ss:$2 sm:$0xff] %v4487_v31 }
 0x587   : > { %2204 = vst [vmem:[#allocation1 + $0x21] ss:$2 sm:$0xff] %v4494_v33 }
 0x588   : > { %4004 = vmatmul.msk.f32.vlgmr.msra.gmra.mxu2 %vm679_vm1, %v2064_v22  ;;  %v2163_v1 = vpop.f32.mrf.mxu3  ;;  %v2067_v51 = vpop.f32.mrf.mxu2 }
 0x58d   : > { %3957 = vmatmul.msk.f32.gmra.mxu1 %vm679_vm1, %v4796_v0  ;;  %v3945_v0 = vld [vmem:[%s5718_s4 + $0x8] sm:$0xff] }
 0x58e   : > { %1898 = vmatpush.msra.mxu0 %v3945_v0 }
 0x590   : > { %v2166_v58 = vpop.f32.mrf.mxu3  ;;  %4005 = vmatmul.msk.f32.gmra.mxu2 %vm679_vm1, %v2067_v51  ;;  %v2070_v52 = vpop.f32.mrf.mxu2  ;;  %2239 = vmatpush.msrb.mxu0 %v3989_v43 }
 0x591   : > { %4006 = vmatpush.xpose.msk.msra.mxu3 %vm679_vm1, %v2166_v58 }
 0x592   : > { %2240 = vmatpush.msrb.mxu0 %v3988_v44 }
 0x594   : > { %2241 = vmatpush.msrb.mxu0 %v3987_v50 }
 0x595   : > { %3958 = vmatmul.msk.f32.gmra.mxu1 %vm679_vm1, %v4905_v9  ;;  %4007 = vmatpush.xpose.msk.msra.mxu3 %vm679_vm1, %v2163_v1 }
 0x596   : > { %2242 = vmatpush.msrb.mxu0 %v3986_v48 }
 0x598   : > { %v2169_v45 = vpop.f32.mrf.mxu3  ;;  %4008 = vmatmul.msk.f32.vlgmr.msra.gmra.mxu3 %vm679_vm1, %v2070_v52  ;;  %v2073_v3 = vpop.f32.mrf.mxu2 }
 0x59d   : > { %3959 = vmatmul.msk.f32.gmra.mxu1 %vm679_vm1, %v4907_v46 }
 0x5a0   : > { %v2172_v12 = vpop.f32.mrf.mxu3  ;;  %4009 = vmatmul.msk.f32.gmra.mxu3 %vm679_vm1, %v2073_v3  ;;  %v2076_v9 = vpop.f32.mrf.mxu2 }
 0x5a1   : > { %4010 = vmatpush.xpose.msk.msrb.mxu1 %vm679_vm1, %v2172_v12 }
 0x5a5   : > { %3960 = vmatmul.msk.f32.gmra.mxu1 %vm679_vm1, %v4824_v63 }
 0x5a6   : > { %4011 = vmatpush.xpose.msk.msrb.mxu1 %vm679_vm1, %v2169_v45  ;;  %v2207_v45 = vld.sshfl [vmem:[#allocation1] sm:$0xff pattern:$0x75316420] }
 0x5a7   : > { %2796 = vst [vmem:[#allocation1] ss:$2 sm:$0xff] %v4464_v25 }
 0x5a8   : > { %v2079_v46 = vpop.f32.mrf.mxu2  ;;  %2798 = vst [vmem:[#allocation1 + $0x1] ss:$2 sm:$0xff] %v4468_v26 }
 0x5ad   : > { %3961 = vmatmul.msk.f32.gmra.mxu1 %vm679_vm1, %v4827_v18 }
 0x5af   : > { %v5179_v12 = vld.sshfl [vmem:[#allocation1] sm:$0xff pattern:$0x75316420] }
 0x5b0   : > { %2815 = vst [vmem:[#allocation1] ss:$2 sm:$0xff] %v4501_v36 }
 0x5b1   : > { %2816 = vst [vmem:[#allocation1 + $0x1] ss:$2 sm:$0xff] %v4509_v39 }
 0x5b5   : > { %4000 = vmatmul.msk.f32.vlgmr.msra.gmra.mxu1 %vm679_vm1, %v2058_v49  ;;  %v2196_v49 = vld.sshfl [vmem:[#allocation1 + $0x10] sm:$0xff pattern:$0x75316420] }
 0x5b6   : > { %2201 = vst [vmem:[#allocation1 + $0x10] ss:$2 sm:$0xff] %v4512_v40 }
 0x5b7   : > { %2202 = vst [vmem:[#allocation1 + $0x11] ss:$2 sm:$0xff] %v4518_v42 }
 0x5bd   : > { %4001 = vmatmul.msk.f32.gmra.mxu1 %vm679_vm1, %v2061_v16  ;;  %v2198_v16 = vld.sshfl [vmem:[#allocation1 + $0x30] sm:$0xff pattern:$0x75316420] }
 0x5be   : > { %2205 = vst [vmem:[#allocation1 + $0x30] ss:$2 sm:$0xff] %v4497_v35  ;;  %v2208_v0 = vld.sshfl [vmem:[#allocation1 + $0x10] sm:$0xff pattern:$0x75316420] }
 0x5bf   : > { %2206 = vst [vmem:[#allocation1 + $0x31] ss:$2 sm:$0xff] %v4505_v37 }
 0x5c0   : > { %2800 = vst [vmem:[#allocation1 + $0x10] ss:$2 sm:$0xff] %v4475_v28 }
 0x5c1   : > { %2802 = vst [vmem:[#allocation1 + $0x11] ss:$2 sm:$0xff] %v4479_v29 }
 0x5c5   : > { %4012 = vmatmul.msk.f32.vlgmr.msrb.gmra.mxu1 %vm679_vm1, %v2076_v9  ;;  %v2209_v9 = vld.sshfl [vmem:[#allocation1 + $0x20] sm:$0xff pattern:$0x75316420] }
 0x5c6   : > { %2804 = vst [vmem:[#allocation1 + $0x20] ss:$2 sm:$0xff] %v4444_v19 }
 0x5c7   : > { %2806 = vst [vmem:[#allocation1 + $0x21] ss:$2 sm:$0xff] %v4447_v20 }
 0x5cd   : > { %4013 = vmatmul.msk.f32.gmra.mxu1 %vm679_vm1, %v2079_v46 }
 0x5da   : > { %v1764_v63 = vpop.f32.mrf.mxu0 }
 0x5db   : > { %3946 = vmatmul.msk.f32.vlgmr.msra.gmra.mxu0 %vm679_vm1, %v1764_v63  ;;  %v5191_v63 = vld.sshfl [vmem:[#allocation1 + $0x10] sm:$0xff pattern:$0x75316420] }
 0x5dc   : > { %2817 = vst [vmem:[#allocation1 + $0x10] ss:$2 sm:$0xff] %v4512_v40 }
 0x5dd   : > { %2818 = vst [vmem:[#allocation1 + $0x11] ss:$2 sm:$0xff] %v4518_v42 }
 0x5e2   : > { %v1793_v38 = vpop.f32.mrf.mxu1  ;;  %v1767_v18 = vpop.f32.mrf.mxu0 }
 0x5e3   : > { %3947 = vmatmul.msk.f32.gmra.mxu0 %vm679_vm1, %v1767_v18  ;;  %v5195_v18 = vld.sshfl [vmem:[#allocation1 + $0x20] sm:$0xff pattern:$0x75316420] }
 0x5e4   : > { %2819 = vst [vmem:[#allocation1 + $0x20] ss:$2 sm:$0xff] %v4487_v31 }
 0x5e5   : > { %2820 = vst [vmem:[#allocation1 + $0x21] ss:$2 sm:$0xff] %v4494_v33 }
 0x5ea   : > { %v1796_v5 = vpop.f32.mrf.mxu1 }
 0x5eb   : > { %3948 = vmatmul.msk.f32.gmra.mxu0 %vm679_vm1, %v1793_v38  ;;  %v2210_v38 = vld.sshfl [vmem:[#allocation1 + $0x30] sm:$0xff pattern:$0x75316420] }
 0x5ec   : > { %2808 = vst [vmem:[#allocation1 + $0x30] ss:$2 sm:$0xff] %v4450_v21 }
 0x5ed   : > { %2810 = vst [vmem:[#allocation1 + $0x31] ss:$2 sm:$0xff] %v4457_v23 }
 0x5f2   : > { %v5091_v11 = vpop.f32.mrf.mxu1 }
 0x5f3   : > { %3949 = vmatmul.msk.f32.gmra.mxu0 %vm679_vm1, %v1796_v5 }
 0x5fa   : > { %v5094_v47 = vpop.f32.mrf.mxu1 }
 0x5fb   : > { %3950 = vmatmul.msk.f32.gmra.mxu0 %vm679_vm1, %v5043_v10 }
 0x602   : > { %v5098_v34 = vpop.f32.mrf.mxu1 }
 0x603   : > { %3951 = vmatmul.msk.f32.gmra.mxu0 %vm679_vm1, %v1825_v41 }
 0x60a   : > { %v5101_v17 = vpop.f32.mrf.mxu1 }
 0x60b   : > { %3952 = vmatmul.msk.f32.gmra.mxu0 %vm679_vm1, %v5039_v57  ;;  %v2332_v8 = vpop.f32.mrf.mxu2 }
 0x60c   : > { %v2414_v4 = vsel %vm820_vm2, %v2332_v8, -inf }
 0x60d   : > { %2415 = vmax.xlane.f32.xlu1 %v2414_v4 }
 0x612   : > { %v5106_v60 = vpop.f32.mrf.mxu1 }
 0x613   : > { %3953 = vmatmul.msk.f32.gmra.mxu0 %vm679_vm1, %v5045_v30  ;;  %v5120_v54 = vpop.f32.mrf.mxu2 }
 0x614   : > { %v2417_v53 = vsel %vm820_vm2, %v5120_v54, -inf }
 0x61a   : > { %v5110_v2 = vpop.f32.mrf.mxu1 }
 0x61b   : > { %5724 = vst [vmem:[#allocation4_spill] sm:$0xff] %v5110_v2  ;;  %v5128_v15 = vpop.f32.mrf.mxu3  ;;  %3990 = vmatmul.msk.f32.vlgmr.msrb.gmra.mxu0 %vm437_vm0, %v2195_v14 }
 0x61c   : > { %v2420_v6 = vsel %vm820_vm2, %v5128_v15, -inf }
 0x622   : > { %v5112_v10 = vpop.f32.mrf.mxu1 }
 0x623   : > { %5725 = vst [vmem:[#allocation5_spill] sm:$0xff] %v5112_v10  ;;  %v5136_v55 = vpop.f32.mrf.mxu3  ;;  %3991 = vmatmul.msk.f32.gmra.mxu0 %vm437_vm0, %v2196_v49 }
 0x624   : > { %v2423_v13 = vsel %vm820_vm2, %v5136_v55, -inf }
 0x62a   : > { %v5114_v56 = vpop.f32.mrf.mxu1 }
 0x62b   : > { %5726 = vst [vmem:[#allocation6_spill] sm:$0xff] %v5114_v56  ;;  %3992 = vmatmul.msk.f32.gmra.mxu0 %vm437_vm0, %v2197_v59 }
 0x632   : > { %v5116_v32 = vpop.f32.mrf.mxu1 }
 0x633   : > { %v2408_v57 = vsel %vm820_vm2, %v5116_v32, -inf  ;;  %3993 = vmatmul.msk.f32.gmra.mxu0 %vm437_vm0, %v2198_v16 }
 0x634   : > { %2409 = vmax.xlane.f32.xlu2 %v2408_v57 }
 0x63a   : > { %v5124_v62 = vpop.f32.mrf.mxu1 }
 0x63b   : > { %v2411_v30 = vsel %vm820_vm2, %v5124_v62, -inf  ;;  %3994 = vmatmul.msk.f32.gmra.mxu0 %vm437_vm0, %v2207_v45 }
 0x63c   : > { %2412 = vmax.xlane.f32.xlu0 %v2411_v30  ;;  %2418 = vmax.xlane.f32.xlu2 %v2417_v53 }
 0x642   : > { %v5132_v27 = vpop.f32.mrf.mxu1 }
 0x643   : > { %v2426_v24 = vsel %vm820_vm2, %v5132_v27, -inf  ;;  %3995 = vmatmul.msk.f32.gmra.mxu0 %vm437_vm0, %v2208_v0 }
 0x644   : > { %2427 = vmax.xlane.f32.xlu0 %v2426_v24  ;;  %2421 = vmax.xlane.f32.xlu2 %v2420_v6 }
 0x64a   : > { %v5140_v61 = vpop.f32.mrf.mxu1 }
 0x64b   : > { %v2429_v41 = vsel %vm820_vm2, %v5140_v61, -inf  ;;  %3996 = vmatmul.msk.f32.gmra.mxu0 %vm437_vm0, %v2209_v9 }
 0x64c   : > { %2424 = vmax.xlane.f32.xlu0 %v2423_v13  ;;  %2430 = vmax.xlane.f32.xlu1 %v2429_v41  ;;  %v5207_v13 = vld.sshfl [vmem:[#allocation1 + $0x30] sm:$0xff pattern:$0x75316420] }
 0x64d   : > { %2821 = vst [vmem:[#allocation1 + $0x30] ss:$2 sm:$0xff] %v4497_v35 }
 0x64e   : > { %2822 = vst [vmem:[#allocation1 + $0x31] ss:$2 sm:$0xff] %v4505_v37 }
 0x653   : > { %3997 = vmatmul.msk.f32.gmra.mxu0 %vm437_vm0, %v2210_v38 }
 0x658   : > { %v5170_v58 = vpop.f32.mrf.mxu0 }
 0x660   : > { %v5177_v3 = vpop.f32.mrf.mxu0 }
 0x668   : > { %v5188_v46 = vpop.f32.mrf.mxu0 }
 0x670   : > { %v5202_v4 = vpop.f32.mrf.mxu0 }
 0x678   : > { %v5213_v44 = vpop.f32.mrf.mxu0 }
 0x680   : > { %v2416_v7 = vpop.xlane.xlu1 %2415 }
 0x681   : > { %v2434_v22 = vsub.f32 %v2332_v8, %v2416_v7 }
 0x683   : > { %v2444_v1 = vmul.f32 1.442695, %v2434_v22 }
 0x685   : > { %4221 = vpow2.f32 %v2444_v1 }
 0x68b   : > { %v5168_v51 = vpop.eup %4221 }
 0x68c   : > { %v2462_v52 = vsel %vm820_vm2, %v5168_v51, 0.0 }
 0x68d   : > { %2463 = vadd.xlane.f32.xlu0 %v2462_v52  ;;  %v5227_v52 = vpop.f32.mrf.mxu0 }
 0x68e   : > { %5727 = vst [vmem:[#allocation7_spill] sm:$0xff] %v5227_v52 }
 0x6a7   : > { %v2410_v5 = vpop.xlane.xlu2 %2409 }
 0x6a8   : > { %v2432_v8 = vsub.f32 %v5116_v32, %v2410_v5 }
 0x6aa   : > { %v2440_v57 = vmul.f32 1.442695, %v2432_v8 }
 0x6ac   : > { %4223 = vpow2.f32 %v2440_v57 }
 0x6af   : > { %v2413_v53 = vpop.xlane.xlu0 %2412  ;;  %v2419_v30 = vpop.xlane.xlu2 %2418 }
 0x6b0   : > { %v2433_v6 = vsub.f32 %v5124_v62, %v2413_v53  ;;  %v2435_v24 = vsub.f32 %v5120_v54, %v2419_v30  ;;  %v5239_v30 = vpop.f32.mrf.mxu0 }
 0x6b1   : > { %5728 = vst [vmem:[#allocation8_spill] sm:$0xff] %v5239_v30 }
 0x6b2   : > { %v5210_v41 = vpop.eup %4223  ;;  %v2442_v32 = vmul.f32 1.442695, %v2433_v6  ;;  %v2446_v43 = vmul.f32 1.442695, %v2435_v24 }
 0x6b3   : > { %v2456_v50 = vsel %vm820_vm2, %v5210_v41, 0.0 }
 0x6b4   : > { %4225 = vpow2.f32 %v2442_v32  ;;  %2457 = vadd.xlane.f32.xlu1 %v2456_v50 }
 0x6b5   : > { %4227 = vpow2.f32 %v2446_v43 }
 0x6b7   : > { %v2428_v62 = vpop.xlane.xlu0 %2427  ;;  %v2422_v54 = vpop.xlane.xlu2 %2421 }
 0x6b8   : > { %v2438_v48 = vsub.f32 %v5132_v27, %v2428_v62  ;;  %v2436_v14 = vsub.f32 %v5128_v15, %v2422_v54  ;;  %v5249_v32 = vpop.f32.mrf.mxu0 }
 0x6b9   : > { %5729 = vst [vmem:[#allocation9_spill] sm:$0xff] %v5249_v32 }
 0x6ba   : > { %v5219_v49 = vpop.eup %4225  ;;  %v2452_v59 = vmul.f32 1.442695, %v2438_v48  ;;  %v2448_v16 = vmul.f32 1.442695, %v2436_v14 }
 0x6bb   : > { %v5221_v7 = vpop.eup %4227  ;;  %v2459_v22 = vsel %vm820_vm2, %v5219_v49, 0.0 }
 0x6bc   : > { %4229 = vpow2.f32 %v2452_v59  ;;  %2460 = vadd.xlane.f32.xlu2 %v2459_v22  ;;  %v2465_v1 = vsel %vm820_vm2, %v5221_v7, 0.0 }
 0x6bd   : > { %4231 = vpow2.f32 %v2448_v16  ;;  %2466 = vadd.xlane.f32.xlu1 %v2465_v1 }
 0x6bf   : > { %v2425_v27 = vpop.xlane.xlu0 %2424  ;;  %v2431_v15 = vpop.xlane.xlu1 %2430 }
 0x6c0   : > { %v2437_v45 = vsub.f32 %v5136_v55, %v2425_v27  ;;  %v2439_v0 = vsub.f32 %v5140_v61, %v2431_v15  ;;  %v2244_v43 = vpop.f32.mrf.mxu0 }
 0x6c2   : > { %v5231_v9 = vpop.eup %4229  ;;  %v2450_v38 = vmul.f32 1.442695, %v2437_v45  ;;  %v2454_v5 = vmul.f32 1.442695, %v2439_v0 }
 0x6c3   : > { %v5233_v8 = vpop.eup %4231  ;;  %v2474_v57 = vsel %vm820_vm2, %v5231_v9, 0.0 }
 0x6c4   : > { %4233 = vpow2.f32 %v2450_v38  ;;  %2475 = vadd.xlane.f32.xlu2 %v2474_v57  ;;  %v2468_v53 = vsel %vm820_vm2, %v5233_v8, 0.0 }
 0x6c5   : > { %4235 = vpow2.f32 %v2454_v5  ;;  %2469 = vadd.xlane.f32.xlu1 %v2468_v53 }
 0x6c8   : > { %v2247_v50 = vpop.f32.mrf.mxu0 }
 0x6c9   : > { %2620 = vmatpush.msrb.mxu2 %v2247_v50 }
 0x6ca   : > { %v5241_v55 = vpop.eup %4233 }
 0x6cb   : > { %v5243_v61 = vpop.eup %4235  ;;  %v2471_v6 = vsel %vm820_vm2, %v5241_v55, 0.0  ;;  %2621 = vmatpush.msrb.mxu2 %v2244_v43 }
 0x6cc   : > { %v2477_v24 = vsel %vm820_vm2, %v5243_v61, 0.0  ;;  %2472 = vadd.xlane.f32.xlu2 %v2471_v6 }
 0x6cd   : > { %2478 = vadd.xlane.f32.xlu0 %v2477_v24 }
 0x6d0   : > { %v2250_v62 = vpop.f32.mrf.mxu0 }
 0x6d8   : > { %v2253_v54 = vpop.f32.mrf.mxu0 }
 0x6d9   : > { %2649 = vmatpush.msrb.mxu3 %v2253_v54 }
 0x6db   : > { %2650 = vmatpush.msrb.mxu3 %v2250_v62 }
 0x6e0   : > { %v2256_v45 = vpop.f32.mrf.mxu0 }
 0x6e8   : > { %v2259_v53 = vpop.f32.mrf.mxu0 }
 0x6e9   : > { %2678 = vmatpush.msra.mxu1 %v2259_v53 }
 0x6eb   : > { %2679 = vmatpush.msra.mxu1 %v2256_v45 }
 0x6f0   : > { %v2262_v6 = vpop.f32.mrf.mxu0 }
 0x6f8   : > { %v2265_v43 = vpop.f32.mrf.mxu0 }
 0x6f9   : > { %2707 = vmatpush.msra.mxu2 %v2265_v43 }
 0x6fb   : > { %2708 = vmatpush.msra.mxu2 %v2262_v6  ;;  %v5268_v6 = vld.sshfl [vmem:[#allocation1] sm:$0xff pattern:$0x75316420] }
 0x6fc   : > { %2889 = vst [vmem:[#allocation1] ss:$2 sm:$0xff] %v4464_v25 }
 0x6fd   : > { %2891 = vst [vmem:[#allocation1 + $0x1] ss:$2 sm:$0xff] %v4468_v26 }
 0x700   : > { %v2464_v48 = vpop.xlane.xlu0 %2463 }
 0x701   : > { %4237 = vrcp.f32 %v2464_v48  ;;  %v2519_v22 = vand.u32 2147483648, %v2464_v48  ;;  %v2517_v27 = vand.u32 2147483647, %v2464_v48  ;;  %vm2513_vm3 = vweird.f32 %v2464_v48 }
 0x703   : > { %v2520_v0 = vor.u32 1.1754944e-38, %v2519_v22  ;;  %vm2518_vm5 = vcmp.eq.f32.partialorder %v2517_v27, 8.507059e+37 }
 0x707   : > { %v4238_v14 = vpop.eup %4237 }
 0x708   : > { %v2509_v59 = vmul.f32 %v4238_v14, %v2464_v48  ;;  %vm2514_vm15 = vweird.f32 %v4238_v14 }
 0x709   : > { %vm2515_vm4 = vmor %vm2513_vm3, %vm2514_vm15 }
 0x70a   : > { %v2510_v16 = vsub.f32 1.0, %v2509_v59 }
 0x70c   : > { %v2511_v1 = vmul.f32 %v4238_v14, %v2510_v16 }
 0x70e   : > { %v2512_v15 = vadd.f32 %v4238_v14, %v2511_v1 }
 0x710   : > { %v2516_v38 = vsel %vm2515_vm4, %v4238_v14, %v2512_v15 }
 0x711   : > { %v2521_v5 = vsel %vm2518_vm5, %v2520_v0, %v2516_v38 }
 0x712   : > { %v2594_v57 = vmul.f32 %v5168_v51, %v2521_v5 }
 0x714   : > { %4016 = vmatmul.msk.f32.vlgmr.msrb.gmra.mxu3 %vm820_vm2, %v2594_v57 }
 0x727   : > { %v2458_v24 = vpop.xlane.xlu1 %2457 }
 0x728   : > { %4239 = vrcp.f32 %v2458_v24  ;;  %v2491_v51 = vand.u32 2147483648, %v2458_v24  ;;  %v2489_v16 = vand.u32 2147483647, %v2458_v24  ;;  %vm2485_vm7 = vweird.f32 %v2458_v24 }
 0x72a   : > { %v2492_v27 = vor.u32 1.1754944e-38, %v2491_v51  ;;  %vm2490_vm9 = vcmp.eq.f32.partialorder %v2489_v16, 8.507059e+37 }
 0x72e   : > { %v4240_v50 = vpop.eup %4239 }
 0x72f   : > { %v2481_v62 = vmul.f32 %v4240_v50, %v2458_v24  ;;  %v2461_v54 = vpop.xlane.xlu2 %2460  ;;  %vm2486_vm6 = vweird.f32 %v4240_v50 }
 0x730   : > { %v5253_v48 = vpop.xlane.xlu1 %2466  ;;  %4241 = vrcp.f32 %v2461_v54  ;;  %vm2487_vm8 = vmor %vm2485_vm7, %vm2486_vm6  ;;  %v2503_v51 = vand.u32 2147483647, %v2461_v54  ;;  %v2505_v16 = vand.u32 2147483648, %v2461_v54  ;;  %vm2499_vm12 = vweird.f32 %v2461_v54 }
 0x731   : > { %v2482_v14 = vsub.f32 1.0, %v2481_v62  ;;  %4243 = vrcp.f32 %v5253_v48  ;;  %vm2527_vm11 = vweird.f32 %v5253_v48 }
 0x732   : > { %vm5301_vm15 = vcmp.eq.f32.partialorder %v2503_v51, 8.507059e+37 }
 0x733   : > { %v2483_v59 = vmul.f32 %v4240_v50, %v2482_v14 }
 0x735   : > { %v2484_v22 = vadd.f32 %v4240_v50, %v2483_v59 }
 0x736   : > { %v5256_v1 = vpop.eup %4241 }
 0x737   : > { %v5258_v15 = vpop.eup %4243  ;;  %v2488_v45 = vsel %vm2487_vm8, %v4240_v50, %v2484_v22  ;;  %v2495_v0 = vmul.f32 %v5256_v1, %v2461_v54  ;;  %v5261_v38 = vpop.xlane.xlu2 %2475  ;;  %v4046_v50 = vld [vmem:[%s5716_s2 + $0x78] sm:$0xff]  ;;  %vm2500_vm10 = vweird.f32 %v5256_v1  ;;  %v2533_v22 = vand.u32 2147483648, %v5253_v48  ;;  %v4043_v54 = vld [vmem:[%s5716_s2 + $0x60] sm:$0xff] }
 0x738   : > { %v2493_v5 = vsel %vm2490_vm9, %v2492_v27, %v2488_v45  ;;  %v2523_v57 = vmul.f32 %v5258_v15, %v5253_v48  ;;  %v5265_v53 = vpop.xlane.xlu1 %2469  ;;  %4245 = vrcp.f32 %v5261_v38  ;;  %v4044_v45 = vld [vmem:[%s5716_s2 + $0x68] sm:$0xff]  ;;  %vm2528_vm13 = vweird.f32 %v5258_v15  ;;  %vm5297_vm14 = vmor %vm2499_vm12, %vm2500_vm10 }
 0x739   : > { %v2592_v24 = vmul.f32 %v5210_v41, %v2493_v5  ;;  %v2496_v43 = vsub.f32 1.0, %v2495_v0  ;;  %4247 = vrcp.f32 %v5265_v53  ;;  %v4045_v41 = vld [vmem:[%s5716_s2 + $0x70] sm:$0xff]  ;;  %v2531_v5 = vand.u32 2147483647, %v5253_v48  ;;  %vm5329_vm3 = vmor %vm2527_vm11, %vm2528_vm13 }
 0x73a   : > { %v2524_v62 = vsub.f32 1.0, %v2523_v57  ;;  %v2534_v10 = vor.u32 1.1754944e-38, %v2533_v22  ;;  %v2573_v2 = vand.u32 2147483647, %v5261_v38  ;;  %v2575_v22 = vand.u32 2147483648, %v5261_v38 }
 0x73b   : > { %v2497_v14 = vmul.f32 %v5256_v1, %v2496_v43  ;;  %4014 = vmatmul.msk.f32.vlgmr.msrb.gmra.mxu2 %vm820_vm2, %v2592_v24  ;;  %vm2532_vm6 = vcmp.eq.f32.partialorder %v2531_v5, 8.507059e+37  ;;  %vm2569_vm7 = vweird.f32 %v5261_v38  ;;  %vm2541_vm8 = vweird.f32 %v5265_v53 }
 0x73c   : > { %v2525_v59 = vmul.f32 %v5258_v15, %v2524_v62  ;;  %2948 = vmatpush.msrb.mxu2 %v4046_v50  ;;  %vm2574_vm11 = vcmp.eq.f32.partialorder %v2573_v2, 8.507059e+37 }
 0x73d   : > { %v2498_v27 = vadd.f32 %v5256_v1, %v2497_v14 }
 0x73e   : > { %v5289_v0 = vpop.eup %4245  ;;  %2949 = vmatpush.msrb.mxu2 %v4045_v41  ;;  %v2526_v24 = vadd.f32 %v5258_v15, %v2525_v59  ;;  %v5312_v41 = vld.sshfl [vmem:[#allocation1 + $0x10] sm:$0xff pattern:$0x75316420]  ;;  %v2506_v59 = vor.u32 1.1754944e-38, %v2505_v16  ;;  %v4034_v16 = vld [vmem:[%s5715_s1 + $0x78] sm:$0xff] }
 0x73f   : > { %v5293_v57 = vpop.eup %4247  ;;  %v2565_v62 = vmul.f32 %v5289_v0, %v5261_v38  ;;  %v5307_v14 = vpop.xlane.xlu2 %2472  ;;  %v2502_v51 = vsel %vm5297_vm14, %v5256_v1, %v2498_v27  ;;  %2893 = vst [vmem:[#allocation1 + $0x10] ss:$2 sm:$0xff] %v4475_v28  ;;  %v2547_v1 = vand.u32 2147483648, %v5265_v53  ;;  %vm2570_vm4 = vweird.f32 %v5289_v0  ;;  %v5336_v27 = vld.sshfl [vmem:[#allocation1] sm:$0xff pattern:$0x75316420]  ;;  %2855 = vmatpush.msrb.mxu1 %v4034_v16 }
 0x740   : > { %v2537_v56 = vmul.f32 %v5293_v57, %v5265_v53  ;;  %v5316_v32 = vpop.xlane.xlu0 %2478  ;;  %4249 = vrcp.f32 %v5307_v14  ;;  %2950 = vmatpush.msrb.mxu2 %v4044_v45  ;;  %vm2542_vm5 = vweird.f32 %v5293_v57  ;;  %v2507_v48 = vsel %vm5301_vm15, %v2506_v59, %v2502_v51  ;;  %2908 = vst [vmem:[#allocation1] ss:$2 sm:$0xff] %v4501_v36  ;;  %vm5354_vm9 = vmor %vm2569_vm7, %vm2570_vm4 }
 0x741   : > { %v2566_v30 = vsub.f32 1.0, %v2565_v62  ;;  %4251 = vrcp.f32 %v5316_v32  ;;  %v2545_v62 = vand.u32 2147483647, %v5265_v53  ;;  %2909 = vst [vmem:[#allocation1 + $0x1] ss:$2 sm:$0xff] %v4509_v39  ;;  %vm5363_vm10 = vmor %vm2541_vm8, %vm2542_vm5  ;;  %v2561_v50 = vand.u32 2147483648, %v5307_v14 }
 0x742   : > { %v2538_v52 = vsub.f32 1.0, %v2537_v56  ;;  %2951 = vmatpush.msrb.mxu2 %v4043_v54  ;;  %v2530_v56 = vsel %vm5329_vm3, %v5258_v15, %v2526_v24  ;;  %v2593_v15 = vmul.f32 %v5219_v49, %v2507_v48  ;;  %2895 = vst [vmem:[#allocation1 + $0x11] ss:$2 sm:$0xff] %v4479_v29  ;;  %v2548_v24 = vor.u32 1.1754944e-38, %v2547_v1  ;;  %v4033_v1 = vld [vmem:[%s5715_s1 + $0x70] sm:$0xff] }
 0x743   : > { %v2567_v45 = vmul.f32 %v5289_v0, %v2566_v30  ;;  %v2535_v5 = vsel %vm2532_vm6, %v2534_v10, %v2530_v56  ;;  %v2576_v54 = vor.u32 1.1754944e-38, %v2575_v22  ;;  %v5379_v22 = vld.sshfl [vmem:[#allocation1 + $0x20] sm:$0xff pattern:$0x75316420]  ;;  %vm2546_vm12 = vcmp.eq.f32.partialorder %v2545_v62, 8.507059e+37  ;;  %2856 = vmatpush.msrb.mxu1 %v4033_v1 }
 0x744   : > { %v2539_v43 = vmul.f32 %v5293_v57, %v2538_v52  ;;  %v2595_v59 = vmul.f32 %v5221_v7, %v2535_v5  ;;  %4015 = vmatmul.msk.f32.gmra.mxu2 %vm820_vm2, %v2593_v15  ;;  %v2589_v48 = vand.u32 2147483648, %v5316_v32  ;;  %2897 = vst [vmem:[#allocation1 + $0x20] ss:$2 sm:$0xff] %v4444_v19  ;;  %v2559_v15 = vand.u32 2147483647, %v5307_v14 }
 0x745   : > { %v2568_v30 = vadd.f32 %v5289_v0, %v2567_v45  ;;  %2899 = vst [vmem:[#allocation1 + $0x21] ss:$2 sm:$0xff] %v4447_v20  ;;  %vm2555_vm15 = vweird.f32 %v5307_v14  ;;  %vm2583_vm3 = vweird.f32 %v5316_v32 }
 0x746   : > { %v4250_v52 = vpop.eup %4249  ;;  %v2540_v38 = vadd.f32 %v5293_v57, %v2539_v43  ;;  %4017 = vmatmul.msk.f32.gmra.mxu3 %vm820_vm2, %v2595_v59  ;;  %v2562_v59 = vor.u32 1.1754944e-38, %v2561_v50  ;;  %vm2560_vm6 = vcmp.eq.f32.partialorder %v2559_v15, 8.507059e+37 }
 0x747   : > { %v4252_v51 = vpop.eup %4251  ;;  %v2572_v10 = vsel %vm5354_vm9, %v5289_v0, %v2568_v30  ;;  %v2551_v49 = vmul.f32 %v4250_v52, %v5307_v14  ;;  %vm2556_vm13 = vweird.f32 %v4250_v52 }
 0x748   : > { %v2544_v7 = vsel %vm5363_vm10, %v5293_v57, %v2540_v38  ;;  %v2577_v2 = vsel %vm2574_vm11, %v2576_v54, %v2572_v10  ;;  %v2579_v0 = vmul.f32 %v4252_v51, %v5316_v32  ;;  %vm2584_vm14 = vweird.f32 %v4252_v51  ;;  %vm2557_vm4 = vmor %vm2555_vm15, %vm2556_vm13  ;;  %v4031_v10 = vld [vmem:[%s5715_s1 + $0x60] sm:$0xff] }
 0x749   : > { %v2549_v45 = vsel %vm2546_vm12, %v2548_v24, %v2544_v7  ;;  %v2552_v56 = vsub.f32 1.0, %v2551_v49  ;;  %v2598_v57 = vmul.f32 %v5231_v9, %v2577_v2  ;;  %v2587_v38 = vand.u32 2147483647, %v5316_v32  ;;  %vm5399_vm5 = vmor %vm2583_vm3, %vm2584_vm14  ;;  %v4032_v32 = vld [vmem:[%s5715_s1 + $0x68] sm:$0xff] }
 0x74a   : > { %v2596_v43 = vmul.f32 %v5233_v8, %v2549_v45  ;;  %v2580_v30 = vsub.f32 1.0, %v2579_v0  ;;  %v2905_v8 = vld.sshfl [vmem:[#allocation1 + $0x10] sm:$0xff pattern:$0x75316420]  ;;  %v2590_v54 = vor.u32 1.1754944e-38, %v2589_v48  ;;  %2857 = vmatpush.msrb.mxu1 %v4032_v32 }
 0x74b   : > { %v2553_v62 = vmul.f32 %v4250_v52, %v2552_v56  ;;  %2910 = vst [vmem:[#allocation1 + $0x10] ss:$2 sm:$0xff] %v4512_v40  ;;  %v2826_v49 = vld.sshfl [vmem:[#allocation1 + $0x30] sm:$0xff pattern:$0x75316420]  ;;  %vm2588_vm7 = vcmp.eq.f32.partialorder %v2587_v38, 8.507059e+37 }
 0x74c   : > { %v2581_v5 = vmul.f32 %v4252_v51, %v2580_v30  ;;  %4018 = vmatmul.msk.f32.vlgmr.msra.gmra.mxu1 %vm820_vm2, %v2596_v43  ;;  %2911 = vst [vmem:[#allocation1 + $0x11] ss:$2 sm:$0xff] %v4518_v42  ;;  %4020 = vmatmul.msk.f32.vlgmr.msra.gmra.mxu2 %vm820_vm2, %v2598_v57  ;;  %v2906_v2 = vld.sshfl [vmem:[#allocation1 + $0x20] sm:$0xff pattern:$0x75316420] }
 0x74d   : > { %v2554_v53 = vadd.f32 %v4250_v52, %v2553_v62  ;;  %2901 = vst [vmem:[#allocation1 + $0x30] ss:$2 sm:$0xff] %v4450_v21  ;;  %2858 = vmatpush.msrb.mxu1 %v4031_v10 }
 0x74e   : > { %v2582_v9 = vadd.f32 %v4252_v51, %v2581_v5  ;;  %2903 = vst [vmem:[#allocation1 + $0x31] ss:$2 sm:$0xff] %v4457_v23 }
 0x74f   : > { %v2558_v14 = vsel %vm2557_vm4, %v4250_v52, %v2554_v53  ;;  %2912 = vst [vmem:[#allocation1 + $0x20] ss:$2 sm:$0xff] %v4487_v31 }
 0x750   : > { %v2563_v16 = vsel %vm2560_vm6, %v2562_v59, %v2558_v14  ;;  %v2586_v1 = vsel %vm5399_vm5, %v4252_v51, %v2582_v9  ;;  %2913 = vst [vmem:[#allocation1 + $0x21] ss:$2 sm:$0xff] %v4494_v33  ;;  %v2916_v51 = vld.sshfl [vmem:[#allocation1] sm:$0xff pattern:$0x75316420] }
 0x751   : > { %v2597_v7 = vmul.f32 %v5241_v55, %v2563_v16  ;;  %v2591_v52 = vsel %vm2588_vm7, %v2590_v54, %v2586_v1  ;;  %2982 = vst [vmem:[#allocation1] ss:$2 sm:$0xff] %v4464_v25 }
 0x752   : > { %v2599_v0 = vmul.f32 %v5243_v61, %v2591_v52  ;;  %2984 = vst [vmem:[#allocation1 + $0x1] ss:$2 sm:$0xff] %v4468_v26 }
 0x753   : > { %v2917_v55 = vld.sshfl [vmem:[#allocation1 + $0x10] sm:$0xff pattern:$0x75316420] }
 0x754   : > { %4019 = vmatmul.msk.f32.gmra.mxu1 %vm820_vm2, %v2597_v7  ;;  %4021 = vmatmul.msk.f32.gmra.mxu2 %vm820_vm2, %v2599_v0  ;;  %2986 = vst [vmem:[#allocation1 + $0x10] ss:$2 sm:$0xff] %v4475_v28 }
 0x755   : > { %v2907_v45 = vld.sshfl [vmem:[#allocation1 + $0x30] sm:$0xff pattern:$0x75316420]  ;;  %2988 = vst [vmem:[#allocation1 + $0x11] ss:$2 sm:$0xff] %v4479_v29 }
 0x756   : > { %2914 = vst [vmem:[#allocation1 + $0x30] ss:$2 sm:$0xff] %v4497_v35 }
 0x757   : > { %2915 = vst [vmem:[#allocation1 + $0x31] ss:$2 sm:$0xff] %v4505_v37  ;;  %v2918_v25 = vld.sshfl [vmem:[#allocation1 + $0x20] sm:$0xff pattern:$0x75316420] }
 0x758   : > { %2990 = vst [vmem:[#allocation1 + $0x20] ss:$2 sm:$0xff] %v4444_v19  ;;  %v4022_v19 = vld [vmem:[%s5718_s4 + $0x10] sm:$0xff] }
 0x759   : > { %2992 = vst [vmem:[#allocation1 + $0x21] ss:$2 sm:$0xff] %v4447_v20  ;;  %2757 = vmatpush.msra.mxu3 %v4022_v19 }
 0x75c   : > { %4035 = vmatmul.msk.f32.vlgmr.msrb.gmra.mxu1 %vm437_vm0, %v5179_v12  ;;  %4047 = vmatmul.msk.f32.vlgmr.msrb.gmra.mxu2 %vm437_vm0, %v5336_v27 }
 0x75e   : > { %v2919_v26 = vld.sshfl [vmem:[#allocation1 + $0x30] sm:$0xff pattern:$0x75316420] }
 0x75f   : > { %2994 = vst [vmem:[#allocation1 + $0x30] ss:$2 sm:$0xff] %v4450_v21 }
 0x760   : > { %2996 = vst [vmem:[#allocation1 + $0x31] ss:$2 sm:$0xff] %v4457_v23 }
 0x764   : > { %4036 = vmatmul.msk.f32.gmra.mxu1 %vm437_vm0, %v5191_v63  ;;  %4048 = vmatmul.msk.f32.gmra.mxu2 %vm437_vm0, %v2905_v8 }
 0x76c   : > { %4037 = vmatmul.msk.f32.gmra.mxu1 %vm437_vm0, %v5195_v18  ;;  %4049 = vmatmul.msk.f32.gmra.mxu2 %vm437_vm0, %v2906_v2 }
 0x774   : > { %4038 = vmatmul.msk.f32.gmra.mxu1 %vm437_vm0, %v5207_v13  ;;  %4050 = vmatmul.msk.f32.gmra.mxu2 %vm437_vm0, %v2907_v45  ;;  %v4057_v45 = vld [vmem:[%s5717_s3 + $0x70] sm:$0xff] }
 0x77c   : > { %4039 = vmatmul.msk.f32.gmra.mxu1 %vm437_vm0, %v5268_v6  ;;  %4051 = vmatmul.msk.f32.gmra.mxu2 %vm437_vm0, %v2916_v51  ;;  %v4058_v51 = vld [vmem:[%s5717_s3 + $0x78] sm:$0xff] }
 0x77d   : > { %3041 = vmatpush.msra.mxu0 %v4058_v51 }
 0x77f   : > { %3042 = vmatpush.msra.mxu0 %v4057_v45 }
 0x784   : > { %4040 = vmatmul.msk.f32.gmra.mxu1 %vm437_vm0, %v5312_v41  ;;  %4052 = vmatmul.msk.f32.gmra.mxu2 %vm437_vm0, %v2917_v55  ;;  %v2997_v55 = vld.sshfl [vmem:[#allocation1] sm:$0xff pattern:$0x75316420] }
 0x785   : > { %3001 = vst [vmem:[#allocation1] ss:$2 sm:$0xff] %v4501_v36 }
 0x786   : > { %3002 = vst [vmem:[#allocation1 + $0x1] ss:$2 sm:$0xff] %v4509_v39 }
 0x78c   : > { %4041 = vmatmul.msk.f32.gmra.mxu1 %vm437_vm0, %v5379_v22  ;;  %4053 = vmatmul.msk.f32.gmra.mxu2 %vm437_vm0, %v2918_v25  ;;  %v4056_v25 = vld [vmem:[%s5717_s3 + $0x68] sm:$0xff] }
 0x78d   : > { %3043 = vmatpush.msra.mxu0 %v4056_v25 }
 0x794   : > { %4042 = vmatmul.msk.f32.gmra.mxu1 %vm437_vm0, %v2826_v49  ;;  %4054 = vmatmul.msk.f32.gmra.mxu2 %vm437_vm0, %v2919_v26  ;;  %v4055_v26 = vld [vmem:[%s5717_s3 + $0x60] sm:$0xff] }
 0x795   : > { %3044 = vmatpush.msra.mxu0 %v4055_v26 }
 0x796   : > { %4059 = vmatmul.msk.f32.vlgmr.msra.gmra.mxu0 %vm437_vm0, %v2997_v55 }
 0x797   : > { %v2652_v28 = vpop.f32.mrf.mxu3 }
 0x7be   : > { %v2623_v20 = vpop.f32.mrf.mxu2 }
 0x7bf   : > { %4023 = vmatmul.msk.f32.vlgmr.msra.gmra.mxu3 %vm679_vm1, %v2623_v20 }
 0x7c7   : > { %v2626_v21 = vpop.f32.mrf.mxu2 }
 0x7c8   : > { %4024 = vmatmul.msk.f32.gmra.mxu3 %vm679_vm1, %v2626_v21 }
 0x7c9   : > { %v2681_v23 = vpop.f32.mrf.mxu1  ;;  %v2655_v63 = vpop.f32.mrf.mxu3 }
 0x7cf   : > { %v2710_v29 = vpop.f32.mrf.mxu2 }
 0x7d0   : > { %4025 = vmatmul.msk.f32.gmra.mxu3 %vm679_vm1, %v2652_v28 }
 0x7d1   : > { %v2684_v12 = vpop.f32.mrf.mxu1 }
 0x7d7   : > { %v2713_v18 = vpop.f32.mrf.mxu2 }
 0x7d8   : > { %4026 = vmatmul.msk.f32.gmra.mxu3 %vm679_vm1, %v2655_v63  ;;  %v2999_v63 = vld.sshfl [vmem:[#allocation1 + $0x20] sm:$0xff pattern:$0x75316420] }
 0x7d9   : > { %v2860_v13 = vpop.f32.mrf.mxu1  ;;  %3005 = vst [vmem:[#allocation1 + $0x20] ss:$2 sm:$0xff] %v4487_v31 }
 0x7da   : > { %3006 = vst [vmem:[#allocation1 + $0x21] ss:$2 sm:$0xff] %v4494_v33 }
 0x7df   : > { %v2953_v61 = vpop.f32.mrf.mxu2 }
 0x7e0   : > { %4027 = vmatmul.msk.f32.gmra.mxu3 %vm679_vm1, %v2681_v23 }
 0x7e1   : > { %v2863_v41 = vpop.f32.mrf.mxu1 }
 0x7e7   : > { %v2956_v6 = vpop.f32.mrf.mxu2 }
 0x7e8   : > { %4028 = vmatmul.msk.f32.gmra.mxu3 %vm679_vm1, %v2684_v12  ;;  %v2998_v12 = vld.sshfl [vmem:[#allocation1 + $0x10] sm:$0xff pattern:$0x75316420] }
 0x7e9   : > { %4067 = vmatpush.xpose.msk.msrb.mxu3 %vm679_vm1, %v2956_v6  ;;  %v2866_v22 = vpop.f32.mrf.mxu1  ;;  %4060 = vmatmul.msk.f32.gmra.mxu0 %vm437_vm0, %v2998_v12  ;;  %3003 = vst [vmem:[#allocation1 + $0x10] ss:$2 sm:$0xff] %v4512_v40  ;;  %v3009_v6 = vld.sshfl [vmem:[#allocation1] sm:$0xff pattern:$0x75316420] }
 0x7ea   : > { %3004 = vst [vmem:[#allocation1 + $0x11] ss:$2 sm:$0xff] %v4518_v42 }
 0x7ed   : > { %4068 = vmatpush.xpose.msk.msrb.mxu3 %vm679_vm1, %v2953_v61 }
 0x7ef   : > { %v2959_v27 = vpop.f32.mrf.mxu2 }
 0x7f0   : > { %4029 = vmatmul.msk.f32.gmra.mxu3 %vm679_vm1, %v2710_v29 }
 0x7f1   : > { %v2869_v56 = vpop.f32.mrf.mxu1  ;;  %4061 = vmatmul.msk.f32.gmra.mxu0 %vm437_vm0, %v2999_v63 }
 0x7f7   : > { %v2962_v48 = vpop.f32.mrf.mxu2 }
 0x7f8   : > { %4030 = vmatmul.msk.f32.gmra.mxu3 %vm679_vm1, %v2713_v18  ;;  %4071 = vmatpush.xpose.msk.msra.mxu1 %vm679_vm1, %v2962_v48  ;;  %v3000_v18 = vld.sshfl [vmem:[#allocation1 + $0x30] sm:$0xff pattern:$0x75316420] }
 0x7f9   : > { %v2872_v30 = vpop.f32.mrf.mxu1  ;;  %4062 = vmatmul.msk.f32.gmra.mxu0 %vm437_vm0, %v3000_v18  ;;  %3007 = vst [vmem:[#allocation1 + $0x30] ss:$2 sm:$0xff] %v4497_v35 }
 0x7fa   : > { %3008 = vst [vmem:[#allocation1 + $0x31] ss:$2 sm:$0xff] %v4505_v37 }
 0x7fc   : > { %4072 = vmatpush.xpose.msk.msra.mxu1 %vm679_vm1, %v2959_v27  ;;  %v3010_v27 = vld.sshfl [vmem:[#allocation1 + $0x10] sm:$0xff pattern:$0x75316420] }
 0x7ff   : > { %v2965_v43 = vpop.f32.mrf.mxu2  ;;  %4073 = vmatmul.msk.f32.vlgmr.msra.gmra.mxu1 %vm679_vm1, %v2866_v22 }
 0x800   : > { %4069 = vmatmul.msk.f32.vlgmr.msrb.gmra.mxu3 %vm679_vm1, %v2860_v13 }
 0x801   : > { %v2875_v62 = vpop.f32.mrf.mxu1  ;;  %4063 = vmatmul.msk.f32.gmra.mxu0 %vm437_vm0, %v3009_v6 }
 0x807   : > { %v2968_v50 = vpop.f32.mrf.mxu2  ;;  %4074 = vmatmul.msk.f32.gmra.mxu1 %vm679_vm1, %v2869_v56 }
 0x808   : > { %4070 = vmatmul.msk.f32.gmra.mxu3 %vm679_vm1, %v2863_v41  ;;  %4075 = vmatpush.xpose.msk.msra.mxu2 %vm679_vm1, %v2968_v50 }
 0x809   : > { %v2878_v5 = vpop.f32.mrf.mxu1  ;;  %4064 = vmatmul.msk.f32.gmra.mxu0 %vm437_vm0, %v3010_v27 }
 0x80c   : > { %4076 = vmatpush.xpose.msk.msra.mxu2 %vm679_vm1, %v2965_v43  ;;  %v3011_v43 = vld.sshfl [vmem:[#allocation1 + $0x20] sm:$0xff pattern:$0x75316420] }
 0x80f   : > { %v2971_v57 = vpop.f32.mrf.mxu2  ;;  %4077 = vmatmul.msk.f32.vlgmr.msra.gmra.mxu2 %vm679_vm1, %v2872_v30 }
 0x811   : > { %v2881_v38 = vpop.f32.mrf.mxu1  ;;  %4065 = vmatmul.msk.f32.gmra.mxu0 %vm437_vm0, %v3011_v43 }
 0x813   : > { %v3046_v18 = vpop.f32.mrf.mxu0 }
 0x817   : > { %v2974_v15 = vpop.f32.mrf.mxu2  ;;  %4078 = vmatmul.msk.f32.gmra.mxu2 %vm679_vm1, %v2875_v62 }
 0x818   : > { %4079 = vmatpush.xpose.msk.msra.mxu3 %vm679_vm1, %v2974_v15 }
 0x81c   : > { %4080 = vmatpush.xpose.msk.msra.mxu3 %vm679_vm1, %v2971_v57 }
 0x81f   : > { %4081 = vmatmul.msk.f32.vlgmr.msra.gmra.mxu3 %vm679_vm1, %v2878_v5  ;;  %v3012_v5 = vld.sshfl [vmem:[#allocation1 + $0x30] sm:$0xff pattern:$0x75316420] }
 0x820   : > { %4066 = vmatmul.msk.f32.gmra.mxu0 %vm437_vm0, %v3012_v5 }
 0x827   : > { %4082 = vmatmul.msk.f32.gmra.mxu3 %vm679_vm1, %v2881_v38 }
 0x842   : > { %v5482_v8 = vpop.f32.mrf.mxu3 }
 0x84b   : > { %v5484_v53 = vpop.f32.mrf.mxu3 }
 0x853   : > { %v5486_v9 = vpop.f32.mrf.mxu3 }
 0x85b   : > { %v5488_v24 = vpop.f32.mrf.mxu3 }
 0x863   : > { %v5490_v54 = vpop.f32.mrf.mxu3 }
 0x86b   : > { %v5492_v59 = vpop.f32.mrf.mxu3 }
 0x873   : > { %v5494_v14 = vpop.f32.mrf.mxu3 }
 0x87b   : > { %v5496_v32 = vpop.f32.mrf.mxu3 }
 0x87c   : > { %v3134_v10 = vpop.f32.mrf.mxu1 }
 0x87d   : > { %v3216_v49 = vsel %vm820_vm2, %v3134_v10, -inf }
 0x87e   : > { %3217 = vmax.xlane.f32.xlu2 %v3216_v49 }
 0x883   : > { %v3099_v16 = vpop.f32.mrf.mxu3 }
 0x884   : > { %v3210_v1 = vsel %vm820_vm2, %v3099_v16, -inf  ;;  %v5500_v7 = vpop.f32.mrf.mxu1 }
 0x885   : > { %3211 = vmax.xlane.f32.xlu0 %v3210_v1  ;;  %v3219_v52 = vsel %vm820_vm2, %v5500_v7, -inf }
 0x88b   : > { %v3102_v2 = vpop.f32.mrf.mxu3 }
 0x88c   : > { %v3213_v0 = vsel %vm820_vm2, %v3102_v2, -inf }
 0x88d   : > { %3220 = vmax.xlane.f32.xlu0 %v3219_v52  ;;  %3214 = vmax.xlane.f32.xlu1 %v3213_v0 }
 0x892   : > { %v3169_v19 = vpop.f32.mrf.mxu2 }
 0x893   : > { %v3222_v20 = vsel %vm820_vm2, %v3169_v19, -inf }
 0x895   : > { %3223 = vmax.xlane.f32.xlu1 %v3222_v20 }
 0x89a   : > { %v5521_v36 = vpop.f32.mrf.mxu2 }
 0x89b   : > { %v3225_v21 = vsel %vm820_vm2, %v5521_v36, -inf }
 0x89c   : > { %3226 = vmax.xlane.f32.xlu2 %v3225_v21 }
 0x8a2   : > { %v5525_v39 = vpop.f32.mrf.mxu3 }
 0x8a3   : > { %v3228_v23 = vsel %vm820_vm2, %v5525_v39, -inf }
 0x8a4   : > { %3229 = vmax.xlane.f32.xlu0 %v3228_v23 }
 0x8aa   : > { %v5529_v28 = vpop.f32.mrf.mxu3 }
 0x8ab   : > { %v3231_v29 = vsel %vm820_vm2, %v5529_v28, -inf }
 0x8ac   : > { %3232 = vmax.xlane.f32.xlu1 %v3231_v29 }
 0x8f1   : > { %v3218_v13 = vpop.xlane.xlu2 %3217 }
 0x8f2   : > { %v3236_v61 = vsub.f32 %v3134_v10, %v3218_v13  ;;  %v3049_v13 = vpop.f32.mrf.mxu0 }
 0x8f3   : > { %3422 = vmatpush.msrb.mxu0 %v3049_v13 }
 0x8f4   : > { %v3246_v40 = vmul.f32 1.442695, %v3236_v61 }
 0x8f5   : > { %3423 = vmatpush.msrb.mxu0 %v3046_v18 }
 0x8f6   : > { %4253 = vpow2.f32 %v3246_v40 }
 0x8f8   : > { %v3212_v42 = vpop.xlane.xlu0 %3211 }
 0x8f9   : > { %v3234_v41 = vsub.f32 %v3099_v16, %v3212_v42 }
 0x8fa   : > { %v3052_v61 = vpop.f32.mrf.mxu0 }
 0x8fb   : > { %v3242_v31 = vmul.f32 1.442695, %v3234_v41 }
 0x8fc   : > { %v5544_v33 = vpop.eup %4253 }
 0x8fd   : > { %4255 = vpow2.f32 %v3242_v31  ;;  %v3264_v35 = vsel %vm820_vm2, %v5544_v33, 0.0 }
 0x8fe   : > { %3265 = vadd.xlane.f32.xlu1 %v3264_v35 }
 0x900   : > { %v3221_v37 = vpop.xlane.xlu0 %3220  ;;  %v3215_v22 = vpop.xlane.xlu1 %3214 }
 0x901   : > { %v3237_v48 = vsub.f32 %v5500_v7, %v3221_v37  ;;  %v3235_v56 = vsub.f32 %v3102_v2, %v3215_v22 }
 0x903   : > { %v5549_v30 = vpop.eup %4255  ;;  %v3248_v50 = vmul.f32 1.442695, %v3237_v48  ;;  %v3244_v57 = vmul.f32 1.442695, %v3235_v56 }
 0x904   : > { %v3258_v62 = vsel %vm820_vm2, %v5549_v30, 0.0 }
 0x905   : > { %4257 = vpow2.f32 %v3248_v50  ;;  %3259 = vadd.xlane.f32.xlu2 %v3258_v62 }
 0x906   : > { %4259 = vpow2.f32 %v3244_v57 }
 0x908   : > { %v3224_v15 = vpop.xlane.xlu1 %3223 }
 0x909   : > { %v3238_v38 = vsub.f32 %v3169_v19, %v3224_v15 }
 0x90b   : > { %v5554_v10 = vpop.eup %4257  ;;  %v3250_v49 = vmul.f32 1.442695, %v3238_v38 }
 0x90c   : > { %v5557_v16 = vpop.eup %4259  ;;  %v3267_v1 = vsel %vm820_vm2, %v5554_v10, 0.0 }
 0x90d   : > { %4261 = vpow2.f32 %v3250_v49  ;;  %3268 = vadd.xlane.f32.xlu2 %v3267_v1  ;;  %v3261_v7 = vsel %vm820_vm2, %v5557_v16, 0.0 }
 0x90e   : > { %3262 = vadd.xlane.f32.xlu0 %v3261_v7 }
 0x90f   : > { %v3227_v52 = vpop.xlane.xlu2 %3226 }
 0x910   : > { %v3239_v2 = vsub.f32 %v5521_v36, %v3227_v52 }
 0x912   : > { %v3252_v0 = vmul.f32 1.442695, %v3239_v2 }
 0x913   : > { %v5564_v51 = vpop.eup %4261 }
 0x914   : > { %4263 = vpow2.f32 %v3252_v0  ;;  %v3270_v45 = vsel %vm820_vm2, %v5564_v51, 0.0 }
 0x916   : > { %3271 = vadd.xlane.f32.xlu0 %v3270_v45 }
 0x917   : > { %v3230_v55 = vpop.xlane.xlu0 %3229 }
 0x918   : > { %v3240_v25 = vsub.f32 %v5525_v39, %v3230_v55 }
 0x91a   : > { %v5569_v26 = vpop.eup %4263  ;;  %v3254_v19 = vmul.f32 1.442695, %v3240_v25 }
 0x91b   : > { %v3273_v20 = vsel %vm820_vm2, %v5569_v26, 0.0 }
 0x91c   : > { %4265 = vpow2.f32 %v3254_v19  ;;  %3274 = vadd.xlane.f32.xlu1 %v3273_v20 }
 0x91f   : > { %v3233_v36 = vpop.xlane.xlu1 %3232 }
 0x920   : > { %v3241_v21 = vsub.f32 %v5529_v28, %v3233_v36  ;;  %v3055_v28 = vpop.f32.mrf.mxu0 }
 0x921   : > { %3451 = vmatpush.msrb.mxu1 %v3055_v28 }
 0x922   : > { %v5574_v23 = vpop.eup %4265  ;;  %v3256_v29 = vmul.f32 1.442695, %v3241_v21 }
 0x923   : > { %v3276_v12 = vsel %vm820_vm2, %v5574_v23, 0.0  ;;  %3452 = vmatpush.msrb.mxu1 %v3052_v61 }
 0x924   : > { %4267 = vpow2.f32 %v3256_v29  ;;  %3277 = vadd.xlane.f32.xlu2 %v3276_v12 }
 0x928   : > { %v3058_v40 = vpop.f32.mrf.mxu0 }
 0x92a   : > { %v5578_v39 = vpop.eup %4267 }
 0x92b   : > { %v3279_v63 = vsel %vm820_vm2, %v5578_v39, 0.0 }
 0x92c   : > { %3280 = vadd.xlane.f32.xlu0 %v3279_v63 }
 0x930   : > { %v3061_v31 = vpop.f32.mrf.mxu0 }
 0x931   : > { %3480 = vmatpush.msrb.mxu2 %v3061_v31 }
 0x933   : > { %3481 = vmatpush.msrb.mxu2 %v3058_v40 }
 0x938   : > { %v3064_v1 = vpop.f32.mrf.mxu0 }
 0x940   : > { %v3067_v18 = vpop.f32.mrf.mxu0 }
 0x941   : > { %3509 = vmatpush.msrb.mxu3 %v3067_v18 }
 0x943   : > { %3510 = vmatpush.msrb.mxu3 %v3064_v1 }
 0x971   : > { %v3266_v6 = vpop.xlane.xlu1 %3265 }
 0x972   : > { %4269 = vrcp.f32 %v3266_v6  ;;  %v3321_v37 = vand.u32 2147483648, %v3266_v6  ;;  %v3319_v48 = vand.u32 2147483647, %v3266_v6  ;;  %vm3315_vm8 = vweird.f32 %v3266_v6 }
 0x974   : > { %v3322_v50 = vor.u32 1.1754944e-38, %v3321_v37  ;;  %vm3320_vm10 = vcmp.eq.f32.partialorder %v3319_v48, 8.507059e+37 }
 0x978   : > { %v4270_v42 = vpop.eup %4269  ;;  %v3260_v41 = vpop.xlane.xlu2 %3259 }
 0x979   : > { %v3311_v27 = vmul.f32 %v4270_v42, %v3266_v6  ;;  %4271 = vrcp.f32 %v3260_v41  ;;  %vm3316_vm0 = vweird.f32 %v4270_v42  ;;  %v3293_v52 = vand.u32 2147483648, %v3260_v41 }
 0x97a   : > { %vm3317_vm9 = vmor %vm3315_vm8, %vm3316_vm0  ;;  %v3291_v0 = vand.u32 2147483647, %v3260_v41  ;;  %vm3287_vm12 = vweird.f32 %v3260_v41 }
 0x97b   : > { %v3312_v35 = vsub.f32 1.0, %v3311_v27  ;;  %v3294_v25 = vor.u32 1.1754944e-38, %v3293_v52 }
 0x97c   : > { %vm3292_vm14 = vcmp.eq.f32.partialorder %v3291_v0, 8.507059e+37 }
 0x97d   : > { %v3313_v22 = vmul.f32 %v4270_v42, %v3312_v35 }
 0x97f   : > { %v4272_v56 = vpop.eup %4271  ;;  %v3314_v43 = vadd.f32 %v4270_v42, %v3313_v22 }
 0x980   : > { %v3283_v57 = vmul.f32 %v4272_v56, %v3260_v41  ;;  %v3269_v62 = vpop.xlane.xlu2 %3268  ;;  %vm3288_vm11 = vweird.f32 %v4272_v56 }
 0x981   : > { %v3318_v15 = vsel %vm3317_vm9, %v4270_v42, %v3314_v43  ;;  %4273 = vrcp.f32 %v3269_v62  ;;  %v3263_v5 = vpop.xlane.xlu0 %3262  ;;  %vm3289_vm13 = vmor %vm3287_vm12, %vm3288_vm11  ;;  %v3333_v13 = vand.u32 2147483647, %v3269_v62  ;;  %v3335_v6 = vand.u32 2147483648, %v3269_v62 }
 0x982   : > { %v3323_v38 = vsel %vm3320_vm10, %v3322_v50, %v3318_v15  ;;  %v3284_v49 = vsub.f32 1.0, %v3283_v57  ;;  %4275 = vrcp.f32 %v3263_v5  ;;  %v3307_v40 = vand.u32 2147483648, %v3263_v5 }
 0x983   : > { %v3396_v7 = vmul.f32 %v5544_v33, %v3323_v38  ;;  %v3305_v41 = vand.u32 2147483647, %v3263_v5  ;;  %vm3329_vm4 = vweird.f32 %v3269_v62  ;;  %vm3301_vm6 = vweird.f32 %v3263_v5 }
 0x984   : > { %v3285_v2 = vmul.f32 %v4272_v56, %v3284_v49  ;;  %vm3334_vm7 = vcmp.eq.f32.partialorder %v3333_v13, 8.507059e+37  ;;  %v3336_v22 = vor.u32 1.1754944e-38, %v3335_v6  ;;  %v3308_v48 = vor.u32 1.1754944e-38, %v3307_v40 }
 0x985   : > { %4085 = vmatmul.msk.f32.vlgmr.msrb.gmra.mxu1 %vm820_vm2, %v3396_v7  ;;  %vm3306_vm8 = vcmp.eq.f32.partialorder %v3305_v41, 8.507059e+37 }
 0x986   : > { %v3286_v45 = vadd.f32 %v4272_v56, %v3285_v2 }
 0x987   : > { %v4274_v55 = vpop.eup %4273 }
 0x988   : > { %v4276_v19 = vpop.eup %4275  ;;  %v3290_v20 = vsel %vm3289_vm13, %v4272_v56, %v3286_v45  ;;  %v3325_v36 = vmul.f32 %v4274_v55, %v3269_v62  ;;  %vm3330_vm15 = vweird.f32 %v4274_v55 }
 0x989   : > { %v3295_v21 = vsel %vm3292_vm14, %v3294_v25, %v3290_v20  ;;  %v3297_v29 = vmul.f32 %v4276_v19, %v3263_v5  ;;  %v3272_v12 = vpop.xlane.xlu0 %3271  ;;  %vm3302_vm3 = vweird.f32 %v4276_v19  ;;  %vm5586_vm5 = vmor %vm3329_vm4, %vm3330_vm15 }
 0x98a   : > { %v3394_v33 = vmul.f32 %v5549_v30, %v3295_v21  ;;  %v3326_v63 = vsub.f32 1.0, %v3325_v36  ;;  %4277 = vrcp.f32 %v3272_v12  ;;  %vm3303_vm0 = vmor %vm3301_vm6, %vm3302_vm3  ;;  %v3349_v49 = vand.u32 2147483648, %v3272_v12 }
 0x98b   : > { %v3298_v61 = vsub.f32 1.0, %v3297_v29  ;;  %v3347_v7 = vand.u32 2147483647, %v3272_v12  ;;  %vm3343_vm10 = vweird.f32 %v3272_v12 }
 0x98c   : > { %v3327_v28 = vmul.f32 %v4274_v55, %v3326_v63  ;;  %4083 = vmatmul.msk.f32.vlgmr.msrb.gmra.mxu0 %vm820_vm2, %v3394_v33 }
 0x98d   : > { %v3299_v42 = vmul.f32 %v4276_v19, %v3298_v61  ;;  %vm3348_vm12 = vcmp.eq.f32.partialorder %v3347_v7, 8.507059e+37 }
 0x98e   : > { %v3328_v27 = vadd.f32 %v4274_v55, %v3327_v28 }
 0x98f   : > { %v3300_v31 = vadd.f32 %v4276_v19, %v3299_v42  ;;  %v3275_v35 = vpop.xlane.xlu1 %3274 }
 0x990   : > { %v4278_v37 = vpop.eup %4277  ;;  %4279 = vrcp.f32 %v3275_v35  ;;  %v3332_v50 = vsel %vm5586_vm5, %v4274_v55, %v3328_v27  ;;  %v3350_v55 = vor.u32 1.1754944e-38, %v3349_v49  ;;  %v3363_v36 = vand.u32 2147483648, %v3275_v35 }
 0x991   : > { %v3339_v56 = vmul.f32 %v4278_v37, %v3272_v12  ;;  %v3304_v43 = vsel %vm3303_vm0, %v4276_v19, %v3300_v31  ;;  %v3337_v62 = vsel %vm3334_vm7, %v3336_v22, %v3332_v50  ;;  %vm3344_vm9 = vweird.f32 %v4278_v37 }
 0x992   : > { %v3309_v57 = vsel %vm3306_vm8, %v3308_v48, %v3304_v43  ;;  %v3397_v5 = vmul.f32 %v5554_v10, %v3337_v62  ;;  %vm3345_vm11 = vmor %vm3343_vm10, %vm3344_vm9  ;;  %v3361_v21 = vand.u32 2147483647, %v3275_v35  ;;  %vm3357_vm14 = vweird.f32 %v3275_v35 }
 0x993   : > { %v3340_v15 = vsub.f32 1.0, %v3339_v56  ;;  %v3395_v38 = vmul.f32 %v5557_v16, %v3309_v57  ;;  %v3364_v63 = vor.u32 1.1754944e-38, %v3363_v36 }
 0x994   : > { %4086 = vmatmul.msk.f32.gmra.mxu1 %vm820_vm2, %v3397_v5  ;;  %vm3362_vm3 = vcmp.eq.f32.partialorder %v3361_v21, 8.507059e+37 }
 0x995   : > { %v3341_v1 = vmul.f32 %v4278_v37, %v3340_v15  ;;  %4084 = vmatmul.msk.f32.gmra.mxu0 %vm820_vm2, %v3395_v38 }
 0x996   : > { %v4280_v52 = vpop.eup %4279 }
 0x997   : > { %v3342_v2 = vadd.f32 %v4278_v37, %v3341_v1  ;;  %v3353_v0 = vmul.f32 %v4280_v52, %v3275_v35  ;;  %v3278_v45 = vpop.xlane.xlu2 %3277  ;;  %vm3358_vm13 = vweird.f32 %v4280_v52 }
 0x998   : > { %4281 = vrcp.f32 %v3278_v45  ;;  %vm3359_vm15 = vmor %vm3357_vm14, %vm3358_vm13  ;;  %v3377_v6 = vand.u32 2147483648, %v3278_v45  ;;  %v3375_v42 = vand.u32 2147483647, %v3278_v45  ;;  %vm3371_vm5 = vweird.f32 %v3278_v45 }
 0x999   : > { %v3346_v25 = vsel %vm3345_vm11, %v4278_v37, %v3342_v2  ;;  %v3354_v16 = vsub.f32 1.0, %v3353_v0 }
 0x99a   : > { %v3351_v10 = vsel %vm3348_vm12, %v3350_v55, %v3346_v25  ;;  %v3378_v30 = vor.u32 1.1754944e-38, %v3377_v6  ;;  %vm3376_vm7 = vcmp.eq.f32.partialorder %v3375_v42, 8.507059e+37  ;;  %v4156_v25 = vld [vmem:[%s5719_s5] ss:$0 sm:$0xff] }
 0x99b   : > { %v3398_v19 = vmul.f32 %v5564_v51, %v3351_v10  ;;  %v3355_v20 = vmul.f32 %v4280_v52, %v3354_v16 }
 0x99d   : > { %v3356_v29 = vadd.f32 %v4280_v52, %v3355_v20  ;;  %4087 = vmatmul.msk.f32.vlgmr.msrb.gmra.mxu2 %vm820_vm2, %v3398_v19 }
 0x99e   : > { %v4282_v12 = vpop.eup %4281 }
 0x99f   : > { %v3360_v33 = vsel %vm3359_vm15, %v4280_v52, %v3356_v29  ;;  %v3367_v18 = vmul.f32 %v4282_v12, %v3278_v45  ;;  %v3281_v13 = vpop.xlane.xlu0 %3280  ;;  %vm3372_vm4 = vweird.f32 %v4282_v12  ;;  %v1966_v45 = vadd.f32 %v5091_v11, %v5170_v58 }
 0x9a0   : > { %4283 = vrcp.f32 %v3281_v13  ;;  %v3365_v28 = vsel %vm3362_vm3, %v3364_v63, %v3360_v33  ;;  %vm3373_vm6 = vmor %vm3371_vm5, %vm3372_vm4  ;;  %v3391_v56 = vand.u32 2147483648, %v3281_v13  ;;  %vm3385_vm8 = vweird.f32 %v3281_v13 }
 0x9a1   : > { %v3368_v61 = vsub.f32 1.0, %v3367_v18  ;;  %v3399_v51 = vmul.f32 %v5569_v26, %v3365_v28  ;;  %v3389_v26 = vand.u32 2147483647, %v3281_v13  ;;  %v2783_v55 = vadd.f32 %v5482_v8, %v1966_v45 }
 0x9a2   : > { %v3392_v57 = vor.u32 1.1754944e-38, %v3391_v56  ;;  %v1969_v11 = vadd.f32 %v5094_v47, %v5177_v3  ;;  %v1972_v29 = vadd.f32 %v5098_v34, %v5188_v46 }
 0x9a3   : > { %v3369_v40 = vmul.f32 %v4282_v12, %v3368_v61  ;;  %vm3390_vm10 = vcmp.eq.f32.partialorder %v3389_v26, 8.507059e+37  ;;  %v1978_v61 = vadd.f32 %v5106_v60, %v5213_v44  ;;  %v5749_v26 = vld [vmem:[#allocation6_spill] sm:$0xff] }
 0x9a4   : > { %v2784_v58 = vadd.f32 %v5484_v53, %v1969_v11  ;;  %v2785_v33 = vadd.f32 %v5486_v9, %v1972_v29  ;;  %v1975_v53 = vadd.f32 %v5101_v17, %v5202_v4 }
 0x9a5   : > { %v3370_v41 = vadd.f32 %v4282_v12, %v3369_v40  ;;  %4088 = vmatmul.msk.f32.gmra.mxu2 %vm820_vm2, %v3399_v51  ;;  %v2787_v17 = vadd.f32 %v5490_v54, %v1978_v61  ;;  %v5744_v51 = vld [vmem:[#allocation7_spill] sm:$0xff]  ;;  %v5745_v40 = vld [vmem:[#allocation4_spill] sm:$0xff] }
 0x9a6   : > { %v4284_v27 = vpop.eup %4283  ;;  %v2786_v34 = vadd.f32 %v5488_v24, %v1975_v53  ;;  %v1981_v42 = vadd.f32 %v5745_v40, %v5744_v51 }
 0x9a7   : > { %v3374_v31 = vsel %vm3373_vm6, %v4282_v12, %v3370_v41  ;;  %v3381_v35 = vmul.f32 %v4284_v27, %v3281_v13  ;;  %vm3386_vm0 = vweird.f32 %v4284_v27 }
 0x9a8   : > { %v3379_v37 = vsel %vm3376_vm7, %v3378_v30, %v3374_v31  ;;  %vm3387_vm9 = vmor %vm3385_vm8, %vm3386_vm0  ;;  %v2788_v60 = vadd.f32 %v5492_v59, %v1981_v42  ;;  %v5746_v30 = vld [vmem:[#allocation8_spill] sm:$0xff]  ;;  %v5747_v31 = vld [vmem:[#allocation5_spill] sm:$0xff] }
 0x9a9   : > { %v3400_v22 = vmul.f32 %v5574_v23, %v3379_v37  ;;  %v3382_v48 = vsub.f32 1.0, %v3381_v35  ;;  %v4091_v23 = vld [vmem:[%s5718_s4 + $0x18] sm:$0xff]  ;;  %v1984_v35 = vadd.f32 %v5747_v31, %v5746_v30 }
 0x9aa   : > { %3559 = vmatpush.msra.mxu0 %v4091_v23 }
 0x9ab   : > { %v3383_v43 = vmul.f32 %v4284_v27, %v3382_v48  ;;  %4089 = vmatmul.msk.f32.vlgmr.msrb.gmra.mxu3 %vm820_vm2, %v3400_v22  ;;  %v2789_v22 = vadd.f32 %v5494_v14, %v1984_v35 }
 0x9ad   : > { %v3384_v50 = vadd.f32 %v4284_v27, %v3383_v43  ;;  %v5748_v43 = vld [vmem:[#allocation9_spill] sm:$0xff] }
 0x9af   : > { %v3388_v62 = vsel %vm3387_vm9, %v4284_v27, %v3384_v50  ;;  %v1987_v50 = vadd.f32 %v5749_v26, %v5748_v43 }
 0x9b0   : > { %v3393_v15 = vsel %vm3390_vm10, %v3392_v57, %v3388_v62 }
 0x9b1   : > { %v3401_v38 = vmul.f32 %v5578_v39, %v3393_v15  ;;  %v2790_v62 = vadd.f32 %v5496_v32, %v1987_v50 }
 0x9b3   : > { %4090 = vmatmul.msk.f32.gmra.mxu3 %vm820_vm2, %v3401_v38  ;;  %vm3629_vm2 = vcmask 257024  }
 0xa02   : > { %v3454_v1 = vpop.f32.mrf.mxu1 }
 0xa09   : > { %v3425_v5 = vpop.f32.mrf.mxu0 }
 0xa0a   : > { %4092 = vmatmul.msk.f32.vlgmr.msra.gmra.mxu0 %vm679_vm1, %v3425_v5 }
 0xa11   : > { %v3457_v7 = vpop.f32.mrf.mxu1 }
 0xa12   : > { %v3428_v49 = vpop.f32.mrf.mxu0 }
 0xa13   : > { %4093 = vmatmul.msk.f32.gmra.mxu0 %vm679_vm1, %v3428_v49 }
 0xa1b   : > { %4094 = vmatmul.msk.f32.gmra.mxu0 %vm679_vm1, %v3454_v1 }
 0xa20   : > { %v3483_v39 = vpop.f32.mrf.mxu2 }
 0xa23   : > { %4095 = vmatmul.msk.f32.gmra.mxu0 %vm679_vm1, %v3457_v7 }
 0xa28   : > { %v3486_v52 = vpop.f32.mrf.mxu2 }
 0xa2b   : > { %4096 = vmatmul.msk.f32.gmra.mxu0 %vm679_vm1, %v3483_v39 }
 0xa2e   : > { %v3512_v2 = vpop.f32.mrf.mxu3 }
 0xa33   : > { %4097 = vmatmul.msk.f32.gmra.mxu0 %vm679_vm1, %v3486_v52 }
 0xa36   : > { %v3515_v0 = vpop.f32.mrf.mxu3 }
 0xa3b   : > { %4098 = vmatmul.msk.f32.gmra.mxu0 %vm679_vm1, %v3512_v2 }
 0xa43   : > { %4099 = vmatmul.msk.f32.gmra.mxu0 %vm679_vm1, %v3515_v0 }
 0xa87   : > { %v3561_v16 = vpop.f32.mrf.mxu0 }
 0xa88   : > { %v3585_v10 = vadd.f32 %v3561_v16, %v2783_v55 }
 0xa8a   : > { %v3597_v19 = vadd.f32 %v4156_v25, %v3585_v10 }
 0xa8c   : > { %v3613_v20 = vrot.slane %v3597_v19, 4  ;;  %3630 = vst.msk [vmem:[%s5622_s11] sm:$0xf] %vm3629_vm2, %v3597_v19 }
 0xa8e   : > { %3631 = vst.msk [vmem:[%s5622_s11 + $0x4] sm:$0xf] %vm3629_vm2, %v3613_v20 }
 0xa90   : > { %v3564_v8 = vpop.f32.mrf.mxu0 }
 0xa91   : > { %v3586_v36 = vadd.f32 %v3564_v8, %v2784_v58 }
 0xa93   : > { %v3598_v21 = vadd.f32 %v4156_v25, %v3586_v36  ;;  %v3674_v14 = vld [vmem:[%s5622_s11] sm:$0xf] (%p4395_p6) }
 0xa94   : > { %3675 = vst [vmem:[%s3657_s14] sm:$0xf] (%p4395_p6), %v3674_v14 }
 0xa95   : > { %v3614_v12 = vrot.slane %v3598_v21, 4  ;;  %3632 = vst.msk [vmem:[%s5622_s11 + $0x8] sm:$0xf] %vm3629_vm2, %v3598_v21  ;;  %v3676_v32 = vld [vmem:[%s5622_s11 + $0x4] sm:$0xf] (%p4395_p6) }
 0xa96   : > { %3677 = vst [vmem:[%s3657_s14 + $0x8] sm:$0xf] (%p4395_p6), %v3676_v32 }
 0xa97   : > { %3633 = vst.msk [vmem:[%s5622_s11 + $0xc] sm:$0xf] %vm3629_vm2, %v3614_v12 }
 0xa98   : > { %v3567_v47 = vpop.f32.mrf.mxu0 }
 0xa99   : > { %v3587_v3 = vadd.f32 %v3567_v47, %v2785_v33 }
 0xa9b   : > { %v3599_v63 = vadd.f32 %v4156_v25, %v3587_v3 }
 0xa9c   : > { %v3678_v49 = vld [vmem:[%s5622_s11 + $0x8] sm:$0xf] (%p4395_p6) }
 0xa9d   : > { %v3615_v18 = vrot.slane %v3599_v63, 4  ;;  %3634 = vst.msk [vmem:[%s5622_s11 + $0x10] sm:$0xf] %vm3629_vm2, %v3599_v63 }
 0xa9e   : > { %v3680_v1 = vld [vmem:[%s5622_s11 + $0xc] sm:$0xf] (%p4395_p6)  ;;  %3679 = vst [vmem:[%s3657_s14 + $0x10] sm:$0xf] (%p4395_p6), %v3678_v49 }
 0xa9f   : > { %3635 = vst.msk [vmem:[%s5622_s11 + $0x14] sm:$0xf] %vm3629_vm2, %v3615_v18 }
 0xaa0   : > { %v3570_v46 = vpop.f32.mrf.mxu0  ;;  %3681 = vst [vmem:[%s3657_s14 + $0x18] sm:$0xf] (%p4395_p6), %v3680_v1 }
 0xaa1   : > { %v3588_v9 = vadd.f32 %v3570_v46, %v2786_v34 }
 0xaa3   : > { %v3600_v13 = vadd.f32 %v4156_v25, %v3588_v9 }
 0xaa4   : > { %v3682_v7 = vld [vmem:[%s5622_s11 + $0x10] sm:$0xf] (%p4395_p6) }
 0xaa5   : > { %v3616_v28 = vrot.slane %v3600_v13, 4  ;;  %3636 = vst.msk [vmem:[%s5622_s11 + $0x18] sm:$0xf] %vm3629_vm2, %v3600_v13 }
 0xaa6   : > { %v3684_v39 = vld [vmem:[%s5622_s11 + $0x14] sm:$0xf] (%p4395_p6)  ;;  %3683 = vst [vmem:[%s3657_s14 + $0x20] sm:$0xf] (%p4395_p6), %v3682_v7 }
 0xaa7   : > { %3637 = vst.msk [vmem:[%s5622_s11 + $0x1c] sm:$0xf] %vm3629_vm2, %v3616_v28 }
 0xaa8   : > { %v3573_v4 = vpop.f32.mrf.mxu0  ;;  %3685 = vst [vmem:[%s3657_s14 + $0x28] sm:$0xf] (%p4395_p6), %v3684_v39 }
 0xaa9   : > { %v3589_v24 = vadd.f32 %v3573_v4, %v2787_v17 }
 0xaab   : > { %v3601_v6 = vadd.f32 %v4156_v25, %v3589_v24 }
 0xaac   : > { %v3686_v52 = vld [vmem:[%s5622_s11 + $0x18] sm:$0xf] (%p4395_p6) }
 0xaad   : > { %v3617_v41 = vrot.slane %v3601_v6, 4  ;;  %3638 = vst.msk [vmem:[%s5622_s11 + $0x20] sm:$0xf] %vm3629_vm2, %v3601_v6 }
 0xaae   : > { %v3688_v2 = vld [vmem:[%s5622_s11 + $0x1c] sm:$0xf] (%p4395_p6)  ;;  %3687 = vst [vmem:[%s3657_s14 + $0x30] sm:$0xf] (%p4395_p6), %v3686_v52 }
 0xaaf   : > { %3639 = vst.msk [vmem:[%s5622_s11 + $0x24] sm:$0xf] %vm3629_vm2, %v3617_v41 }
 0xab0   : > { %v3576_v44 = vpop.f32.mrf.mxu0  ;;  %3689 = vst [vmem:[%s3657_s14 + $0x38] sm:$0xf] (%p4395_p6), %v3688_v2 }
 0xab1   : > { %v3590_v54 = vadd.f32 %v3576_v44, %v2788_v60 }
 0xab3   : > { %v3602_v27 = vadd.f32 %v4156_v25, %v3590_v54 }
 0xab4   : > { %v3690_v0 = vld [vmem:[%s5622_s11 + $0x20] sm:$0xf] (%p4395_p6) }
 0xab5   : > { %v3618_v37 = vrot.slane %v3602_v27, 4  ;;  %3640 = vst.msk [vmem:[%s5622_s11 + $0x28] sm:$0xf] %vm3629_vm2, %v3602_v27 }
 0xab6   : > { %v3692_v45 = vld [vmem:[%s5622_s11 + $0x24] sm:$0xf] (%p4395_p6)  ;;  %3691 = vst [vmem:[%s3657_s14 + $0x40] sm:$0xf] (%p4395_p6), %v3690_v0 }
 0xab7   : > { %3641 = vst.msk [vmem:[%s5622_s11 + $0x2c] sm:$0xf] %vm3629_vm2, %v3618_v37 }
 0xab8   : > { %v3579_v48 = vpop.f32.mrf.mxu0  ;;  %3693 = vst [vmem:[%s3657_s14 + $0x48] sm:$0xf] (%p4395_p6), %v3692_v45 }
 0xab9   : > { %v3591_v59 = vadd.f32 %v3579_v48, %v2789_v22 }
 0xabb   : > { %v3603_v56 = vadd.f32 %v4156_v25, %v3591_v59 }
 0xabc   : > { %v3694_v55 = vld [vmem:[%s5622_s11 + $0x28] sm:$0xf] (%p4395_p6) }
 0xabd   : > { %v3619_v57 = vrot.slane %v3603_v56, 4  ;;  %3642 = vst.msk [vmem:[%s5622_s11 + $0x30] sm:$0xf] %vm3629_vm2, %v3603_v56 }
 0xabe   : > { %3695 = vst [vmem:[%s3657_s14 + $0x50] sm:$0xf] (%p4395_p6), %v3694_v55 }
 0xabf   : > { %3643 = vst.msk [vmem:[%s5622_s11 + $0x34] sm:$0xf] %vm3629_vm2, %v3619_v57 }
 0xac0   : > { %v3582_v15 = vpop.f32.mrf.mxu0 }
 0xac1   : > { %v3592_v38 = vadd.f32 %v3582_v15, %v2790_v62 }
 0xac3   : > { %v3604_v23 = vadd.f32 %v4156_v25, %v3592_v38  ;;  %3652 = sbr.rel (!%p4395_p6) target bundleno = 2768 (0xad0), region = 89  ;;  %v3696_v25 = vld [vmem:[%s5622_s11 + $0x2c] sm:$0xf] (%p4395_p6) }
 0xac4   : > { %v3698_v16 = vld [vmem:[%s5622_s11 + $0x30] sm:$0xf] (%p4395_p6)  ;;  %3697 = vst [vmem:[%s3657_s14 + $0x58] sm:$0xf] (%p4395_p6), %v3696_v25 }
 0xac5   : > { %v3620_v5 = vrot.slane %v3604_v23, 4  ;;  %3644 = vst.msk [vmem:[%s5622_s11 + $0x38] sm:$0xf] %vm3629_vm2, %v3604_v23 }
 0xac6   : > { %v3700_v10 = vld [vmem:[%s5622_s11 + $0x34] sm:$0xf] (%p4395_p6)  ;;  %3699 = vst [vmem:[%s3657_s14 + $0x60] sm:$0xf] (%p4395_p6), %v3698_v16 }
 0xac7   : > { %3645 = vst.msk [vmem:[%s5622_s11 + $0x3c] sm:$0xf] %vm3629_vm2, %v3620_v5 }
 0xac8   : > { %3701 = vst [vmem:[%s3657_s14 + $0x68] sm:$0xf] %v3700_v10 }
 0xacc   : > { %v3702_v19 = vld [vmem:[%s5622_s11 + $0x38] sm:$0xf] }
 0xacd   : > { %3703 = vst [vmem:[%s3657_s14 + $0x70] sm:$0xf] %v3702_v19 }
 0xace   : > { %v3704_v20 = vld [vmem:[%s5622_s11 + $0x3c] sm:$0xf] }
 0xacf   : > { %3705 = vst [vmem:[%s3657_s14 + $0x78] sm:$0xf] %v3704_v20 }
 0xad0 PF: > { %s16_s25 = sadd.s32 1, %s4323_s25   ;;  %s5750_s21 = smov %s4311_s22 }
 0xad1   : > { %p13_p11 = scmp.ge.s32.totalorder %s16_s25, 4   ;;  %s5751_s22 = smov %s4400_s7 }
 0xad2   : > { %s5752_s23 = smov %s4319_s24  ;;  %s5753_s24 = smov %s5755_s26 }
 0xad3   :  { %15 = sbr.rel (!%p13_p11) target bundleno = 3 (0x3), region = 257 }

</bundles_post_ra>
